<compile_context>
chip_gen: v6e
topology: v6e:2x2x1
jax: 0.10.0
libtpu: 0.0.40
codegen_flags: <defaults>
</compile_context>

<pallas_src>
import jax
import jax.numpy as jnp
import numpy as np
from jax.experimental import pallas as pl
from jax.experimental.pallas import tpu as pltpu

# ----------------------------- config ("args") -------------------------------
SEQ_LEN = 8
TOKEN_VOCAB, TOKEN_DIM = 50, 16
POS_TAGS, POS_DIM = 10, 8
DEP_TAGS, DEP_DIM = 12, 8
SEN_POS_TAGS, SEN_POS_DIM = 12, 4
WORD_POS_TAGS, WORD_POS_DIM = 20, 4
EVENT_ID_TAGS, EVENT_DIM = 6, 8
EVENT_TYPE_NUMS, EVENT_TYPE_DIM = 5, 8
HIDDEN = 128          # args.hidden_size (lane-aligned so 4H gate slices are clean)
FINAL_HIDDEN = 64     # args.final_hidden_size
NUM_MLPS = 2          # args.num_mlps (kernel hardcodes the 2-layer MLP)
NUM_LAYERS = 1        # args.num_layers (single BiLSTM layer)
ROLE_NUMS = [3, 4, 5, 3, 6]   # len(roles) per event type (stand-in for `event_roles`)
LN_EPS = 1e-5
LEAKY_SLOPE = 0.01
OUT_PAD = 128         # lane-dense padded width of the fused head output slab

IN_DIM = 2 * TOKEN_DIM + 2 * POS_DIM + 2 * DEP_DIM + SEN_POS_DIM + WORD_POS_DIM + EVENT_DIM
HEAD_IN = 2 * HIDDEN + EVENT_TYPE_DIM  # LayerNorm / MLP input dim (264)


# ------------------------------ Pallas kernels --------------------------------
def bilstm_kernel(x_ref, wih_ref, whh_ref, b_ref, out_ref, xg, hc_sc, c_sc):
    """Single-layer bidirectional LSTM (PyTorch gate order i,f,g,o).

    Writes the concatenated token_out directly: out_ref[:, 0:H] = forward,
    out_ref[:, H:2H] = backward.  Both direction recurrences are advanced in
    the same (fully unrolled) loop iteration with one block-diagonal matmul.

    wih_ref : (IN_DIM, 8H) bf16  -- [wih_fwd | wih_bwd] stacked along lanes
    whh_ref : (2H, 4H)    bf16  -- [whh_fwd ; whh_bwd] stacked along sublanes
    b_ref   : (1, 8H)     f32   -- [b_fwd | b_bwd] (b_ih + b_hh folded)
    """
    N = x_ref.shape[0]
    H = c_sc.shape[1]
    G = 4 * H

    xb = x_ref[...].astype(jnp.bfloat16)
    # Input projections for BOTH directions and all timesteps in one matmul.
    xg[...] = jnp.dot(xb, wih_ref[...], preferred_element_type=jnp.float32) + b_ref[...]

    whh = whh_ref[...]                   # (2H, 4H) bf16, rows 0:H fwd, H:2H bwd
    hc_sc[...] = jnp.zeros_like(hc_sc)   # (2, 2H) block-diagonal hidden state
    c_sc[...] = jnp.zeros_like(c_sc)     # (2, H) cell state (row0 fwd, row1 bwd)

    # N is a small static trip count: fully unrolled with static indices.
    for t in range(N):
        tb = N - 1 - t
        rec = jnp.dot(hc_sc[...].astype(jnp.bfloat16), whh,
                      preferred_element_type=jnp.float32)              # (2, 4H)
        g = jnp.concatenate([xg[pl.ds(t, 1), pl.ds(0, G)],
                             xg[pl.ds(tb, 1), pl.ds(G, G)]], axis=0) + rec
        i_g = jax.nn.sigmoid(g[:, 0 * H:1 * H])
        f_g = jax.nn.sigmoid(g[:, 1 * H:2 * H])
        g_g = jnp.tanh(g[:, 2 * H:3 * H])
        o_g = jax.nn.sigmoid(g[:, 3 * H:4 * H])
        c_new = f_g * c_sc[...] + i_g * g_g                             # (2, H)
        h_new = o_g * jnp.tanh(c_new)                                   # (2, H)
        c_sc[...] = c_new
        # keep the off-diagonal blocks of hc_sc exactly zero
        hc_sc[pl.ds(0, 1), pl.ds(0, H)] = h_new[0:1, :]
        hc_sc[pl.ds(1, 1), pl.ds(H, H)] = h_new[1:2, :]
        out_ref[pl.ds(t, 1), pl.ds(0, H)] = h_new[0:1, :]
        out_ref[pl.ds(tb, 1), pl.ds(H, H)] = h_new[1:2, :]


def heads_kernel(tok_ref, et_ref, gamma_ref, beta_ref, w1_ref, b1_ref,
                 w2_ref, b2_ref, wf_ref, bf_ref, out_ref):
    """One Event_Type head per grid step: LayerNorm -> (Linear+LeakyReLU)x2 -> Linear.

    Final weights/bias are zero-padded to OUT_PAD lanes so the store is
    lane-dense; the wrapper slices the first role_nums[i] columns afterwards.
    """
    tok = tok_ref[...]                                             # (N, 2H) f32
    N = tok.shape[0]
    et = jnp.broadcast_to(et_ref[0], (N, et_ref.shape[2]))         # (N, ETD)
    x = jnp.concatenate([tok, et], axis=1)                         # (N, HEAD_IN)

    mu = jnp.mean(x, axis=-1, keepdims=True)
    cent = x - mu
    var = jnp.mean(cent * cent, axis=-1, keepdims=True)
    y = cent * jax.lax.rsqrt(var + LN_EPS) * gamma_ref[0] + beta_ref[0]

    def leaky(v):
        return jnp.where(v > 0, v, LEAKY_SLOPE * v)

    h1 = leaky(jnp.dot(y.astype(jnp.bfloat16), w1_ref[0],
                       preferred_element_type=jnp.float32) + b1_ref[0])
    h2 = leaky(jnp.dot(h1.astype(jnp.bfloat16), w2_ref[0],
                       preferred_element_type=jnp.float32) + b2_ref[0])
    out_ref[0] = jnp.dot(h2.astype(jnp.bfloat16), wf_ref[0],
                         preferred_element_type=jnp.float32) + bf_ref[0]


# ------------------------------ pallas_call glue -------------------------------
def bilstm_pallas(x, wih_stack, whh_stack, b_stack):
    N = x.shape[0]
    H = HIDDEN
    args = (x, wih_stack, whh_stack, b_stack)

    def full(shape):
        nd = len(shape)
        return pl.BlockSpec(shape, lambda i, _nd=nd: (0,) * _nd)

    return pl.pallas_call(
        bilstm_kernel,
        grid=(1,),
        in_specs=[full(a.shape) for a in args],
        out_specs=full((N, 2 * H)),
        out_shape=jax.ShapeDtypeStruct((N, 2 * H), jnp.float32),
        scratch_shapes=[pltpu.VMEM((N, 8 * H), jnp.float32),   # xg (both dirs)
                        pltpu.VMEM((2, 2 * H), jnp.float32),   # block-diag hidden
                        pltpu.VMEM((2, H), jnp.float32)],      # cell state
        compiler_params=pltpu.CompilerParams(dimension_semantics=("arbitrary",)),
    )(*args)


def heads_pallas(token_out, etype, params):
    """All EVENT_TYPE_NUMS heads in one pallas_call, grid over event type."""
    N = token_out.shape[0]
    E = EVENT_TYPE_NUMS

    rep2 = lambda i: (0, 0)       # token_out reused by every head
    head3 = lambda i: (i, 0, 0)   # per-head stacked tensors

    in_specs = [
        pl.BlockSpec((N, 2 * HIDDEN), rep2),
        pl.BlockSpec((1, 1, EVENT_TYPE_DIM), head3),
        pl.BlockSpec((1, 1, HEAD_IN), head3),
        pl.BlockSpec((1, 1, HEAD_IN), head3),
        pl.BlockSpec((1, HEAD_IN, FINAL_HIDDEN), head3),
        pl.BlockSpec((1, 1, FINAL_HIDDEN), head3),
        pl.BlockSpec((1, FINAL_HIDDEN, FINAL_HIDDEN), head3),
        pl.BlockSpec((1, 1, FINAL_HIDDEN), head3),
        pl.BlockSpec((1, FINAL_HIDDEN, OUT_PAD), head3),
        pl.BlockSpec((1, 1, OUT_PAD), head3),
    ]
    out = pl.pallas_call(
        heads_kernel,
        grid=(E,),
        in_specs=in_specs,
        out_specs=pl.BlockSpec((1, N, OUT_PAD), head3),
        out_shape=jax.ShapeDtypeStruct((E, N, OUT_PAD), jnp.float32),
        compiler_params=pltpu.CompilerParams(dimension_semantics=("parallel",)),
    )(token_out, etype.reshape(E, 1, EVENT_TYPE_DIM),
      params['head_gamma'], params['head_beta'],
      params['head_w1'], params['head_b1'],
      params['head_w2'], params['head_b2'],
      params['head_wf'], params['head_bf'])
    return out


# ------------------------------ parameters -------------------------------------
def init_params(key):
    ks = iter(jax.random.split(key, 64))

    def nrm(shape, s=0.1):
        return jax.random.normal(next(ks), shape, jnp.float32) * s

    p = {}
    p['embed'] = nrm((TOKEN_VOCAB, TOKEN_DIM), 0.5)
    p['pos_embed'] = nrm((POS_TAGS, POS_DIM), 0.5)
    p['dep_embed'] = nrm((DEP_TAGS, DEP_DIM), 0.5)
    p['sen_pos_embed'] = nrm((SEN_POS_TAGS, SEN_POS_DIM), 0.5)
    p['word_pos_embed'] = nrm((WORD_POS_TAGS, WORD_POS_DIM), 0.5)
    p['event_embed'] = nrm((EVENT_ID_TAGS, EVENT_DIM), 0.5)
    p['event_type_embed'] = nrm((EVENT_TYPE_NUMS, EVENT_TYPE_DIM), 0.5)

    # BiLSTM (num_layers=1), gate order i|f|g|o; bias = b_ih + b_hh folded together.
    for d in ('f', 'b'):
        p[f'wih_{d}'] = nrm((IN_DIM, 4 * HIDDEN))
        p[f'whh_{d}'] = nrm((HIDDEN, 4 * HIDDEN))
        p[f'b_{d}'] = nrm((1, 4 * HIDDEN))
    # Pre-stacked / pre-cast kernel weights (host-side, once).
    p['wih_stack'] = jnp.concatenate([p['wih_f'], p['wih_b']], axis=1).astype(jnp.bfloat16)
    p['whh_stack'] = jnp.concatenate([p['whh_f'], p['whh_b']], axis=0).astype(jnp.bfloat16)
    p['b_stack'] = jnp.concatenate([p['b_f'], p['b_b']], axis=1)

    # Event_Type heads, stacked along a leading event-type axis.
    E = EVENT_TYPE_NUMS
    p['head_gamma'] = 1.0 + nrm((E, 1, HEAD_IN), 0.05)
    p['head_beta'] = nrm((E, 1, HEAD_IN), 0.05)
    p['head_w1'] = nrm((E, HEAD_IN, FINAL_HIDDEN)).astype(jnp.bfloat16)
    p['head_b1'] = nrm((E, 1, FINAL_HIDDEN))
    p['head_w2'] = nrm((E, FINAL_HIDDEN, FINAL_HIDDEN)).astype(jnp.bfloat16)
    p['head_b2'] = nrm((E, 1, FINAL_HIDDEN))
    # Final layer zero-padded to OUT_PAD lanes (padded columns are sliced off).
    wf = np.zeros((E, FINAL_HIDDEN, OUT_PAD), np.float32)
    bf = np.zeros((E, 1, OUT_PAD), np.float32)
    for i, r in enumerate(ROLE_NUMS):
        wf[i, :, :r] = np.asarray(nrm((FINAL_HIDDEN, r)))
        bf[i, :, :r] = np.asarray(nrm((1, r)))
    p['head_wf'] = jnp.asarray(wf).astype(jnp.bfloat16)
    p['head_bf'] = jnp.asarray(bf)
    return p


# ------------------------------ model forward -----------------------------------
def _gather_features(params, ids):
    take = lambda tbl, idx: jnp.take(tbl, idx, axis=0)
    feats = [
        take(params['embed'], ids['token_ids']),
        take(params['pos_embed'], ids['pos_ids']),
        take(params['dep_embed'], ids['dep_ids']),
        take(params['sen_pos_embed'], ids['sen_pos_ids']),
        take(params['word_pos_embed'], ids['word_pos_ids']),
        take(params['embed'], ids['parent_ids']),
        take(params['pos_embed'], ids['ppos_ids']),
        take(params['dep_embed'], ids['pdep_ids']),
        take(params['event_embed'], ids['event_ids']),
    ]
    return jnp.concatenate(feats, axis=1)  # (N, IN_DIM)


def ter_mcee_forward(params, ids):
    all_feat = _gather_features(params, ids)
    token_out = bilstm_pallas(all_feat, params['wih_stack'],
                              params['whh_stack'], params['b_stack'])  # (N, 2H)
    etype = params['event_type_embed']                                 # (5, ETD)
    out_pad = heads_pallas(token_out, etype, params)                   # (5, N, 128)
    return [out_pad[i, :, :ROLE_NUMS[i]] for i in range(EVENT_TYPE_NUMS)]


# ------------------------------ pure-JAX reference -------------------------------
def _bdot(a, b):
    # Same precision policy as the kernels: bf16 operands, f32 accumulation.
    return jnp.dot(a.astype(jnp.bfloat16), b.astype(jnp.bfloat16),
                   preferred_element_type=jnp.float32)


def _ref_lstm_dir(x, wih, whh, b, reverse):
    H = whh.shape[0]

    def step(carry, xt):
        h, c = carry
        g = _bdot(xt[None, :], wih) + _bdot(h, whh) + b
        i = jax.nn.sigmoid(g[:, 0:H])
        f = jax.nn.sigmoid(g[:, H:2 * H])
        gg = jnp.tanh(g[:, 2 * H:3 * H])
        o = jax.nn.sigmoid(g[:, 3 * H:4 * H])
        c = f * c + i * gg
        h = o * jnp.tanh(c)
        return (h, c), h[0]

    init = (jnp.zeros((1, H), jnp.float32), jnp.zeros((1, H), jnp.float32))
    _, hs = jax.lax.scan(step, init, x, reverse=reverse)
    return hs


def _ref_head(x, gamma, beta, w1, b1, w2, b2, wf, bf):
    mu = x.mean(-1, keepdims=True)
    cent = x - mu
    var = (cent * cent).mean(-1, keepdims=True)
    y = cent * jax.lax.rsqrt(var + LN_EPS) * gamma + beta
    leaky = lambda v: jnp.where(v > 0, v, LEAKY_SLOPE * v)
    h1 = leaky(_bdot(y, w1) + b1)
    h2 = leaky(_bdot(h1, w2) + b2)
    return _bdot(h2, wf) + bf


def ter_mcee_reference(params, ids):
    all_feat = _gather_features(params, ids)
    hf = _ref_lstm_dir(all_feat, params['wih_f'], params['whh_f'], params['b_f'], False)
    hb = _ref_lstm_dir(all_feat, params['wih_b'], params['whh_b'], params['b_b'], True)
    token_out = jnp.concatenate([hf, hb], axis=1)
    etype = params['event_type_embed']
    N = token_out.shape[0]
    logits = []
    for i, r in enumerate(ROLE_NUMS):
        et = jnp.broadcast_to(etype[i:i + 1, :], (N, EVENT_TYPE_DIM))
        x = jnp.concatenate([token_out, et], axis=1)
        logits.append(_ref_head(
            x,
            params['head_gamma'][i], params['head_beta'][i],
            params['head_w1'][i], params['head_b1'][i],
            params['head_w2'][i], params['head_b2'][i],
            params['head_wf'][i, :, :r], params['head_bf'][i, :, :r]))
    return logits


# ----------------------------------- main ----------------------------------------
if __name__ == "__main__":
    key = jax.random.PRNGKey(0)
    pkey, ikey = jax.random.split(key)
    params = init_params(pkey)

    iks = jax.random.split(ikey, 9)
    ids = dict(
        token_ids=jax.random.randint(iks[0], (SEQ_LEN,), 0, TOKEN_VOCAB),
        pos_ids=jax.random.randint(iks[1], (SEQ_LEN,), 0, POS_TAGS),
        dep_ids=jax.random.randint(iks[2], (SEQ_LEN,), 0, DEP_TAGS),
        sen_pos_ids=jax.random.randint(iks[3], (SEQ_LEN,), 0, SEN_POS_TAGS),
        word_pos_ids=jax.random.randint(iks[4], (SEQ_LEN,), 0, WORD_POS_TAGS),
        parent_ids=jax.random.randint(iks[5], (SEQ_LEN,), 0, TOKEN_VOCAB),
        ppos_ids=jax.random.randint(iks[6], (SEQ_LEN,), 0, POS_TAGS),
        pdep_ids=jax.random.randint(iks[7], (SEQ_LEN,), 0, DEP_TAGS),
        event_ids=jax.random.randint(iks[8], (SEQ_LEN,), 0, EVENT_ID_TAGS),
    )

    logits = ter_mcee_forward(params, ids)
    logits = [jax.block_until_ready(l) for l in logits]

    # cross-check against a pure-JAX reference of the same math / precision policy
    ref = ter_mcee_reference(params, ids)
    for i, (a, b) in enumerate(zip(logits, ref)):
        assert a.shape == (SEQ_LEN, ROLE_NUMS[i]), a.shape
        np.testing.assert_allclose(np.asarray(a), np.asarray(b), rtol=2e-3, atol=2e-3)

    print("KERNEL_OK")
</pallas_src>

<mosaic_0001>
module attributes {stable_mosaic.version = 11 : i64} {
  func.func @bilstm_kernel(%arg0: i32, %arg1: memref<8x80xf32, #tpu.memory_space<vmem>>, %arg2: memref<80x1024xbf16, #tpu.memory_space<vmem>>, %arg3: memref<256x512xbf16, #tpu.memory_space<vmem>>, %arg4: memref<1x1024xf32, #tpu.memory_space<vmem>>, %arg5: memref<8x256xf32, #tpu.memory_space<vmem>>, %arg6: memref<8x1024xf32, #tpu.memory_space<vmem>>, %arg7: memref<2x256xf32, #tpu.memory_space<vmem>>, %arg8: memref<2x128xf32, #tpu.memory_space<vmem>>) attributes {dimension_semantics = [#tpu.dimension_semantics<arbitrary>], iteration_bounds = array<i64: 1>, scalar_prefetch = 0 : i64, scratch_operands = 3 : i64, tpu.core_type = #tpu.core_type<tc>, window_params = [{pipeline_mode = #tpu.pipeline_mode<synchronous>, transform_indices = @transform_0, window_bounds = array<i64: 8, 80>}, {pipeline_mode = #tpu.pipeline_mode<synchronous>, transform_indices = @transform_1, window_bounds = array<i64: 80, 1024>}, {pipeline_mode = #tpu.pipeline_mode<synchronous>, transform_indices = @transform_2, window_bounds = array<i64: 256, 512>}, {pipeline_mode = #tpu.pipeline_mode<synchronous>, transform_indices = @transform_3, window_bounds = array<i64: 1, 1024>}, {pipeline_mode = #tpu.pipeline_mode<synchronous>, transform_indices = @transform_4, window_bounds = array<i64: 8, 256>}]} {
    %c0 = arith.constant 0 : index
    %c0_0 = arith.constant 0 : index
    %0 = vector.load %arg1[%c0, %c0_0] : memref<8x80xf32, #tpu.memory_space<vmem>>, vector<8x80xf32>
    %1 = arith.truncf %0 : vector<8x80xf32> to vector<8x80xbf16>
    %c0_1 = arith.constant 0 : index
    %c0_2 = arith.constant 0 : index
    %2 = vector.load %arg2[%c0_1, %c0_2] : memref<80x1024xbf16, #tpu.memory_space<vmem>>, vector<80x1024xbf16>
    %cst = arith.constant dense<0.000000e+00> : vector<8x1024xf32>
    %3 = tpu.matmul %1, %2, %cst {dimension_numbers = #tpu.dot_dimension_numbers<[1], [0], [0], [1], [0, 0, 1, 1], [], []>} : vector<8x80xbf16>, vector<80x1024xbf16>, vector<8x1024xf32> -> vector<8x1024xf32>
    %c0_3 = arith.constant 0 : index
    %c0_4 = arith.constant 0 : index
    %4 = vector.load %arg4[%c0_3, %c0_4] : memref<1x1024xf32, #tpu.memory_space<vmem>>, vector<1x1024xf32>
    %5 = vector.broadcast %4 : vector<1x1024xf32> to vector<8x1024xf32>
    %6 = arith.addf %3, %5 : vector<8x1024xf32>
    %c0_5 = arith.constant 0 : index
    %c0_6 = arith.constant 0 : index
    %7 = vector.load %arg6[%c0_5, %c0_6] : memref<8x1024xf32, #tpu.memory_space<vmem>>, vector<8x1024xf32>
    tpu.vector_store %arg6[%c0_5, %c0_6], %6 {strides = array<i32>} : memref<8x1024xf32, #tpu.memory_space<vmem>>, vector<8x1024xf32>,
    %c0_7 = arith.constant 0 : index
    %c0_8 = arith.constant 0 : index
    %8 = vector.load %arg3[%c0_7, %c0_8] : memref<256x512xbf16, #tpu.memory_space<vmem>>, vector<256x512xbf16>
    %cst_9 = arith.constant 0.000000e+00 : f32
    %9 = vector.broadcast %cst_9 : f32 to vector<2x256xf32>
    %c0_10 = arith.constant 0 : index
    %c0_11 = arith.constant 0 : index
    %10 = vector.load %arg7[%c0_10, %c0_11] : memref<2x256xf32, #tpu.memory_space<vmem>>, vector<2x256xf32>
    tpu.vector_store %arg7[%c0_10, %c0_11], %9 {strides = array<i32>} : memref<2x256xf32, #tpu.memory_space<vmem>>, vector<2x256xf32>,
    %cst_12 = arith.constant 0.000000e+00 : f32
    %11 = vector.broadcast %cst_12 : f32 to vector<2x128xf32>
    %c0_13 = arith.constant 0 : index
    %c0_14 = arith.constant 0 : index
    %12 = vector.load %arg8[%c0_13, %c0_14] : memref<2x128xf32, #tpu.memory_space<vmem>>, vector<2x128xf32>
    tpu.vector_store %arg8[%c0_13, %c0_14], %11 {strides = array<i32>} : memref<2x128xf32, #tpu.memory_space<vmem>>, vector<2x128xf32>,
    %c0_15 = arith.constant 0 : index
    %c0_16 = arith.constant 0 : index
    %13 = vector.load %arg7[%c0_15, %c0_16] : memref<2x256xf32, #tpu.memory_space<vmem>>, vector<2x256xf32>
    %14 = arith.truncf %13 : vector<2x256xf32> to vector<2x256xbf16>
    %cst_17 = arith.constant dense<0.000000e+00> : vector<2x512xf32>
    %15 = tpu.matmul %14, %8, %cst_17 {dimension_numbers = #tpu.dot_dimension_numbers<[1], [0], [0], [1], [0, 0, 1, 1], [], []>} : vector<2x256xbf16>, vector<256x512xbf16>, vector<2x512xf32> -> vector<2x512xf32>
    %c0_18 = arith.constant 0 : index
    %c0_19 = arith.constant 0 : index
    %16 = vector.load %arg6[%c0_18, %c0_19] : memref<8x1024xf32, #tpu.memory_space<vmem>>, vector<1x512xf32>
    %c7 = arith.constant 7 : index
    %c512 = arith.constant 512 : index
    %17 = vector.load %arg6[%c7, %c512] : memref<8x1024xf32, #tpu.memory_space<vmem>>, vector<1x512xf32>
    %18 = tpu.concatenate %16, %17 in 0 : vector<1x512xf32>, vector<1x512xf32> -> vector<2x512xf32>
    %19 = arith.addf %18, %15 : vector<2x512xf32>
    %20 = vector.extract_strided_slice %19 {offsets = [0, 0], sizes = [2, 128], strides = [1, 1]} : vector<2x512xf32> to vector<2x128xf32>
    %21 = arith.negf %20 : vector<2x128xf32>
    %22 = math.exp %21 : vector<2x128xf32>
    %cst_20 = arith.constant 1.000000e+00 : f32
    %23 = vector.broadcast %cst_20 : f32 to vector<2x128xf32>
    %24 = arith.addf %23, %22 : vector<2x128xf32>
    %25 = arith.divf %23, %24 : vector<2x128xf32>
    %26 = vector.extract_strided_slice %19 {offsets = [0, 128], sizes = [2, 128], strides = [1, 1]} : vector<2x512xf32> to vector<2x128xf32>
    %27 = arith.negf %26 : vector<2x128xf32>
    %28 = math.exp %27 : vector<2x128xf32>
    %cst_21 = arith.constant 1.000000e+00 : f32
    %29 = vector.broadcast %cst_21 : f32 to vector<2x128xf32>
    %30 = arith.addf %29, %28 : vector<2x128xf32>
    %31 = arith.divf %29, %30 : vector<2x128xf32>
    %32 = vector.extract_strided_slice %19 {offsets = [0, 256], sizes = [2, 128], strides = [1, 1]} : vector<2x512xf32> to vector<2x128xf32>
    %33 = math.tanh %32 : vector<2x128xf32>
    %34 = vector.extract_strided_slice %19 {offsets = [0, 384], sizes = [2, 128], strides = [1, 1]} : vector<2x512xf32> to vector<2x128xf32>
    %35 = arith.negf %34 : vector<2x128xf32>
    %36 = math.exp %35 : vector<2x128xf32>
    %cst_22 = arith.constant 1.000000e+00 : f32
    %37 = vector.broadcast %cst_22 : f32 to vector<2x128xf32>
    %38 = arith.addf %37, %36 : vector<2x128xf32>
    %39 = arith.divf %37, %38 : vector<2x128xf32>
    %c0_23 = arith.constant 0 : index
    %c0_24 = arith.constant 0 : index
    %40 = vector.load %arg8[%c0_23, %c0_24] : memref<2x128xf32, #tpu.memory_space<vmem>>, vector<2x128xf32>
    %41 = arith.mulf %31, %40 : vector<2x128xf32>
    %42 = arith.mulf %25, %33 : vector<2x128xf32>
    %43 = arith.addf %41, %42 : vector<2x128xf32>
    %44 = math.tanh %43 : vector<2x128xf32>
    %45 = arith.mulf %39, %44 : vector<2x128xf32>
    %c0_25 = arith.constant 0 : index
    %c0_26 = arith.constant 0 : index
    %46 = vector.load %arg8[%c0_25, %c0_26] : memref<2x128xf32, #tpu.memory_space<vmem>>, vector<2x128xf32>
    tpu.vector_store %arg8[%c0_25, %c0_26], %43 {strides = array<i32>} : memref<2x128xf32, #tpu.memory_space<vmem>>, vector<2x128xf32>,
    %47 = vector.extract_strided_slice %45 {offsets = [0, 0], sizes = [1, 128], strides = [1, 1]} : vector<2x128xf32> to vector<1x128xf32>
    %c0_27 = arith.constant 0 : index
    %c0_28 = arith.constant 0 : index
    %48 = vector.load %arg7[%c0_27, %c0_28] : memref<2x256xf32, #tpu.memory_space<vmem>>, vector<1x128xf32>
    tpu.vector_store %arg7[%c0_27, %c0_28], %47 {strides = array<i32>} : memref<2x256xf32, #tpu.memory_space<vmem>>, vector<1x128xf32>,
    %49 = vector.extract_strided_slice %45 {offsets = [1, 0], sizes = [1, 128], strides = [1, 1]} : vector<2x128xf32> to vector<1x128xf32>
    %c1 = arith.constant 1 : index
    %c128 = arith.constant 128 : index
    %50 = vector.load %arg7[%c1, %c128] : memref<2x256xf32, #tpu.memory_space<vmem>>, vector<1x128xf32>
    tpu.vector_store %arg7[%c1, %c128], %49 {strides = array<i32>} : memref<2x256xf32, #tpu.memory_space<vmem>>, vector<1x128xf32>,
    %51 = vector.extract_strided_slice %45 {offsets = [0, 0], sizes = [1, 128], strides = [1, 1]} : vector<2x128xf32> to vector<1x128xf32>
    %c0_29 = arith.constant 0 : index
    %c0_30 = arith.constant 0 : index
    %52 = vector.load %arg5[%c0_29, %c0_30] : memref<8x256xf32, #tpu.memory_space<vmem>>, vector<1x128xf32>
    tpu.vector_store %arg5[%c0_29, %c0_30], %51 {strides = array<i32>} : memref<8x256xf32, #tpu.memory_space<vmem>>, vector<1x128xf32>,
    %53 = vector.extract_strided_slice %45 {offsets = [1, 0], sizes = [1, 128], strides = [1, 1]} : vector<2x128xf32> to vector<1x128xf32>
    %c7_31 = arith.constant 7 : index
    %c128_32 = arith.constant 128 : index
    %54 = vector.load %arg5[%c7_31, %c128_32] : memref<8x256xf32, #tpu.memory_space<vmem>>, vector<1x128xf32>
    tpu.vector_store %arg5[%c7_31, %c128_32], %53 {strides = array<i32>} : memref<8x256xf32, #tpu.memory_space<vmem>>, vector<1x128xf32>,
    %c0_33 = arith.constant 0 : index
    %c0_34 = arith.constant 0 : index
    %55 = vector.load %arg7[%c0_33, %c0_34] : memref<2x256xf32, #tpu.memory_space<vmem>>, vector<2x256xf32>
    %56 = arith.truncf %55 : vector<2x256xf32> to vector<2x256xbf16>
    %cst_35 = arith.constant dense<0.000000e+00> : vector<2x512xf32>
    %57 = tpu.matmul %56, %8, %cst_35 {dimension_numbers = #tpu.dot_dimension_numbers<[1], [0], [0], [1], [0, 0, 1, 1], [], []>} : vector<2x256xbf16>, vector<256x512xbf16>, vector<2x512xf32> -> vector<2x512xf32>
    %c1_36 = arith.constant 1 : index
    %c0_37 = arith.constant 0 : index
    %58 = vector.load %arg6[%c1_36, %c0_37] : memref<8x1024xf32, #tpu.memory_space<vmem>>, vector<1x512xf32>
    %c6 = arith.constant 6 : index
    %c512_38 = arith.constant 512 : index
    %59 = vector.load %arg6[%c6, %c512_38] : memref<8x1024xf32, #tpu.memory_space<vmem>>, vector<1x512xf32>
    %60 = tpu.concatenate %58, %59 in 0 : vector<1x512xf32>, vector<1x512xf32> -> vector<2x512xf32>
    %61 = arith.addf %60, %57 : vector<2x512xf32>
    %62 = vector.extract_strided_slice %61 {offsets = [0, 0], sizes = [2, 128], strides = [1, 1]} : vector<2x512xf32> to vector<2x128xf32>
    %63 = arith.negf %62 : vector<2x128xf32>
    %64 = math.exp %63 : vector<2x128xf32>
    %cst_39 = arith.constant 1.000000e+00 : f32
    %65 = vector.broadcast %cst_39 : f32 to vector<2x128xf32>
    %66 = arith.addf %65, %64 : vector<2x128xf32>
    %67 = arith.divf %65, %66 : vector<2x128xf32>
    %68 = vector.extract_strided_slice %61 {offsets = [0, 128], sizes = [2, 128], strides = [1, 1]} : vector<2x512xf32> to vector<2x128xf32>
    %69 = arith.negf %68 : vector<2x128xf32>
    %70 = math.exp %69 : vector<2x128xf32>
    %cst_40 = arith.constant 1.000000e+00 : f32
    %71 = vector.broadcast %cst_40 : f32 to vector<2x128xf32>
    %72 = arith.addf %71, %70 : vector<2x128xf32>
    %73 = arith.divf %71, %72 : vector<2x128xf32>
    %74 = vector.extract_strided_slice %61 {offsets = [0, 256], sizes = [2, 128], strides = [1, 1]} : vector<2x512xf32> to vector<2x128xf32>
    %75 = math.tanh %74 : vector<2x128xf32>
    %76 = vector.extract_strided_slice %61 {offsets = [0, 384], sizes = [2, 128], strides = [1, 1]} : vector<2x512xf32> to vector<2x128xf32>
    %77 = arith.negf %76 : vector<2x128xf32>
    %78 = math.exp %77 : vector<2x128xf32>
    %cst_41 = arith.constant 1.000000e+00 : f32
    %79 = vector.broadcast %cst_41 : f32 to vector<2x128xf32>
    %80 = arith.addf %79, %78 : vector<2x128xf32>
    %81 = arith.divf %79, %80 : vector<2x128xf32>
    %c0_42 = arith.constant 0 : index
    %c0_43 = arith.constant 0 : index
    %82 = vector.load %arg8[%c0_42, %c0_43] : memref<2x128xf32, #tpu.memory_space<vmem>>, vector<2x128xf32>
    %83 = arith.mulf %73, %82 : vector<2x128xf32>
    %84 = arith.mulf %67, %75 : vector<2x128xf32>
    %85 = arith.addf %83, %84 : vector<2x128xf32>
    %86 = math.tanh %85 : vector<2x128xf32>
    %87 = arith.mulf %81, %86 : vector<2x128xf32>
    %c0_44 = arith.constant 0 : index
    %c0_45 = arith.constant 0 : index
    %88 = vector.load %arg8[%c0_44, %c0_45] : memref<2x128xf32, #tpu.memory_space<vmem>>, vector<2x128xf32>
    tpu.vector_store %arg8[%c0_44, %c0_45], %85 {strides = array<i32>} : memref<2x128xf32, #tpu.memory_space<vmem>>, vector<2x128xf32>,
    %89 = vector.extract_strided_slice %87 {offsets = [0, 0], sizes = [1, 128], strides = [1, 1]} : vector<2x128xf32> to vector<1x128xf32>
    %c0_46 = arith.constant 0 : index
    %c0_47 = arith.constant 0 : index
    %90 = vector.load %arg7[%c0_46, %c0_47] : memref<2x256xf32, #tpu.memory_space<vmem>>, vector<1x128xf32>
    tpu.vector_store %arg7[%c0_46, %c0_47], %89 {strides = array<i32>} : memref<2x256xf32, #tpu.memory_space<vmem>>, vector<1x128xf32>,
    %91 = vector.extract_strided_slice %87 {offsets = [1, 0], sizes = [1, 128], strides = [1, 1]} : vector<2x128xf32> to vector<1x128xf32>
    %c1_48 = arith.constant 1 : index
    %c128_49 = arith.constant 128 : index
    %92 = vector.load %arg7[%c1_48, %c128_49] : memref<2x256xf32, #tpu.memory_space<vmem>>, vector<1x128xf32>
    tpu.vector_store %arg7[%c1_48, %c128_49], %91 {strides = array<i32>} : memref<2x256xf32, #tpu.memory_space<vmem>>, vector<1x128xf32>,
    %93 = vector.extract_strided_slice %87 {offsets = [0, 0], sizes = [1, 128], strides = [1, 1]} : vector<2x128xf32> to vector<1x128xf32>
    %c1_50 = arith.constant 1 : index
    %c0_51 = arith.constant 0 : index
    %94 = vector.load %arg5[%c1_50, %c0_51] : memref<8x256xf32, #tpu.memory_space<vmem>>, vector<1x128xf32>
    tpu.vector_store %arg5[%c1_50, %c0_51], %93 {strides = array<i32>} : memref<8x256xf32, #tpu.memory_space<vmem>>, vector<1x128xf32>,
    %95 = vector.extract_strided_slice %87 {offsets = [1, 0], sizes = [1, 128], strides = [1, 1]} : vector<2x128xf32> to vector<1x128xf32>
    %c6_52 = arith.constant 6 : index
    %c128_53 = arith.constant 128 : index
    %96 = vector.load %arg5[%c6_52, %c128_53] : memref<8x256xf32, #tpu.memory_space<vmem>>, vector<1x128xf32>
    tpu.vector_store %arg5[%c6_52, %c128_53], %95 {strides = array<i32>} : memref<8x256xf32, #tpu.memory_space<vmem>>, vector<1x128xf32>,
    %c0_54 = arith.constant 0 : index
    %c0_55 = arith.constant 0 : index
    %97 = vector.load %arg7[%c0_54, %c0_55] : memref<2x256xf32, #tpu.memory_space<vmem>>, vector<2x256xf32>
    %98 = arith.truncf %97 : vector<2x256xf32> to vector<2x256xbf16>
    %cst_56 = arith.constant dense<0.000000e+00> : vector<2x512xf32>
    %99 = tpu.matmul %98, %8, %cst_56 {dimension_numbers = #tpu.dot_dimension_numbers<[1], [0], [0], [1], [0, 0, 1, 1], [], []>} : vector<2x256xbf16>, vector<256x512xbf16>, vector<2x512xf32> -> vector<2x512xf32>
    %c2 = arith.constant 2 : index
    %c0_57 = arith.constant 0 : index
    %100 = vector.load %arg6[%c2, %c0_57] : memref<8x1024xf32, #tpu.memory_space<vmem>>, vector<1x512xf32>
    %c5 = arith.constant 5 : index
    %c512_58 = arith.constant 512 : index
    %101 = vector.load %arg6[%c5, %c512_58] : memref<8x1024xf32, #tpu.memory_space<vmem>>, vector<1x512xf32>
    %102 = tpu.concatenate %100, %101 in 0 : vector<1x512xf32>, vector<1x512xf32> -> vector<2x512xf32>
    %103 = arith.addf %102, %99 : vector<2x512xf32>
    %104 = vector.extract_strided_slice %103 {offsets = [0, 0], sizes = [2, 128], strides = [1, 1]} : vector<2x512xf32> to vector<2x128xf32>
    %105 = arith.negf %104 : vector<2x128xf32>
    %106 = math.exp %105 : vector<2x128xf32>
    %cst_59 = arith.constant 1.000000e+00 : f32
    %107 = vector.broadcast %cst_59 : f32 to vector<2x128xf32>
    %108 = arith.addf %107, %106 : vector<2x128xf32>
    %109 = arith.divf %107, %108 : vector<2x128xf32>
    %110 = vector.extract_strided_slice %103 {offsets = [0, 128], sizes = [2, 128], strides = [1, 1]} : vector<2x512xf32> to vector<2x128xf32>
    %111 = arith.negf %110 : vector<2x128xf32>
    %112 = math.exp %111 : vector<2x128xf32>
    %cst_60 = arith.constant 1.000000e+00 : f32
    %113 = vector.broadcast %cst_60 : f32 to vector<2x128xf32>
    %114 = arith.addf %113, %112 : vector<2x128xf32>
    %115 = arith.divf %113, %114 : vector<2x128xf32>
    %116 = vector.extract_strided_slice %103 {offsets = [0, 256], sizes = [2, 128], strides = [1, 1]} : vector<2x512xf32> to vector<2x128xf32>
    %117 = math.tanh %116 : vector<2x128xf32>
    %118 = vector.extract_strided_slice %103 {offsets = [0, 384], sizes = [2, 128], strides = [1, 1]} : vector<2x512xf32> to vector<2x128xf32>
    %119 = arith.negf %118 : vector<2x128xf32>
    %120 = math.exp %119 : vector<2x128xf32>
    %cst_61 = arith.constant 1.000000e+00 : f32
    %121 = vector.broadcast %cst_61 : f32 to vector<2x128xf32>
    %122 = arith.addf %121, %120 : vector<2x128xf32>
    %123 = arith.divf %121, %122 : vector<2x128xf32>
    %c0_62 = arith.constant 0 : index
    %c0_63 = arith.constant 0 : index
    %124 = vector.load %arg8[%c0_62, %c0_63] : memref<2x128xf32, #tpu.memory_space<vmem>>, vector<2x128xf32>
    %125 = arith.mulf %115, %124 : vector<2x128xf32>
    %126 = arith.mulf %109, %117 : vector<2x128xf32>
    %127 = arith.addf %125, %126 : vector<2x128xf32>
    %128 = math.tanh %127 : vector<2x128xf32>
    %129 = arith.mulf %123, %128 : vector<2x128xf32>
    %c0_64 = arith.constant 0 : index
    %c0_65 = arith.constant 0 : index
    %130 = vector.load %arg8[%c0_64, %c0_65] : memref<2x128xf32, #tpu.memory_space<vmem>>, vector<2x128xf32>
    tpu.vector_store %arg8[%c0_64, %c0_65], %127 {strides = array<i32>} : memref<2x128xf32, #tpu.memory_space<vmem>>, vector<2x128xf32>,
    %131 = vector.extract_strided_slice %129 {offsets = [0, 0], sizes = [1, 128], strides = [1, 1]} : vector<2x128xf32> to vector<1x128xf32>
    %c0_66 = arith.constant 0 : index
    %c0_67 = arith.constant 0 : index
    %132 = vector.load %arg7[%c0_66, %c0_67] : memref<2x256xf32, #tpu.memory_space<vmem>>, vector<1x128xf32>
    tpu.vector_store %arg7[%c0_66, %c0_67], %131 {strides = array<i32>} : memref<2x256xf32, #tpu.memory_space<vmem>>, vector<1x128xf32>,
    %133 = vector.extract_strided_slice %129 {offsets = [1, 0], sizes = [1, 128], strides = [1, 1]} : vector<2x128xf32> to vector<1x128xf32>
    %c1_68 = arith.constant 1 : index
    %c128_69 = arith.constant 128 : index
    %134 = vector.load %arg7[%c1_68, %c128_69] : memref<2x256xf32, #tpu.memory_space<vmem>>, vector<1x128xf32>
    tpu.vector_store %arg7[%c1_68, %c128_69], %133 {strides = array<i32>} : memref<2x256xf32, #tpu.memory_space<vmem>>, vector<1x128xf32>,
    %135 = vector.extract_strided_slice %129 {offsets = [0, 0], sizes = [1, 128], strides = [1, 1]} : vector<2x128xf32> to vector<1x128xf32>
    %c2_70 = arith.constant 2 : index
    %c0_71 = arith.constant 0 : index
    %136 = vector.load %arg5[%c2_70, %c0_71] : memref<8x256xf32, #tpu.memory_space<vmem>>, vector<1x128xf32>
    tpu.vector_store %arg5[%c2_70, %c0_71], %135 {strides = array<i32>} : memref<8x256xf32, #tpu.memory_space<vmem>>, vector<1x128xf32>,
    %137 = vector.extract_strided_slice %129 {offsets = [1, 0], sizes = [1, 128], strides = [1, 1]} : vector<2x128xf32> to vector<1x128xf32>
    %c5_72 = arith.constant 5 : index
    %c128_73 = arith.constant 128 : index
    %138 = vector.load %arg5[%c5_72, %c128_73] : memref<8x256xf32, #tpu.memory_space<vmem>>, vector<1x128xf32>
    tpu.vector_store %arg5[%c5_72, %c128_73], %137 {strides = array<i32>} : memref<8x256xf32, #tpu.memory_space<vmem>>, vector<1x128xf32>,
    %c0_74 = arith.constant 0 : index
    %c0_75 = arith.constant 0 : index
    %139 = vector.load %arg7[%c0_74, %c0_75] : memref<2x256xf32, #tpu.memory_space<vmem>>, vector<2x256xf32>
    %140 = arith.truncf %139 : vector<2x256xf32> to vector<2x256xbf16>
    %cst_76 = arith.constant dense<0.000000e+00> : vector<2x512xf32>
    %141 = tpu.matmul %140, %8, %cst_76 {dimension_numbers = #tpu.dot_dimension_numbers<[1], [0], [0], [1], [0, 0, 1, 1], [], []>} : vector<2x256xbf16>, vector<256x512xbf16>, vector<2x512xf32> -> vector<2x512xf32>
    %c3 = arith.constant 3 : index
    %c0_77 = arith.constant 0 : index
    %142 = vector.load %arg6[%c3, %c0_77] : memref<8x1024xf32, #tpu.memory_space<vmem>>, vector<1x512xf32>
    %c4 = arith.constant 4 : index
    %c512_78 = arith.constant 512 : index
    %143 = vector.load %arg6[%c4, %c512_78] : memref<8x1024xf32, #tpu.memory_space<vmem>>, vector<1x512xf32>
    %144 = tpu.concatenate %142, %143 in 0 : vector<1x512xf32>, vector<1x512xf32> -> vector<2x512xf32>
    %145 = arith.addf %144, %141 : vector<2x512xf32>
    %146 = vector.extract_strided_slice %145 {offsets = [0, 0], sizes = [2, 128], strides = [1, 1]} : vector<2x512xf32> to vector<2x128xf32>
    %147 = arith.negf %146 : vector<2x128xf32>
    %148 = math.exp %147 : vector<2x128xf32>
    %cst_79 = arith.constant 1.000000e+00 : f32
    %149 = vector.broadcast %cst_79 : f32 to vector<2x128xf32>
    %150 = arith.addf %149, %148 : vector<2x128xf32>
    %151 = arith.divf %149, %150 : vector<2x128xf32>
    %152 = vector.extract_strided_slice %145 {offsets = [0, 128], sizes = [2, 128], strides = [1, 1]} : vector<2x512xf32> to vector<2x128xf32>
    %153 = arith.negf %152 : vector<2x128xf32>
    %154 = math.exp %153 : vector<2x128xf32>
    %cst_80 = arith.constant 1.000000e+00 : f32
    %155 = vector.broadcast %cst_80 : f32 to vector<2x128xf32>
    %156 = arith.addf %155, %154 : vector<2x128xf32>
    %157 = arith.divf %155, %156 : vector<2x128xf32>
    %158 = vector.extract_strided_slice %145 {offsets = [0, 256], sizes = [2, 128], strides = [1, 1]} : vector<2x512xf32> to vector<2x128xf32>
    %159 = math.tanh %158 : vector<2x128xf32>
    %160 = vector.extract_strided_slice %145 {offsets = [0, 384], sizes = [2, 128], strides = [1, 1]} : vector<2x512xf32> to vector<2x128xf32>
    %161 = arith.negf %160 : vector<2x128xf32>
    %162 = math.exp %161 : vector<2x128xf32>
    %cst_81 = arith.constant 1.000000e+00 : f32
    %163 = vector.broadcast %cst_81 : f32 to vector<2x128xf32>
    %164 = arith.addf %163, %162 : vector<2x128xf32>
    %165 = arith.divf %163, %164 : vector<2x128xf32>
    %c0_82 = arith.constant 0 : index
    %c0_83 = arith.constant 0 : index
    %166 = vector.load %arg8[%c0_82, %c0_83] : memref<2x128xf32, #tpu.memory_space<vmem>>, vector<2x128xf32>
    %167 = arith.mulf %157, %166 : vector<2x128xf32>
    %168 = arith.mulf %151, %159 : vector<2x128xf32>
    %169 = arith.addf %167, %168 : vector<2x128xf32>
    %170 = math.tanh %169 : vector<2x128xf32>
    %171 = arith.mulf %165, %170 : vector<2x128xf32>
    %c0_84 = arith.constant 0 : index
    %c0_85 = arith.constant 0 : index
    %172 = vector.load %arg8[%c0_84, %c0_85] : memref<2x128xf32, #tpu.memory_space<vmem>>, vector<2x128xf32>
    tpu.vector_store %arg8[%c0_84, %c0_85], %169 {strides = array<i32>} : memref<2x128xf32, #tpu.memory_space<vmem>>, vector<2x128xf32>,
    %173 = vector.extract_strided_slice %171 {offsets = [0, 0], sizes = [1, 128], strides = [1, 1]} : vector<2x128xf32> to vector<1x128xf32>
    %c0_86 = arith.constant 0 : index
    %c0_87 = arith.constant 0 : index
    %174 = vector.load %arg7[%c0_86, %c0_87] : memref<2x256xf32, #tpu.memory_space<vmem>>, vector<1x128xf32>
    tpu.vector_store %arg7[%c0_86, %c0_87], %173 {strides = array<i32>} : memref<2x256xf32, #tpu.memory_space<vmem>>, vector<1x128xf32>,
    %175 = vector.extract_strided_slice %171 {offsets = [1, 0], sizes = [1, 128], strides = [1, 1]} : vector<2x128xf32> to vector<1x128xf32>
    %c1_88 = arith.constant 1 : index
    %c128_89 = arith.constant 128 : index
    %176 = vector.load %arg7[%c1_88, %c128_89] : memref<2x256xf32, #tpu.memory_space<vmem>>, vector<1x128xf32>
    tpu.vector_store %arg7[%c1_88, %c128_89], %175 {strides = array<i32>} : memref<2x256xf32, #tpu.memory_space<vmem>>, vector<1x128xf32>,
    %177 = vector.extract_strided_slice %171 {offsets = [0, 0], sizes = [1, 128], strides = [1, 1]} : vector<2x128xf32> to vector<1x128xf32>
    %c3_90 = arith.constant 3 : index
    %c0_91 = arith.constant 0 : index
    %178 = vector.load %arg5[%c3_90, %c0_91] : memref<8x256xf32, #tpu.memory_space<vmem>>, vector<1x128xf32>
    tpu.vector_store %arg5[%c3_90, %c0_91], %177 {strides = array<i32>} : memref<8x256xf32, #tpu.memory_space<vmem>>, vector<1x128xf32>,
    %179 = vector.extract_strided_slice %171 {offsets = [1, 0], sizes = [1, 128], strides = [1, 1]} : vector<2x128xf32> to vector<1x128xf32>
    %c4_92 = arith.constant 4 : index
    %c128_93 = arith.constant 128 : index
    %180 = vector.load %arg5[%c4_92, %c128_93] : memref<8x256xf32, #tpu.memory_space<vmem>>, vector<1x128xf32>
    tpu.vector_store %arg5[%c4_92, %c128_93], %179 {strides = array<i32>} : memref<8x256xf32, #tpu.memory_space<vmem>>, vector<1x128xf32>,
    %c0_94 = arith.constant 0 : index
    %c0_95 = arith.constant 0 : index
    %181 = vector.load %arg7[%c0_94, %c0_95] : memref<2x256xf32, #tpu.memory_space<vmem>>, vector<2x256xf32>
    %182 = arith.truncf %181 : vector<2x256xf32> to vector<2x256xbf16>
    %cst_96 = arith.constant dense<0.000000e+00> : vector<2x512xf32>
    %183 = tpu.matmul %182, %8, %cst_96 {dimension_numbers = #tpu.dot_dimension_numbers<[1], [0], [0], [1], [0, 0, 1, 1], [], []>} : vector<2x256xbf16>, vector<256x512xbf16>, vector<2x512xf32> -> vector<2x512xf32>
    %c4_97 = arith.constant 4 : index
    %c0_98 = arith.constant 0 : index
    %184 = vector.load %arg6[%c4_97, %c0_98] : memref<8x1024xf32, #tpu.memory_space<vmem>>, vector<1x512xf32>
    %c3_99 = arith.constant 3 : index
    %c512_100 = arith.constant 512 : index
    %185 = vector.load %arg6[%c3_99, %c512_100] : memref<8x1024xf32, #tpu.memory_space<vmem>>, vector<1x512xf32>
    %186 = tpu.concatenate %184, %185 in 0 : vector<1x512xf32>, vector<1x512xf32> -> vector<2x512xf32>
    %187 = arith.addf %186, %183 : vector<2x512xf32>
    %188 = vector.extract_strided_slice %187 {offsets = [0, 0], sizes = [2, 128], strides = [1, 1]} : vector<2x512xf32> to vector<2x128xf32>
    %189 = arith.negf %188 : vector<2x128xf32>
    %190 = math.exp %189 : vector<2x128xf32>
    %cst_101 = arith.constant 1.000000e+00 : f32
    %191 = vector.broadcast %cst_101 : f32 to vector<2x128xf32>
    %192 = arith.addf %191, %190 : vector<2x128xf32>
    %193 = arith.divf %191, %192 : vector<2x128xf32>
    %194 = vector.extract_strided_slice %187 {offsets = [0, 128], sizes = [2, 128], strides = [1, 1]} : vector<2x512xf32> to vector<2x128xf32>
    %195 = arith.negf %194 : vector<2x128xf32>
    %196 = math.exp %195 : vector<2x128xf32>
    %cst_102 = arith.constant 1.000000e+00 : f32
    %197 = vector.broadcast %cst_102 : f32 to vector<2x128xf32>
    %198 = arith.addf %197, %196 : vector<2x128xf32>
    %199 = arith.divf %197, %198 : vector<2x128xf32>
    %200 = vector.extract_strided_slice %187 {offsets = [0, 256], sizes = [2, 128], strides = [1, 1]} : vector<2x512xf32> to vector<2x128xf32>
    %201 = math.tanh %200 : vector<2x128xf32>
    %202 = vector.extract_strided_slice %187 {offsets = [0, 384], sizes = [2, 128], strides = [1, 1]} : vector<2x512xf32> to vector<2x128xf32>
    %203 = arith.negf %202 : vector<2x128xf32>
    %204 = math.exp %203 : vector<2x128xf32>
    %cst_103 = arith.constant 1.000000e+00 : f32
    %205 = vector.broadcast %cst_103 : f32 to vector<2x128xf32>
    %206 = arith.addf %205, %204 : vector<2x128xf32>
    %207 = arith.divf %205, %206 : vector<2x128xf32>
    %c0_104 = arith.constant 0 : index
    %c0_105 = arith.constant 0 : index
    %208 = vector.load %arg8[%c0_104, %c0_105] : memref<2x128xf32, #tpu.memory_space<vmem>>, vector<2x128xf32>
    %209 = arith.mulf %199, %208 : vector<2x128xf32>
    %210 = arith.mulf %193, %201 : vector<2x128xf32>
    %211 = arith.addf %209, %210 : vector<2x128xf32>
    %212 = math.tanh %211 : vector<2x128xf32>
    %213 = arith.mulf %207, %212 : vector<2x128xf32>
    %c0_106 = arith.constant 0 : index
    %c0_107 = arith.constant 0 : index
    %214 = vector.load %arg8[%c0_106, %c0_107] : memref<2x128xf32, #tpu.memory_space<vmem>>, vector<2x128xf32>
    tpu.vector_store %arg8[%c0_106, %c0_107], %211 {strides = array<i32>} : memref<2x128xf32, #tpu.memory_space<vmem>>, vector<2x128xf32>,
    %215 = vector.extract_strided_slice %213 {offsets = [0, 0], sizes = [1, 128], strides = [1, 1]} : vector<2x128xf32> to vector<1x128xf32>
    %c0_108 = arith.constant 0 : index
    %c0_109 = arith.constant 0 : index
    %216 = vector.load %arg7[%c0_108, %c0_109] : memref<2x256xf32, #tpu.memory_space<vmem>>, vector<1x128xf32>
    tpu.vector_store %arg7[%c0_108, %c0_109], %215 {strides = array<i32>} : memref<2x256xf32, #tpu.memory_space<vmem>>, vector<1x128xf32>,
    %217 = vector.extract_strided_slice %213 {offsets = [1, 0], sizes = [1, 128], strides = [1, 1]} : vector<2x128xf32> to vector<1x128xf32>
    %c1_110 = arith.constant 1 : index
    %c128_111 = arith.constant 128 : index
    %218 = vector.load %arg7[%c1_110, %c128_111] : memref<2x256xf32, #tpu.memory_space<vmem>>, vector<1x128xf32>
    tpu.vector_store %arg7[%c1_110, %c128_111], %217 {strides = array<i32>} : memref<2x256xf32, #tpu.memory_space<vmem>>, vector<1x128xf32>,
    %219 = vector.extract_strided_slice %213 {offsets = [0, 0], sizes = [1, 128], strides = [1, 1]} : vector<2x128xf32> to vector<1x128xf32>
    %c4_112 = arith.constant 4 : index
    %c0_113 = arith.constant 0 : index
    %220 = vector.load %arg5[%c4_112, %c0_113] : memref<8x256xf32, #tpu.memory_space<vmem>>, vector<1x128xf32>
    tpu.vector_store %arg5[%c4_112, %c0_113], %219 {strides = array<i32>} : memref<8x256xf32, #tpu.memory_space<vmem>>, vector<1x128xf32>,
    %221 = vector.extract_strided_slice %213 {offsets = [1, 0], sizes = [1, 128], strides = [1, 1]} : vector<2x128xf32> to vector<1x128xf32>
    %c3_114 = arith.constant 3 : index
    %c128_115 = arith.constant 128 : index
    %222 = vector.load %arg5[%c3_114, %c128_115] : memref<8x256xf32, #tpu.memory_space<vmem>>, vector<1x128xf32>
    tpu.vector_store %arg5[%c3_114, %c128_115], %221 {strides = array<i32>} : memref<8x256xf32, #tpu.memory_space<vmem>>, vector<1x128xf32>,
    %c0_116 = arith.constant 0 : index
    %c0_117 = arith.constant 0 : index
    %223 = vector.load %arg7[%c0_116, %c0_117] : memref<2x256xf32, #tpu.memory_space<vmem>>, vector<2x256xf32>
    %224 = arith.truncf %223 : vector<2x256xf32> to vector<2x256xbf16>
    %cst_118 = arith.constant dense<0.000000e+00> : vector<2x512xf32>
    %225 = tpu.matmul %224, %8, %cst_118 {dimension_numbers = #tpu.dot_dimension_numbers<[1], [0], [0], [1], [0, 0, 1, 1], [], []>} : vector<2x256xbf16>, vector<256x512xbf16>, vector<2x512xf32> -> vector<2x512xf32>
    %c5_119 = arith.constant 5 : index
    %c0_120 = arith.constant 0 : index
    %226 = vector.load %arg6[%c5_119, %c0_120] : memref<8x1024xf32, #tpu.memory_space<vmem>>, vector<1x512xf32>
    %c2_121 = arith.constant 2 : index
    %c512_122 = arith.constant 512 : index
    %227 = vector.load %arg6[%c2_121, %c512_122] : memref<8x1024xf32, #tpu.memory_space<vmem>>, vector<1x512xf32>
    %228 = tpu.concatenate %226, %227 in 0 : vector<1x512xf32>, vector<1x512xf32> -> vector<2x512xf32>
    %229 = arith.addf %228, %225 : vector<2x512xf32>
    %230 = vector.extract_strided_slice %229 {offsets = [0, 0], sizes = [2, 128], strides = [1, 1]} : vector<2x512xf32> to vector<2x128xf32>
    %231 = arith.negf %230 : vector<2x128xf32>
    %232 = math.exp %231 : vector<2x128xf32>
    %cst_123 = arith.constant 1.000000e+00 : f32
    %233 = vector.broadcast %cst_123 : f32 to vector<2x128xf32>
    %234 = arith.addf %233, %232 : vector<2x128xf32>
    %235 = arith.divf %233, %234 : vector<2x128xf32>
    %236 = vector.extract_strided_slice %229 {offsets = [0, 128], sizes = [2, 128], strides = [1, 1]} : vector<2x512xf32> to vector<2x128xf32>
    %237 = arith.negf %236 : vector<2x128xf32>
    %238 = math.exp %237 : vector<2x128xf32>
    %cst_124 = arith.constant 1.000000e+00 : f32
    %239 = vector.broadcast %cst_124 : f32 to vector<2x128xf32>
    %240 = arith.addf %239, %238 : vector<2x128xf32>
    %241 = arith.divf %239, %240 : vector<2x128xf32>
    %242 = vector.extract_strided_slice %229 {offsets = [0, 256], sizes = [2, 128], strides = [1, 1]} : vector<2x512xf32> to vector<2x128xf32>
    %243 = math.tanh %242 : vector<2x128xf32>
    %244 = vector.extract_strided_slice %229 {offsets = [0, 384], sizes = [2, 128], strides = [1, 1]} : vector<2x512xf32> to vector<2x128xf32>
    %245 = arith.negf %244 : vector<2x128xf32>
    %246 = math.exp %245 : vector<2x128xf32>
    %cst_125 = arith.constant 1.000000e+00 : f32
    %247 = vector.broadcast %cst_125 : f32 to vector<2x128xf32>
    %248 = arith.addf %247, %246 : vector<2x128xf32>
    %249 = arith.divf %247, %248 : vector<2x128xf32>
    %c0_126 = arith.constant 0 : index
    %c0_127 = arith.constant 0 : index
    %250 = vector.load %arg8[%c0_126, %c0_127] : memref<2x128xf32, #tpu.memory_space<vmem>>, vector<2x128xf32>
    %251 = arith.mulf %241, %250 : vector<2x128xf32>
    %252 = arith.mulf %235, %243 : vector<2x128xf32>
    %253 = arith.addf %251, %252 : vector<2x128xf32>
    %254 = math.tanh %253 : vector<2x128xf32>
    %255 = arith.mulf %249, %254 : vector<2x128xf32>
    %c0_128 = arith.constant 0 : index
    %c0_129 = arith.constant 0 : index
    %256 = vector.load %arg8[%c0_128, %c0_129] : memref<2x128xf32, #tpu.memory_space<vmem>>, vector<2x128xf32>
    tpu.vector_store %arg8[%c0_128, %c0_129], %253 {strides = array<i32>} : memref<2x128xf32, #tpu.memory_space<vmem>>, vector<2x128xf32>,
    %257 = vector.extract_strided_slice %255 {offsets = [0, 0], sizes = [1, 128], strides = [1, 1]} : vector<2x128xf32> to vector<1x128xf32>
    %c0_130 = arith.constant 0 : index
    %c0_131 = arith.constant 0 : index
    %258 = vector.load %arg7[%c0_130, %c0_131] : memref<2x256xf32, #tpu.memory_space<vmem>>, vector<1x128xf32>
    tpu.vector_store %arg7[%c0_130, %c0_131], %257 {strides = array<i32>} : memref<2x256xf32, #tpu.memory_space<vmem>>, vector<1x128xf32>,
    %259 = vector.extract_strided_slice %255 {offsets = [1, 0], sizes = [1, 128], strides = [1, 1]} : vector<2x128xf32> to vector<1x128xf32>
    %c1_132 = arith.constant 1 : index
    %c128_133 = arith.constant 128 : index
    %260 = vector.load %arg7[%c1_132, %c128_133] : memref<2x256xf32, #tpu.memory_space<vmem>>, vector<1x128xf32>
    tpu.vector_store %arg7[%c1_132, %c128_133], %259 {strides = array<i32>} : memref<2x256xf32, #tpu.memory_space<vmem>>, vector<1x128xf32>,
    %261 = vector.extract_strided_slice %255 {offsets = [0, 0], sizes = [1, 128], strides = [1, 1]} : vector<2x128xf32> to vector<1x128xf32>
    %c5_134 = arith.constant 5 : index
    %c0_135 = arith.constant 0 : index
    %262 = vector.load %arg5[%c5_134, %c0_135] : memref<8x256xf32, #tpu.memory_space<vmem>>, vector<1x128xf32>
    tpu.vector_store %arg5[%c5_134, %c0_135], %261 {strides = array<i32>} : memref<8x256xf32, #tpu.memory_space<vmem>>, vector<1x128xf32>,
    %263 = vector.extract_strided_slice %255 {offsets = [1, 0], sizes = [1, 128], strides = [1, 1]} : vector<2x128xf32> to vector<1x128xf32>
    %c2_136 = arith.constant 2 : index
    %c128_137 = arith.constant 128 : index
    %264 = vector.load %arg5[%c2_136, %c128_137] : memref<8x256xf32, #tpu.memory_space<vmem>>, vector<1x128xf32>
    tpu.vector_store %arg5[%c2_136, %c128_137], %263 {strides = array<i32>} : memref<8x256xf32, #tpu.memory_space<vmem>>, vector<1x128xf32>,
    %c0_138 = arith.constant 0 : index
    %c0_139 = arith.constant 0 : index
    %265 = vector.load %arg7[%c0_138, %c0_139] : memref<2x256xf32, #tpu.memory_space<vmem>>, vector<2x256xf32>
    %266 = arith.truncf %265 : vector<2x256xf32> to vector<2x256xbf16>
    %cst_140 = arith.constant dense<0.000000e+00> : vector<2x512xf32>
    %267 = tpu.matmul %266, %8, %cst_140 {dimension_numbers = #tpu.dot_dimension_numbers<[1], [0], [0], [1], [0, 0, 1, 1], [], []>} : vector<2x256xbf16>, vector<256x512xbf16>, vector<2x512xf32> -> vector<2x512xf32>
    %c6_141 = arith.constant 6 : index
    %c0_142 = arith.constant 0 : index
    %268 = vector.load %arg6[%c6_141, %c0_142] : memref<8x1024xf32, #tpu.memory_space<vmem>>, vector<1x512xf32>
    %c1_143 = arith.constant 1 : index
    %c512_144 = arith.constant 512 : index
    %269 = vector.load %arg6[%c1_143, %c512_144] : memref<8x1024xf32, #tpu.memory_space<vmem>>, vector<1x512xf32>
    %270 = tpu.concatenate %268, %269 in 0 : vector<1x512xf32>, vector<1x512xf32> -> vector<2x512xf32>
    %271 = arith.addf %270, %267 : vector<2x512xf32>
    %272 = vector.extract_strided_slice %271 {offsets = [0, 0], sizes = [2, 128], strides = [1, 1]} : vector<2x512xf32> to vector<2x128xf32>
    %273 = arith.negf %272 : vector<2x128xf32>
    %274 = math.exp %273 : vector<2x128xf32>
    %cst_145 = arith.constant 1.000000e+00 : f32
    %275 = vector.broadcast %cst_145 : f32 to vector<2x128xf32>
    %276 = arith.addf %275, %274 : vector<2x128xf32>
    %277 = arith.divf %275, %276 : vector<2x128xf32>
    %278 = vector.extract_strided_slice %271 {offsets = [0, 128], sizes = [2, 128], strides = [1, 1]} : vector<2x512xf32> to vector<2x128xf32>
    %279 = arith.negf %278 : vector<2x128xf32>
    %280 = math.exp %279 : vector<2x128xf32>
    %cst_146 = arith.constant 1.000000e+00 : f32
    %281 = vector.broadcast %cst_146 : f32 to vector<2x128xf32>
    %282 = arith.addf %281, %280 : vector<2x128xf32>
    %283 = arith.divf %281, %282 : vector<2x128xf32>
    %284 = vector.extract_strided_slice %271 {offsets = [0, 256], sizes = [2, 128], strides = [1, 1]} : vector<2x512xf32> to vector<2x128xf32>
    %285 = math.tanh %284 : vector<2x128xf32>
    %286 = vector.extract_strided_slice %271 {offsets = [0, 384], sizes = [2, 128], strides = [1, 1]} : vector<2x512xf32> to vector<2x128xf32>
    %287 = arith.negf %286 : vector<2x128xf32>
    %288 = math.exp %287 : vector<2x128xf32>
    %cst_147 = arith.constant 1.000000e+00 : f32
    %289 = vector.broadcast %cst_147 : f32 to vector<2x128xf32>
    %290 = arith.addf %289, %288 : vector<2x128xf32>
    %291 = arith.divf %289, %290 : vector<2x128xf32>
    %c0_148 = arith.constant 0 : index
    %c0_149 = arith.constant 0 : index
    %292 = vector.load %arg8[%c0_148, %c0_149] : memref<2x128xf32, #tpu.memory_space<vmem>>, vector<2x128xf32>
    %293 = arith.mulf %283, %292 : vector<2x128xf32>
    %294 = arith.mulf %277, %285 : vector<2x128xf32>
    %295 = arith.addf %293, %294 : vector<2x128xf32>
    %296 = math.tanh %295 : vector<2x128xf32>
    %297 = arith.mulf %291, %296 : vector<2x128xf32>
    %c0_150 = arith.constant 0 : index
    %c0_151 = arith.constant 0 : index
    %298 = vector.load %arg8[%c0_150, %c0_151] : memref<2x128xf32, #tpu.memory_space<vmem>>, vector<2x128xf32>
    tpu.vector_store %arg8[%c0_150, %c0_151], %295 {strides = array<i32>} : memref<2x128xf32, #tpu.memory_space<vmem>>, vector<2x128xf32>,
    %299 = vector.extract_strided_slice %297 {offsets = [0, 0], sizes = [1, 128], strides = [1, 1]} : vector<2x128xf32> to vector<1x128xf32>
    %c0_152 = arith.constant 0 : index
    %c0_153 = arith.constant 0 : index
    %300 = vector.load %arg7[%c0_152, %c0_153] : memref<2x256xf32, #tpu.memory_space<vmem>>, vector<1x128xf32>
    tpu.vector_store %arg7[%c0_152, %c0_153], %299 {strides = array<i32>} : memref<2x256xf32, #tpu.memory_space<vmem>>, vector<1x128xf32>,
    %301 = vector.extract_strided_slice %297 {offsets = [1, 0], sizes = [1, 128], strides = [1, 1]} : vector<2x128xf32> to vector<1x128xf32>
    %c1_154 = arith.constant 1 : index
    %c128_155 = arith.constant 128 : index
    %302 = vector.load %arg7[%c1_154, %c128_155] : memref<2x256xf32, #tpu.memory_space<vmem>>, vector<1x128xf32>
    tpu.vector_store %arg7[%c1_154, %c128_155], %301 {strides = array<i32>} : memref<2x256xf32, #tpu.memory_space<vmem>>, vector<1x128xf32>,
    %303 = vector.extract_strided_slice %297 {offsets = [0, 0], sizes = [1, 128], strides = [1, 1]} : vector<2x128xf32> to vector<1x128xf32>
    %c6_156 = arith.constant 6 : index
    %c0_157 = arith.constant 0 : index
    %304 = vector.load %arg5[%c6_156, %c0_157] : memref<8x256xf32, #tpu.memory_space<vmem>>, vector<1x128xf32>
    tpu.vector_store %arg5[%c6_156, %c0_157], %303 {strides = array<i32>} : memref<8x256xf32, #tpu.memory_space<vmem>>, vector<1x128xf32>,
    %305 = vector.extract_strided_slice %297 {offsets = [1, 0], sizes = [1, 128], strides = [1, 1]} : vector<2x128xf32> to vector<1x128xf32>
    %c1_158 = arith.constant 1 : index
    %c128_159 = arith.constant 128 : index
    %306 = vector.load %arg5[%c1_158, %c128_159] : memref<8x256xf32, #tpu.memory_space<vmem>>, vector<1x128xf32>
    tpu.vector_store %arg5[%c1_158, %c128_159], %305 {strides = array<i32>} : memref<8x256xf32, #tpu.memory_space<vmem>>, vector<1x128xf32>,
    %c0_160 = arith.constant 0 : index
    %c0_161 = arith.constant 0 : index
    %307 = vector.load %arg7[%c0_160, %c0_161] : memref<2x256xf32, #tpu.memory_space<vmem>>, vector<2x256xf32>
    %308 = arith.truncf %307 : vector<2x256xf32> to vector<2x256xbf16>
    %cst_162 = arith.constant dense<0.000000e+00> : vector<2x512xf32>
    %309 = tpu.matmul %308, %8, %cst_162 {dimension_numbers = #tpu.dot_dimension_numbers<[1], [0], [0], [1], [0, 0, 1, 1], [], []>} : vector<2x256xbf16>, vector<256x512xbf16>, vector<2x512xf32> -> vector<2x512xf32>
    %c7_163 = arith.constant 7 : index
    %c0_164 = arith.constant 0 : index
    %310 = vector.load %arg6[%c7_163, %c0_164] : memref<8x1024xf32, #tpu.memory_space<vmem>>, vector<1x512xf32>
    %c0_165 = arith.constant 0 : index
    %c512_166 = arith.constant 512 : index
    %311 = vector.load %arg6[%c0_165, %c512_166] : memref<8x1024xf32, #tpu.memory_space<vmem>>, vector<1x512xf32>
    %312 = tpu.concatenate %310, %311 in 0 : vector<1x512xf32>, vector<1x512xf32> -> vector<2x512xf32>
    %313 = arith.addf %312, %309 : vector<2x512xf32>
    %314 = vector.extract_strided_slice %313 {offsets = [0, 0], sizes = [2, 128], strides = [1, 1]} : vector<2x512xf32> to vector<2x128xf32>
    %315 = arith.negf %314 : vector<2x128xf32>
    %316 = math.exp %315 : vector<2x128xf32>
    %cst_167 = arith.constant 1.000000e+00 : f32
    %317 = vector.broadcast %cst_167 : f32 to vector<2x128xf32>
    %318 = arith.addf %317, %316 : vector<2x128xf32>
    %319 = arith.divf %317, %318 : vector<2x128xf32>
    %320 = vector.extract_strided_slice %313 {offsets = [0, 128], sizes = [2, 128], strides = [1, 1]} : vector<2x512xf32> to vector<2x128xf32>
    %321 = arith.negf %320 : vector<2x128xf32>
    %322 = math.exp %321 : vector<2x128xf32>
    %cst_168 = arith.constant 1.000000e+00 : f32
    %323 = vector.broadcast %cst_168 : f32 to vector<2x128xf32>
    %324 = arith.addf %323, %322 : vector<2x128xf32>
    %325 = arith.divf %323, %324 : vector<2x128xf32>
    %326 = vector.extract_strided_slice %313 {offsets = [0, 256], sizes = [2, 128], strides = [1, 1]} : vector<2x512xf32> to vector<2x128xf32>
    %327 = math.tanh %326 : vector<2x128xf32>
    %328 = vector.extract_strided_slice %313 {offsets = [0, 384], sizes = [2, 128], strides = [1, 1]} : vector<2x512xf32> to vector<2x128xf32>
    %329 = arith.negf %328 : vector<2x128xf32>
    %330 = math.exp %329 : vector<2x128xf32>
    %cst_169 = arith.constant 1.000000e+00 : f32
    %331 = vector.broadcast %cst_169 : f32 to vector<2x128xf32>
    %332 = arith.addf %331, %330 : vector<2x128xf32>
    %333 = arith.divf %331, %332 : vector<2x128xf32>
    %c0_170 = arith.constant 0 : index
    %c0_171 = arith.constant 0 : index
    %334 = vector.load %arg8[%c0_170, %c0_171] : memref<2x128xf32, #tpu.memory_space<vmem>>, vector<2x128xf32>
    %335 = arith.mulf %325, %334 : vector<2x128xf32>
    %336 = arith.mulf %319, %327 : vector<2x128xf32>
    %337 = arith.addf %335, %336 : vector<2x128xf32>
    %338 = math.tanh %337 : vector<2x128xf32>
    %339 = arith.mulf %333, %338 : vector<2x128xf32>
    %c0_172 = arith.constant 0 : index
    %c0_173 = arith.constant 0 : index
    %340 = vector.load %arg8[%c0_172, %c0_173] : memref<2x128xf32, #tpu.memory_space<vmem>>, vector<2x128xf32>
    tpu.vector_store %arg8[%c0_172, %c0_173], %337 {strides = array<i32>} : memref<2x128xf32, #tpu.memory_space<vmem>>, vector<2x128xf32>,
    %341 = vector.extract_strided_slice %339 {offsets = [0, 0], sizes = [1, 128], strides = [1, 1]} : vector<2x128xf32> to vector<1x128xf32>
    %c0_174 = arith.constant 0 : index
    %c0_175 = arith.constant 0 : index
    %342 = vector.load %arg7[%c0_174, %c0_175] : memref<2x256xf32, #tpu.memory_space<vmem>>, vector<1x128xf32>
    tpu.vector_store %arg7[%c0_174, %c0_175], %341 {strides = array<i32>} : memref<2x256xf32, #tpu.memory_space<vmem>>, vector<1x128xf32>,
    %343 = vector.extract_strided_slice %339 {offsets = [1, 0], sizes = [1, 128], strides = [1, 1]} : vector<2x128xf32> to vector<1x128xf32>
    %c1_176 = arith.constant 1 : index
    %c128_177 = arith.constant 128 : index
    %344 = vector.load %arg7[%c1_176, %c128_177] : memref<2x256xf32, #tpu.memory_space<vmem>>, vector<1x128xf32>
    tpu.vector_store %arg7[%c1_176, %c128_177], %343 {strides = array<i32>} : memref<2x256xf32, #tpu.memory_space<vmem>>, vector<1x128xf32>,
    %345 = vector.extract_strided_slice %339 {offsets = [0, 0], sizes = [1, 128], strides = [1, 1]} : vector<2x128xf32> to vector<1x128xf32>
    %c7_178 = arith.constant 7 : index
    %c0_179 = arith.constant 0 : index
    %346 = vector.load %arg5[%c7_178, %c0_179] : memref<8x256xf32, #tpu.memory_space<vmem>>, vector<1x128xf32>
    tpu.vector_store %arg5[%c7_178, %c0_179], %345 {strides = array<i32>} : memref<8x256xf32, #tpu.memory_space<vmem>>, vector<1x128xf32>,
    %347 = vector.extract_strided_slice %339 {offsets = [1, 0], sizes = [1, 128], strides = [1, 1]} : vector<2x128xf32> to vector<1x128xf32>
    %c0_180 = arith.constant 0 : index
    %c128_181 = arith.constant 128 : index
    %348 = vector.load %arg5[%c0_180, %c128_181] : memref<8x256xf32, #tpu.memory_space<vmem>>, vector<1x128xf32>
    tpu.vector_store %arg5[%c0_180, %c128_181], %347 {strides = array<i32>} : memref<8x256xf32, #tpu.memory_space<vmem>>, vector<1x128xf32>,
    return
  }
  func.func @transform_0(%arg0: i32) -> (i32, i32) {
    %c0_i32 = arith.constant 0 : i32
    %c0_i32_0 = arith.constant 0 : i32
    %c0_i32_1 = arith.constant 0 : i32
    return %c0_i32, %c0_i32_0 : i32, i32
  }
  func.func @transform_1(%arg0: i32) -> (i32, i32) {
    %c0_i32 = arith.constant 0 : i32
    %c0_i32_0 = arith.constant 0 : i32
    %c0_i32_1 = arith.constant 0 : i32
    return %c0_i32, %c0_i32_0 : i32, i32
  }
  func.func @transform_2(%arg0: i32) -> (i32, i32) {
    %c0_i32 = arith.constant 0 : i32
    %c0_i32_0 = arith.constant 0 : i32
    %c0_i32_1 = arith.constant 0 : i32
    return %c0_i32, %c0_i32_0 : i32, i32
  }
  func.func @transform_3(%arg0: i32) -> (i32, i32) {
    %c0_i32 = arith.constant 0 : i32
    %c0_i32_0 = arith.constant 0 : i32
    %c0_i32_1 = arith.constant 0 : i32
    return %c0_i32, %c0_i32_0 : i32, i32
  }
  func.func @transform_4(%arg0: i32) -> (i32, i32) {
    %c0_i32 = arith.constant 0 : i32
    %c0_i32_0 = arith.constant 0 : i32
    %c0_i32_1 = arith.constant 0 : i32
    return %c0_i32, %c0_i32_0 : i32, i32
  }
}

</mosaic_0001>

<bundles_post_ra>
// kernel: tpu_custom_call.1
= control target key start
LH: loop header
LB: loop body
LE: loop exit
PB: predicated region body
PF: predicated region fallthrough
CT: control target
= control target key end

     0   :  { %9 = vsyncpa [#allocation6], 0  ;;  %s4002_s0 = inlined_call_operand.hbm [shape: f32[8,80], index: 0, kind: input, shape index: {}]   ;;  %s4003_s1 = inlined_call_operand.hbm [shape: bf16[80,1024], index: 1, kind: input, shape index: {}]   ;;  %s4004_s2 = inlined_call_operand.hbm [shape: bf16[256,512], index: 2, kind: input, shape index: {}]   ;;  %s4005_s3 = inlined_call_operand.hbm [shape: f32[1,1024], index: 3, kind: input, shape index: {}]   ;;  %s4006_s4 = inlined_call_operand.hbm [shape: f32[8,256], index: 4, kind: output, shape index: {}]  }
   0x1   :  { %10 = vsyncpa [#allocation9], 0 }
   0x2   :  { %11 = vsyncpa [#allocation12], 0 }
   0x3   :  { %12 = vsyncpa [#allocation7], 0  ;;  %s3033_s15 = smov [#allocation8]  }
   0x4   :  { %s28_s16 = sshll.u32 %s3033_s15, 4  ;;  %s29_s16 = int_to_ptr.vmem [resolvable:$true] %s28_s16 }
   0x5   :  { %s2933_s17 = scalar_lea.vmem %s29_s16, 5120  ;;  %p2938_p1 = scmp.lt.s32.totalorder %s29_s16, %s29_s16 }
   0x6   :  { %p2934_p0 = scmp.ne.s32.totalorder %s29_s16, %s2933_s17  ;;  %p2939_p2 = scmp.lt.s32.totalorder %s2933_s17, %s2933_s17 }
   0x8   :  { %p2940_p3 = por %p2939_p2, %p2938_p1 }
   0xa   :  { %p2941_p4 = pnand %p2940_p3, %p2934_p0 }
   0xc   :  { %2944 = shalt.err (!%p2941_p4)
}
   0xd   :  { %s3034_s18 = smov 512   ;;  %s3035_s19 = smov 32  }
   0xe   :  { %34 = dma.hbm_to_vmem [thread:$0]  %s4003_s1, 5120, %s29_s16, [#allocation9], %s3034_s18, %s3034_s18, %s3035_s19  }
   0xf   :  { %s3036_s22 = smov [#allocation5]   ;;  %s3037_s24 = smov [#allocation10]  }
  0x10   :  { %s19_s23 = sshll.u32 %s3036_s22, 4  ;;  %s40_s25 = sshll.u32 %s3037_s24, 4  ;;  %s20_s23 = int_to_ptr.vmem [resolvable:$true] %s19_s23  ;;  %s41_s25 = int_to_ptr.vmem [resolvable:$true] %s40_s25 }
  0x11   :  { %s2953_s26 = scalar_lea.vmem %s20_s23, 128  ;;  %p2958_p6 = scmp.lt.s32.totalorder %s20_s23, %s20_s23 }
  0x12   :  { %p2954_p5 = scmp.ne.s32.totalorder %s20_s23, %s2953_s26  ;;  %p2959_p7 = scmp.lt.s32.totalorder %s2953_s26, %s2953_s26 }
  0x14   :  { %p2960_p8 = por %p2959_p7, %p2958_p6 }
  0x16   :  { %p2961_p9 = pnand %p2960_p8, %p2954_p5 }
  0x18   :  { %2964 = shalt.err (!%p2961_p9)
}
  0x19   :  { %22 = dma.hbm_to_vmem [thread:$0]  %s4002_s0, 128, %s20_s23, [#allocation6]  }
  0x1a   :  { %s2973_s29 = scalar_lea.vmem %s41_s25, 8192  ;;  %p2978_p11 = scmp.lt.s32.totalorder %s41_s25, %s41_s25 }
  0x1b   :  { %p2974_p10 = scmp.ne.s32.totalorder %s41_s25, %s2973_s29  ;;  %p2979_p12 = scmp.lt.s32.totalorder %s2973_s29, %s2973_s29 }
  0x1d   :  { %p2980_p13 = por %p2979_p12, %p2978_p11 }
  0x1f   :  { %p2981_p0 = pnand %p2980_p13, %p2974_p10 }
  0x21   :  { %2984 = shalt.err (!%p2981_p0)
}
  0x22   :  { %s3038_s1 = smov 256   ;;  %s3039_s30 = smov 16  }
  0x23   :  { %46 = dma.hbm_to_vmem [thread:$0]  %s4004_s2, 8192, %s41_s25, [#allocation9], %s3038_s1, %s3038_s1, %s3039_s30  }
  0x24   :  { %s3040_s7 = smov [#allocation11]  }
  0x25   :  { %s53_s8 = sshll.u32 %s3040_s7, 4  ;;  %s54_s8 = int_to_ptr.vmem [resolvable:$true] %s53_s8 }
  0x26   :  { %s2993_s9 = scalar_lea.vmem %s54_s8, 128  ;;  %p2998_p2 = scmp.lt.s32.totalorder %s54_s8, %s54_s8 }
  0x27   :  { %p2994_p1 = scmp.ne.s32.totalorder %s54_s8, %s2993_s9  ;;  %p2999_p3 = scmp.lt.s32.totalorder %s2993_s9, %s2993_s9 }
  0x29   :  { %p3000_p4 = por %p2999_p3, %p2998_p2 }
  0x2b   :  { %p3001_p5 = pnand %p3000_p4, %p2994_p1 }
  0x2d   :  { %3004 = shalt.err (!%p3001_p5)
}
  0x2e   :  { %56 = dma.hbm_to_vmem [thread:$0]  %s4005_s3, 128, %s54_s8, [#allocation12]  }
  0x2f   :  { %3025 = dma.done.wait [#allocation6], 128  }
  0x30   :  { %3026 = vsyncadd [#allocation6], 4294967168 }
  0x31   :  { %3027 = dma.done.wait [#allocation9], 13312  }
  0x32   :  { %3028 = vsyncadd [#allocation9], 4294953984 }
  0x33   :  { %3029 = dma.done.wait [#allocation12], 128  }
  0x34   :  { %3030 = vsyncadd [#allocation12], 4294967168  ;;  %v3041_v0 = vmov 0   ;;  %v3042_v1 = vmov 0.0   ;;  %v104_v2 = vld [vmem:[#allocation8 + $0x100] sm:$0xff]  ;;  %v105_v4 = vld [vmem:[#allocation8 + $0x108] sm:$0xff] }
  0x35   :  { %390 = vmatprep.mubr.bf16.mxu0 %v3041_v0  ;;  %431 = vmatprep.mubr.bf16.mxu1 %v3041_v0  ;;  %594 = vst [vmem:[#allocation3] sm:$0xf] %v3042_v1  ;;  %595 = vst [vmem:[#allocation4] sm:$0x3] %v3042_v1  ;;  %v108_v3 = vld [vmem:[#allocation8 + $0x120] sm:$0xff]  ;;  %v109_v6 = vld [vmem:[#allocation8 + $0x128] sm:$0xff] }
  0x36   :  { %v2510_v5 = vcombine.high %v104_v2, %v108_v3  ;;  %v2509_v7 = vcombine.low %v104_v2, %v108_v3  ;;  %v96_v8 = vld [vmem:[#allocation8 + $0xc0] sm:$0xff]  ;;  %v2512_v10 = vcombine.high %v105_v4, %v109_v6  ;;  %v2511_v11 = vcombine.low %v105_v4, %v109_v6  ;;  %v97_v13 = vld [vmem:[#allocation8 + $0xc8] sm:$0xff]  ;;  %v106_v39 = vld [vmem:[#allocation8 + $0x110] sm:$0xff]  ;;  %s3044_s2 = smov [#allocation13]  }
  0x37   :  { %v100_v9 = vld [vmem:[#allocation8 + $0xe0] sm:$0xff]  ;;  %v101_v14 = vld [vmem:[#allocation8 + $0xe8] sm:$0xff]  ;;  %v110_v41 = vld [vmem:[#allocation8 + $0x130] sm:$0xff]  ;;  %vm354_vm0 = vcmask 654336   ;;  %vm1057_vm1 = vcmask 1040384   ;;  %s2466_s3 = sshll.u32 %s3044_s2, 4  ;;  %s2467_s3 = int_to_ptr.vmem [resolvable:$true] %s2466_s3 }
  0x38   :  { %v2502_v12 = vcombine.high %v96_v8, %v100_v9  ;;  %v88_v15 = vld [vmem:[#allocation8 + $0x80] sm:$0xff]  ;;  %364 = vmatprep.subr.bf16.mxu0 %v2510_v5  ;;  %v2504_v16 = vcombine.high %v97_v13, %v101_v14  ;;  %v89_v18 = vld [vmem:[#allocation8 + $0x88] sm:$0xff]  ;;  %405 = vmatprep.subr.bf16.mxu1 %v2512_v10  ;;  %v2501_v20 = vcombine.low %v96_v8, %v100_v9  ;;  %v107_v42 = vld [vmem:[#allocation8 + $0x118] sm:$0xff]  ;;  %s3005_s11 = scalar_lea.vmem %s2467_s3, 256  ;;  %p3010_p7 = scmp.lt.s32.totalorder %s2467_s3, %s2467_s3 }
  0x39   :  { %v92_v17 = vld [vmem:[#allocation8 + $0xa0] sm:$0xff]  ;;  %v93_v19 = vld [vmem:[#allocation8 + $0xa8] sm:$0xff]  ;;  %365 = vmatpush1.bf16.msra.mxu0 %v2509_v7  ;;  %406 = vmatpush1.bf16.msra.mxu1 %v2511_v11  ;;  %v2503_v21 = vcombine.low %v97_v13, %v101_v14  ;;  %v111_v43 = vld [vmem:[#allocation8 + $0x138] sm:$0xff]  ;;  %v2514_v47 = vcombine.high %v106_v39, %v110_v41  ;;  %v2513_v54 = vcombine.low %v106_v39, %v110_v41  ;;  %p3006_p6 = scmp.ne.s32.totalorder %s2467_s3, %s3005_s11  ;;  %p3011_p8 = scmp.lt.s32.totalorder %s3005_s11, %s3005_s11 }
  0x3a   :  { %366 = vmatprep.subr.bf16.mxu0 %v2502_v12  ;;  %v2494_v22 = vcombine.high %v88_v15, %v92_v17  ;;  %407 = vmatprep.subr.bf16.mxu1 %v2504_v16  ;;  %v2496_v23 = vcombine.high %v89_v18, %v93_v19  ;;  %v80_v24 = vld [vmem:[#allocation8 + $0x40] sm:$0xff]  ;;  %v81_v26 = vld [vmem:[#allocation8 + $0x48] sm:$0xff]  ;;  %v2493_v28 = vcombine.low %v88_v15, %v92_v17  ;;  %v70_v45 = vld [vmem:[#allocation5] sm:$0xff] }
  0x3b   :  { %v84_v25 = vld [vmem:[#allocation8 + $0x60] sm:$0xff]  ;;  %v85_v27 = vld [vmem:[#allocation8 + $0x68] sm:$0xff]  ;;  %v2495_v29 = vcombine.low %v89_v18, %v93_v19  ;;  %v2516_v48 = vcombine.high %v107_v42, %v111_v43  ;;  %v98_v49 = vld [vmem:[#allocation8 + $0xd0] sm:$0xff]  ;;  %v3084_v52 = vpack.c.bf16 %v70_v45, %v70_v45  ;;  %v2515_v55 = vcombine.low %v107_v42, %v111_v43  ;;  %p3012_p9 = por %p3011_p8, %p3010_p7 }
  0x3c   :  { %v2486_v30 = vcombine.high %v80_v24, %v84_v25  ;;  %v2488_v31 = vcombine.high %v81_v26, %v85_v27  ;;  %v72_v32 = vld [vmem:[#allocation8] sm:$0xff]  ;;  %v73_v34 = vld [vmem:[#allocation8 + $0x8] sm:$0xff]  ;;  %v2485_v36 = vcombine.low %v80_v24, %v84_v25  ;;  %v2487_v37 = vcombine.low %v81_v26, %v85_v27  ;;  %v102_v50 = vld [vmem:[#allocation8 + $0xf0] sm:$0xff] }
  0x3d   :  { %367 = vmatpush1.bf16.msra.mxu0 %v2501_v20  ;;  %408 = vmatpush1.bf16.msra.mxu1 %v2503_v21  ;;  %v76_v33 = vld [vmem:[#allocation8 + $0x20] sm:$0xff]  ;;  %v77_v35 = vld [vmem:[#allocation8 + $0x28] sm:$0xff]  ;;  %v99_v51 = vld [vmem:[#allocation8 + $0xd8] sm:$0xff]  ;;  %v2506_v56 = vcombine.high %v98_v49, %v102_v50  ;;  %v2505_v62 = vcombine.low %v98_v49, %v102_v50  ;;  %p3013_p10 = pnand %p3012_p9, %p3006_p6 }
  0x3e   :  { %368 = vmatprep.subr.bf16.mxu0 %v2494_v22  ;;  %409 = vmatprep.subr.bf16.mxu1 %v2496_v23  ;;  %v2478_v38 = vcombine.high %v72_v32, %v76_v33  ;;  %v2480_v40 = vcombine.high %v73_v34, %v77_v35  ;;  %v2477_v44 = vcombine.low %v72_v32, %v76_v33  ;;  %v103_v53 = vld [vmem:[#allocation8 + $0xf8] sm:$0xff]  ;;  %v90_v57 = vld [vmem:[#allocation8 + $0x90] sm:$0xff] }
  0x3f   :  { %v2479_v46 = vcombine.low %v73_v34, %v77_v35  ;;  %v2508_v58 = vcombine.high %v99_v51, %v103_v53  ;;  %v94_v59 = vld [vmem:[#allocation8 + $0xb0] sm:$0xff]  ;;  %v91_v60 = vld [vmem:[#allocation8 + $0x98] sm:$0xff]  ;;  %v2507_v63 = vcombine.low %v99_v51, %v103_v53 }
  0x40   :  { %v95_v61 = vld [vmem:[#allocation8 + $0xb8] sm:$0xff]  ;;  %v2498_v1 = vcombine.high %v90_v57, %v94_v59  ;;  %v82_v3 = vld [vmem:[#allocation8 + $0x50] sm:$0xff]  ;;  %v2497_v7 = vcombine.low %v90_v57, %v94_v59 }
  0x41   :  { %369 = vmatpush1.bf16.msra.mxu0 %v2493_v28  ;;  %410 = vmatpush1.bf16.msra.mxu1 %v2495_v29  ;;  %v2500_v2 = vcombine.high %v91_v60, %v95_v61  ;;  %v86_v4 = vld [vmem:[#allocation8 + $0x70] sm:$0xff]  ;;  %v83_v5 = vld [vmem:[#allocation8 + $0x58] sm:$0xff]  ;;  %v2499_v8 = vcombine.low %v91_v60, %v95_v61 }
  0x42   :  { %370 = vmatprep.subr.bf16.mxu0 %v2486_v30  ;;  %411 = vmatprep.subr.bf16.mxu1 %v2488_v31  ;;  %v87_v6 = vld [vmem:[#allocation8 + $0x78] sm:$0xff]  ;;  %v2490_v9 = vcombine.high %v82_v3, %v86_v4  ;;  %v74_v10 = vld [vmem:[#allocation8 + $0x10] sm:$0xff]  ;;  %v2489_v15 = vcombine.low %v82_v3, %v86_v4 }
  0x43   :  { %v2492_v11 = vcombine.high %v83_v5, %v87_v6  ;;  %v78_v12 = vld [vmem:[#allocation8 + $0x30] sm:$0xff]  ;;  %v75_v13 = vld [vmem:[#allocation8 + $0x18] sm:$0xff]  ;;  %v2491_v16 = vcombine.low %v83_v5, %v87_v6 }
  0x44   :  { %v79_v14 = vld [vmem:[#allocation8 + $0x38] sm:$0xff]  ;;  %v2482_v17 = vcombine.high %v74_v10, %v78_v12  ;;  %v2481_v18 = vcombine.low %v74_v10, %v78_v12  ;;  %v3092_v20 = vld [vmem:[#allocation10 + $0xe4] ss:$16 sps:$4 sm:$0xff]   ;;  %v3096_v22 = vld [vmem:[#allocation10 + $0xe0] ss:$16 sps:$4 sm:$0xff]  }
  0x45   :  { %371 = vmatpush1.bf16.msra.mxu0 %v2485_v36  ;;  %412 = vmatpush1.bf16.msra.mxu1 %v2487_v37  ;;  %v2483_v19 = vcombine.low %v75_v13, %v79_v14  ;;  %4112 = vst [vmem:[#allocation18_spill] sm:$0xff] %v3092_v20  ;;  %v3094_v21 = vld [vmem:[#allocation10 + $0xec] ss:$16 sps:$4 sm:$0xff]   ;;  %v3098_v23 = vld [vmem:[#allocation10 + $0xe8] ss:$16 sps:$4 sm:$0xff]  }
  0x46   :  { %372 = vmatprep.subr.bf16.mxu0 %v2478_v38  ;;  %413 = vmatprep.subr.bf16.mxu1 %v2480_v40  ;;  %4113 = vst [vmem:[#allocation19_spill] sm:$0xff] %v3094_v21  ;;  %v3101_v24 = vld [vmem:[#allocation10 + $0xc4] ss:$16 sps:$4 sm:$0xff]   ;;  %v3104_v25 = vld [vmem:[#allocation10 + $0xcc] ss:$16 sps:$4 sm:$0xff]  }
  0x47   :  { %v3111_v26 = vld [vmem:[#allocation10 + $0xc0] ss:$16 sps:$4 sm:$0xff]   ;;  %v3115_v27 = vld [vmem:[#allocation10 + $0xc8] ss:$16 sps:$4 sm:$0xff]   ;;  %v3117_v28 = vld [vmem:[#allocation10 + $0xa4] ss:$16 sps:$4 sm:$0xff]  }
  0x48   :  { %v3120_v29 = vld [vmem:[#allocation10 + $0xac] ss:$16 sps:$4 sm:$0xff]   ;;  %v3122_v30 = vld [vmem:[#allocation10 + $0xa0] ss:$16 sps:$4 sm:$0xff]   ;;  %v3125_v31 = vld [vmem:[#allocation10 + $0xa8] ss:$16 sps:$4 sm:$0xff]  }
  0x49   :  { %373 = vmatpush1.bf16.msra.mxu0 %v2477_v44  ;;  %414 = vmatpush1.bf16.msra.mxu1 %v2479_v46  ;;  %v3129_v32 = vld [vmem:[#allocation10 + $0x84] ss:$16 sps:$4 sm:$0xff]   ;;  %v3132_v33 = vld [vmem:[#allocation10 + $0x8c] ss:$16 sps:$4 sm:$0xff]   ;;  %v3135_v34 = vld [vmem:[#allocation10 + $0x80] ss:$16 sps:$4 sm:$0xff]  }
  0x4a   :  { %446 = vmatprep.subr.bf16.mxu0 %v2514_v47  ;;  %487 = vmatprep.subr.bf16.mxu1 %v2516_v48  ;;  %v3139_v35 = vld [vmem:[#allocation10 + $0x88] ss:$16 sps:$4 sm:$0xff]   ;;  %v3141_v36 = vld [vmem:[#allocation10 + $0x64] ss:$16 sps:$4 sm:$0xff]   ;;  %v3144_v37 = vld [vmem:[#allocation10 + $0x6c] ss:$16 sps:$4 sm:$0xff]  }
  0x4b   :  { %v3147_v38 = vld [vmem:[#allocation10 + $0x60] ss:$16 sps:$4 sm:$0xff]   ;;  %v3153_v40 = vld [vmem:[#allocation10 + $0x68] ss:$16 sps:$4 sm:$0xff]   ;;  %v3155_v41 = vld [vmem:[#allocation10 + $0x44] ss:$16 sps:$4 sm:$0xff]  }
  0x4c   :  { %2517 = vmatmul.mubr.msk.bf16.vlgmr.msra.gmra.mxu0 %vm354_vm0, %v3084_v52  ;;  %2518 = vmatmul.mubr.msk.bf16.vlgmr.msra.gmra.mxu1 %vm354_vm0, %v3084_v52  ;;  %v3149_v39 = vld.sshfl [vmem:[#allocation3] sm:$0x33 pattern:$0x76325410]  ;;  %v3160_v43 = vld [vmem:[#allocation10 + $0x4c] ss:$16 sps:$4 sm:$0xff]  }
  0x4d   :  { %447 = vmatpush1.bf16.msra.mxu0 %v2513_v54  ;;  %488 = vmatpush1.bf16.msra.mxu1 %v2515_v55  ;;  %v605_v42 = vcombine.high %v3149_v39, %v3149_v39  ;;  %v3163_v45 = vld [vmem:[#allocation10 + $0x40] ss:$16 sps:$4 sm:$0xff]   ;;  %v3167_v46 = vld [vmem:[#allocation10 + $0x48] ss:$16 sps:$4 sm:$0xff]   ;;  %v3169_v47 = vld [vmem:[#allocation10 + $0x24] ss:$16 sps:$4 sm:$0xff]  }
  0x4e   :  { %448 = vmatprep.subr.bf16.mxu0 %v2506_v56  ;;  %489 = vmatprep.subr.bf16.mxu1 %v2508_v58  ;;  %v3172_v48 = vld [vmem:[#allocation10 + $0x2c] ss:$16 sps:$4 sm:$0xff]   ;;  %v3175_v49 = vld [vmem:[#allocation10 + $0x20] ss:$16 sps:$4 sm:$0xff]   ;;  %v3179_v50 = vld [vmem:[#allocation10 + $0x28] ss:$16 sps:$4 sm:$0xff]  }
  0x4f   :  { %472 = vmatprep.mubr.bf16.mxu0 %v3041_v0  ;;  %513 = vmatprep.mubr.bf16.mxu1 %v3041_v0  ;;  %v2484_v0 = vcombine.high %v75_v13, %v79_v14  ;;  %v609_v44 = vpack.c.bf16 %v605_v42, %v605_v42  ;;  %v3181_v51 = vld [vmem:[#allocation10 + $0x4] ss:$16 sps:$4 sm:$0xff]   ;;  %v3187_v53 = vld [vmem:[#allocation10] ss:$16 sps:$4 sm:$0xff]   ;;  %v3191_v54 = vld [vmem:[#allocation10 + $0x8] ss:$16 sps:$4 sm:$0xff]  }
  0x50   :  { %v3193_v55 = vld [vmem:[#allocation10 + $0x1e4] ss:$16 sps:$4 sm:$0xff]   ;;  %v3196_v56 = vld [vmem:[#allocation10 + $0x1ec] ss:$16 sps:$4 sm:$0xff]   ;;  %v3199_v57 = vld [vmem:[#allocation10 + $0x1e0] ss:$16 sps:$4 sm:$0xff]  }
  0x51   :  { %449 = vmatpush1.bf16.msra.mxu0 %v2505_v62  ;;  %490 = vmatpush1.bf16.msra.mxu1 %v2507_v63  ;;  %v3203_v58 = vld [vmem:[#allocation10 + $0x1e8] ss:$16 sps:$4 sm:$0xff]   ;;  %v3205_v59 = vld [vmem:[#allocation10 + $0x1c4] ss:$16 sps:$4 sm:$0xff]   ;;  %v3208_v60 = vld [vmem:[#allocation10 + $0x1cc] ss:$16 sps:$4 sm:$0xff]  }
  0x52   :  { %450 = vmatprep.subr.bf16.mxu0 %v2498_v1  ;;  %491 = vmatprep.subr.bf16.mxu1 %v2500_v2  ;;  %v3211_v61 = vld [vmem:[#allocation10 + $0x1c0] ss:$16 sps:$4 sm:$0xff]   ;;  %v3215_v62 = vld [vmem:[#allocation10 + $0x1c8] ss:$16 sps:$4 sm:$0xff]   ;;  %v3217_v63 = vld [vmem:[#allocation10 + $0x1a4] ss:$16 sps:$4 sm:$0xff]  }
  0x53   :  { %4114 = vst [vmem:[#allocation20_spill] sm:$0xff] %v3217_v63  ;;  %v3220_v1 = vld [vmem:[#allocation10 + $0x1ac] ss:$16 sps:$4 sm:$0xff]   ;;  %v3223_v2 = vld [vmem:[#allocation10 + $0x1a0] ss:$16 sps:$4 sm:$0xff]  }
  0x54   :  { %4115 = vst [vmem:[#allocation21_spill] sm:$0xff] %v3220_v1  ;;  %4116 = vst [vmem:[#allocation22_spill] sm:$0xff] %v3223_v2  ;;  %v3227_v3 = vld [vmem:[#allocation10 + $0x1a8] ss:$16 sps:$4 sm:$0xff]   ;;  %v3229_v4 = vld [vmem:[#allocation10 + $0x184] ss:$16 sps:$4 sm:$0xff]  }
  0x55   :  { %451 = vmatpush1.bf16.msra.mxu0 %v2497_v7  ;;  %492 = vmatpush1.bf16.msra.mxu1 %v2499_v8  ;;  %4117 = vst [vmem:[#allocation23_spill] sm:$0xff] %v3227_v3  ;;  %4118 = vst [vmem:[#allocation24_spill] sm:$0xff] %v3229_v4  ;;  %v3232_v5 = vld [vmem:[#allocation10 + $0x18c] ss:$16 sps:$4 sm:$0xff]   ;;  %v3235_v6 = vld [vmem:[#allocation10 + $0x180] ss:$16 sps:$4 sm:$0xff]  }
  0x56   :  { %452 = vmatprep.subr.bf16.mxu0 %v2490_v9  ;;  %493 = vmatprep.subr.bf16.mxu1 %v2492_v11  ;;  %4119 = vst [vmem:[#allocation25_spill] sm:$0xff] %v3232_v5  ;;  %4120 = vst [vmem:[#allocation26_spill] sm:$0xff] %v3235_v6  ;;  %v3239_v7 = vld [vmem:[#allocation10 + $0x188] ss:$16 sps:$4 sm:$0xff]   ;;  %v3241_v8 = vld [vmem:[#allocation10 + $0x164] ss:$16 sps:$4 sm:$0xff]  }
  0x57   :  { %4121 = vst [vmem:[#allocation27_spill] sm:$0xff] %v3239_v7  ;;  %4122 = vst [vmem:[#allocation28_spill] sm:$0xff] %v3241_v8  ;;  %v3244_v9 = vld [vmem:[#allocation10 + $0x16c] ss:$16 sps:$4 sm:$0xff]   ;;  %v3247_v10 = vld [vmem:[#allocation10 + $0x160] ss:$16 sps:$4 sm:$0xff]  }
  0x58   :  { %4123 = vst [vmem:[#allocation29_spill] sm:$0xff] %v3244_v9  ;;  %4124 = vst [vmem:[#allocation30_spill] sm:$0xff] %v3247_v10  ;;  %v3251_v11 = vld [vmem:[#allocation10 + $0x168] ss:$16 sps:$4 sm:$0xff]   ;;  %v3253_v12 = vld [vmem:[#allocation10 + $0x144] ss:$16 sps:$4 sm:$0xff]  }
  0x59   :  { %453 = vmatpush1.bf16.msra.mxu0 %v2489_v15  ;;  %494 = vmatpush1.bf16.msra.mxu1 %v2491_v16  ;;  %4125 = vst [vmem:[#allocation31_spill] sm:$0xff] %v3251_v11  ;;  %4126 = vst [vmem:[#allocation32_spill] sm:$0xff] %v3253_v12  ;;  %v3256_v13 = vld [vmem:[#allocation10 + $0x14c] ss:$16 sps:$4 sm:$0xff]   ;;  %v3259_v14 = vld [vmem:[#allocation10 + $0x140] ss:$16 sps:$4 sm:$0xff]  }
  0x5a   :  { %454 = vmatprep.subr.bf16.mxu0 %v2482_v17  ;;  %495 = vmatprep.subr.bf16.mxu1 %v2484_v0  ;;  %4127 = vst [vmem:[#allocation33_spill] sm:$0xff] %v3256_v13  ;;  %4128 = vst [vmem:[#allocation34_spill] sm:$0xff] %v3259_v14  ;;  %v3263_v15 = vld [vmem:[#allocation10 + $0x148] ss:$16 sps:$4 sm:$0xff]   ;;  %v3265_v16 = vld [vmem:[#allocation10 + $0x124] ss:$16 sps:$4 sm:$0xff]  }
  0x5b   :  { %4129 = vst [vmem:[#allocation35_spill] sm:$0xff] %v3263_v15  ;;  %4130 = vst [vmem:[#allocation36_spill] sm:$0xff] %v3265_v16  ;;  %v3268_v17 = vld [vmem:[#allocation10 + $0x12c] ss:$16 sps:$4 sm:$0xff]   ;;  %v3271_v0 = vld [vmem:[#allocation10 + $0x120] ss:$16 sps:$4 sm:$0xff]  }
  0x5c   :  { %4131 = vst [vmem:[#allocation37_spill] sm:$0xff] %v3268_v17  ;;  %4132 = vst [vmem:[#allocation38_spill] sm:$0xff] %v3271_v0  ;;  %v3280_v42 = vld [vmem:[#allocation10 + $0x10c] ss:$16 sps:$4 sm:$0xff]  }
  0x5d   :  { %455 = vmatpush1.bf16.msra.mxu0 %v2481_v18  ;;  %496 = vmatpush1.bf16.msra.mxu1 %v2483_v19  ;;  %v3275_v18 = vld [vmem:[#allocation10 + $0x128] ss:$16 sps:$4 sm:$0xff]   ;;  %v3277_v19 = vld [vmem:[#allocation10 + $0x104] ss:$16 sps:$4 sm:$0xff]   ;;  %4135 = vst [vmem:[#allocation41_spill] sm:$0xff] %v3280_v42 }
  0x5e   :  { %930 = vmatprep.subr.bf16.mxu0 %v3092_v20  ;;  %971 = vmatprep.subr.bf16.mxu1 %v3094_v21  ;;  %4133 = vst [vmem:[#allocation39_spill] sm:$0xff] %v3275_v18  ;;  %4134 = vst [vmem:[#allocation40_spill] sm:$0xff] %v3277_v19 }
  0x60   :  { %2519 = vmatmul.mubr.msk.bf16.vlgmr.msra.gmra.mxu0 %vm354_vm0, %v3084_v52  ;;  %2520 = vmatmul.mubr.msk.bf16.vlgmr.msra.gmra.mxu1 %vm354_vm0, %v3084_v52  ;;  %v3184_v52 = vld [vmem:[#allocation10 + $0xc] ss:$16 sps:$4 sm:$0xff]  }
  0x61   :  { %931 = vmatpush1.bf16.msra.mxu0 %v3096_v22  ;;  %972 = vmatpush1.bf16.msra.mxu1 %v3098_v23 }
  0x62   :  { %932 = vmatprep.subr.bf16.mxu0 %v3101_v24  ;;  %973 = vmatprep.subr.bf16.mxu1 %v3104_v25 }
  0x63   :  { %962 = vmatprep.mubr.bf16.mxu0 %v609_v44  ;;  %1003 = vmatprep.mubr.bf16.mxu1 %v609_v44  ;;  %v3283_v44 = vld [vmem:[#allocation10 + $0x100] ss:$16 sps:$4 sm:$0xff]  }
  0x64   :  { %4136 = vst [vmem:[#allocation42_spill] sm:$0xff] %v3283_v44 }
  0x65   :  { %933 = vmatpush1.bf16.msra.mxu0 %v3111_v26  ;;  %974 = vmatpush1.bf16.msra.mxu1 %v3115_v27 }
  0x66   :  { %934 = vmatprep.subr.bf16.mxu0 %v3117_v28  ;;  %975 = vmatprep.subr.bf16.mxu1 %v3120_v29 }
  0x69   :  { %935 = vmatpush1.bf16.msra.mxu0 %v3122_v30  ;;  %976 = vmatpush1.bf16.msra.mxu1 %v3125_v31 }
  0x6a   :  { %936 = vmatprep.subr.bf16.mxu0 %v3129_v32  ;;  %977 = vmatprep.subr.bf16.mxu1 %v3132_v33 }
  0x6d   :  { %937 = vmatpush1.bf16.msra.mxu0 %v3135_v34  ;;  %978 = vmatpush1.bf16.msra.mxu1 %v3139_v35 }
  0x6e   :  { %938 = vmatprep.subr.bf16.mxu0 %v3141_v36  ;;  %979 = vmatprep.subr.bf16.mxu1 %v3144_v37 }
  0x71   :  { %939 = vmatpush1.bf16.msra.mxu0 %v3147_v38  ;;  %980 = vmatpush1.bf16.msra.mxu1 %v3153_v40 }
  0x72   :  { %940 = vmatprep.subr.bf16.mxu0 %v3155_v41  ;;  %981 = vmatprep.subr.bf16.mxu1 %v3160_v43 }
  0x75   :  { %941 = vmatpush1.bf16.msra.mxu0 %v3163_v45  ;;  %982 = vmatpush1.bf16.msra.mxu1 %v3167_v46 }
  0x76   :  { %942 = vmatprep.subr.bf16.mxu0 %v3169_v47  ;;  %983 = vmatprep.subr.bf16.mxu1 %v3172_v48 }
  0x79   :  { %943 = vmatpush1.bf16.msra.mxu0 %v3175_v49  ;;  %984 = vmatpush1.bf16.msra.mxu1 %v3179_v50 }
  0x7a   :  { %944 = vmatprep.subr.bf16.mxu0 %v3181_v51  ;;  %985 = vmatprep.subr.bf16.mxu1 %v3184_v52 }
  0x7d   :  { %945 = vmatpush1.bf16.msra.mxu0 %v3187_v53  ;;  %986 = vmatpush1.bf16.msra.mxu1 %v3191_v54 }
  0x7e   :  { %946 = vmatprep.subr.bf16.mxu0 %v3193_v55  ;;  %987 = vmatprep.subr.bf16.mxu1 %v3196_v56 }
  0x81   :  { %947 = vmatpush2.bf16.msra.mxu0 %v3199_v57  ;;  %988 = vmatpush2.bf16.msra.mxu1 %v3203_v58 }
  0x82   :  { %948 = vmatprep.subr.bf16.mxu0 %v3205_v59  ;;  %989 = vmatprep.subr.bf16.mxu1 %v3208_v60 }
  0x85   :  { %949 = vmatpush2.bf16.msra.mxu0 %v3211_v61  ;;  %990 = vmatpush2.bf16.msra.mxu1 %v3215_v62 }
  0x86   :  { %950 = vmatprep.subr.bf16.mxu0 %v3217_v63  ;;  %991 = vmatprep.subr.bf16.mxu1 %v3220_v1 }
  0x89   :  { %951 = vmatpush2.bf16.msra.mxu0 %v3223_v2  ;;  %992 = vmatpush2.bf16.msra.mxu1 %v3227_v3 }
  0x8a   :  { %952 = vmatprep.subr.bf16.mxu0 %v3229_v4  ;;  %993 = vmatprep.subr.bf16.mxu1 %v3232_v5 }
  0x8d   :  { %953 = vmatpush2.bf16.msra.mxu0 %v3235_v6  ;;  %994 = vmatpush2.bf16.msra.mxu1 %v3239_v7 }
  0x8e   :  { %954 = vmatprep.subr.bf16.mxu0 %v3241_v8  ;;  %995 = vmatprep.subr.bf16.mxu1 %v3244_v9 }
  0x91   :  { %955 = vmatpush2.bf16.msra.mxu0 %v3247_v10  ;;  %996 = vmatpush2.bf16.msra.mxu1 %v3251_v11 }
  0x92   :  { %956 = vmatprep.subr.bf16.mxu0 %v3253_v12  ;;  %997 = vmatprep.subr.bf16.mxu1 %v3256_v13 }
  0x95   :  { %957 = vmatpush2.bf16.msra.mxu0 %v3259_v14  ;;  %998 = vmatpush2.bf16.msra.mxu1 %v3263_v15  ;;  %v3287_v14 = vld [vmem:[#allocation10 + $0x108] ss:$16 sps:$4 sm:$0xff]  }
  0x96   :  { %958 = vmatprep.subr.bf16.mxu0 %v3265_v16  ;;  %999 = vmatprep.subr.bf16.mxu1 %v3268_v17  ;;  %4137 = vst [vmem:[#allocation43_spill] sm:$0xff] %v3287_v14  ;;  %v608_v16 = vpack.c.bf16 %v3149_v39, %v3149_v39  ;;  %v4138_v39 = vld [vmem:[#allocation34_spill] sm:$0xff] }
  0x99   :  { %959 = vmatpush2.bf16.msra.mxu0 %v3271_v0  ;;  %1000 = vmatpush2.bf16.msra.mxu1 %v3275_v18 }
  0x9a   :  { %960 = vmatprep.subr.bf16.mxu0 %v3277_v19  ;;  %1001 = vmatprep.subr.bf16.mxu1 %v3280_v42 }
  0x9d   :  { %961 = vmatpush2.bf16.msra.mxu0 %v3283_v44  ;;  %1002 = vmatpush2.bf16.msra.mxu1 %v3287_v14 }
  0x9e   :  { %1123 = vmatprep.subr.bf16.mxu0 %v3092_v20  ;;  %1164 = vmatprep.subr.bf16.mxu1 %v3094_v21 }
  0xa0   :  { %963 = vmatmul.mubr.bf16.vlgmr.msra.gmra.mxu0 %v608_v16  ;;  %1004 = vmatmul.mubr.bf16.vlgmr.msra.gmra.mxu1 %v608_v16  ;;  %v4139_v16 = vld [vmem:[#allocation36_spill] sm:$0xff] }
  0xa1   :  { %1124 = vmatpush1.bf16.msra.mxu0 %v3096_v22  ;;  %1165 = vmatpush1.bf16.msra.mxu1 %v3098_v23 }
  0xa2   :  { %1125 = vmatprep.subr.bf16.mxu0 %v3101_v24  ;;  %1166 = vmatprep.subr.bf16.mxu1 %v3104_v25 }
  0xa5   :  { %1126 = vmatpush1.bf16.msra.mxu0 %v3111_v26  ;;  %1167 = vmatpush1.bf16.msra.mxu1 %v3115_v27 }
  0xa6   :  { %1127 = vmatprep.subr.bf16.mxu0 %v3117_v28  ;;  %1168 = vmatprep.subr.bf16.mxu1 %v3120_v29 }
  0xa9   :  { %1128 = vmatpush1.bf16.msra.mxu0 %v3122_v30  ;;  %1169 = vmatpush1.bf16.msra.mxu1 %v3125_v31 }
  0xaa   :  { %1129 = vmatprep.subr.bf16.mxu0 %v3129_v32  ;;  %1170 = vmatprep.subr.bf16.mxu1 %v3132_v33 }
  0xad   :  { %1130 = vmatpush1.bf16.msra.mxu0 %v3135_v34  ;;  %1171 = vmatpush1.bf16.msra.mxu1 %v3139_v35 }
  0xae   :  { %1131 = vmatprep.subr.bf16.mxu0 %v3141_v36  ;;  %1172 = vmatprep.subr.bf16.mxu1 %v3144_v37 }
  0xb1   :  { %1132 = vmatpush1.bf16.msra.mxu0 %v3147_v38  ;;  %1173 = vmatpush1.bf16.msra.mxu1 %v3153_v40 }
  0xb2   :  { %1133 = vmatprep.subr.bf16.mxu0 %v3155_v41  ;;  %1174 = vmatprep.subr.bf16.mxu1 %v3160_v43 }
  0xb5   :  { %1134 = vmatpush1.bf16.msra.mxu0 %v3163_v45  ;;  %1175 = vmatpush1.bf16.msra.mxu1 %v3167_v46 }
  0xb6   :  { %1135 = vmatprep.subr.bf16.mxu0 %v3169_v47  ;;  %1176 = vmatprep.subr.bf16.mxu1 %v3172_v48 }
  0xb9   :  { %1136 = vmatpush1.bf16.msra.mxu0 %v3175_v49  ;;  %1177 = vmatpush1.bf16.msra.mxu1 %v3179_v50 }
  0xba   :  { %1137 = vmatprep.subr.bf16.mxu0 %v3181_v51  ;;  %1178 = vmatprep.subr.bf16.mxu1 %v3184_v52 }
  0xbd   :  { %1138 = vmatpush1.bf16.msra.mxu0 %v3187_v53  ;;  %1179 = vmatpush1.bf16.msra.mxu1 %v3191_v54 }
  0xbe   :  { %1139 = vmatprep.subr.bf16.mxu0 %v3193_v55  ;;  %1180 = vmatprep.subr.bf16.mxu1 %v3196_v56 }
  0xc1   :  { %1140 = vmatpush2.bf16.msra.mxu0 %v3199_v57  ;;  %1181 = vmatpush2.bf16.msra.mxu1 %v3203_v58 }
  0xc2   :  { %1141 = vmatprep.subr.bf16.mxu0 %v3205_v59  ;;  %1182 = vmatprep.subr.bf16.mxu1 %v3208_v60 }
  0xc5   :  { %1142 = vmatpush2.bf16.msra.mxu0 %v3211_v61  ;;  %1183 = vmatpush2.bf16.msra.mxu1 %v3215_v62 }
  0xc6   :  { %1143 = vmatprep.subr.bf16.mxu0 %v3217_v63  ;;  %1184 = vmatprep.subr.bf16.mxu1 %v3220_v1 }
  0xc9   :  { %1144 = vmatpush2.bf16.msra.mxu0 %v3223_v2  ;;  %1185 = vmatpush2.bf16.msra.mxu1 %v3227_v3 }
  0xca   :  { %1145 = vmatprep.subr.bf16.mxu0 %v3229_v4  ;;  %1186 = vmatprep.subr.bf16.mxu1 %v3232_v5 }
  0xcd   :  { %1146 = vmatpush2.bf16.msra.mxu0 %v3235_v6  ;;  %1187 = vmatpush2.bf16.msra.mxu1 %v3239_v7 }
  0xce   :  { %1147 = vmatprep.subr.bf16.mxu0 %v3241_v8  ;;  %1188 = vmatprep.subr.bf16.mxu1 %v3244_v9 }
  0xd1   :  { %1148 = vmatpush2.bf16.msra.mxu0 %v3247_v10  ;;  %1189 = vmatpush2.bf16.msra.mxu1 %v3251_v11 }
  0xd2   :  { %1149 = vmatprep.subr.bf16.mxu0 %v3253_v12  ;;  %1190 = vmatprep.subr.bf16.mxu1 %v3256_v13 }
  0xd5   :  { %1150 = vmatpush2.bf16.msra.mxu0 %v4138_v39  ;;  %1191 = vmatpush2.bf16.msra.mxu1 %v3263_v15  ;;  %v114_v15 = vlaneseq }
  0xd6   :  { %1151 = vmatprep.subr.bf16.mxu0 %v4139_v16  ;;  %1192 = vmatprep.subr.bf16.mxu1 %v3268_v17 }
  0xd7   :  { %v3360_v16 = vshrl.u32 %v114_v15, 7 }
  0xd9   :  { %1152 = vmatpush2.bf16.msra.mxu0 %v3271_v0  ;;  %1193 = vmatpush2.bf16.msra.mxu1 %v3275_v18  ;;  %v3363_v17 = vsub.s32 0, %v3360_v16  ;;  %v112_v0 = vld [vmem:[#allocation11] sm:$0xff]  ;;  %v3366_v18 = vsub.s32 2, %v3360_v16  ;;  %v132_v3 = vsub.s32 4, %v3360_v16  ;;  %v140_v2 = vsub.s32 6, %v3360_v16 }
  0xda   :  { %1153 = vmatprep.subr.bf16.mxu0 %v3277_v19  ;;  %1194 = vmatprep.subr.bf16.mxu1 %v3280_v42  ;;  %v3369_v42 = vsub.s32 1, %v3360_v16 }
  0xdb   :  { %4140 = vst [vmem:[#allocation44_spill] sm:$0xff] %v3363_v17 }
  0xdc   :  { %v121_v15 = vrot.slane %v112_v0, %v3369_v42 }
  0xdd   :  { %1154 = vmatpush2.bf16.msra.mxu0 %v3283_v44  ;;  %1195 = vmatpush2.bf16.msra.mxu1 %v3287_v14  ;;  %v3372_v44 = vsub.s32 3, %v3360_v16 }
  0xde   :  { %1316 = vmatprep.subr.bf16.mxu0 %v3092_v20  ;;  %1357 = vmatprep.subr.bf16.mxu1 %v3094_v21  ;;  %v117_v20 = vrot.slane %v112_v0, %v3363_v17  ;;  %v125_v21 = vrot.slane %v112_v0, %v3366_v18 }
  0xdf   :  { %v129_v19 = vrot.slane %v112_v0, %v3372_v44 }
 0x10c   :  { %v392_v14 = vpop.f32.mrf.mxu0  ;;  %v433_v13 = vpop.f32.mrf.mxu1 }
 0x10d   :  { %v393_v39 = vadd.f32 %v392_v14, %v117_v20  ;;  %v434_v12 = vadd.f32 %v433_v13, %v125_v21  ;;  %v136_v20 = vsub.s32 5, %v3360_v16  ;;  %v144_v21 = vsub.s32 7, %v3360_v16 }
 0x10e   :  { %v394_v11 = vpop.f32.mrf.mxu0  ;;  %v435_v9 = vpop.f32.mrf.mxu1  ;;  %v133_v13 = vrot.slane %v112_v0, %v132_v3  ;;  %v141_v14 = vrot.slane %v112_v0, %v140_v2 }
 0x10f   :  { %522 = vst [vmem:[#allocation2] sm:$0xff] %v393_v39  ;;  %v395_v10 = vadd.f32 %v394_v11, %v121_v15  ;;  %524 = vst [vmem:[#allocation2 + $0x10] sm:$0xff] %v434_v12  ;;  %v436_v8 = vadd.f32 %v435_v9, %v129_v19  ;;  %v137_v11 = vrot.slane %v112_v0, %v136_v20 }
 0x110   :  { %v396_v7 = vpop.f32.mrf.mxu0  ;;  %v437_v6 = vpop.f32.mrf.mxu1  ;;  %v145_v12 = vrot.slane %v112_v0, %v144_v21 }
 0x111   :  { %523 = vst [vmem:[#allocation2 + $0x8] sm:$0xff] %v395_v10  ;;  %525 = vst [vmem:[#allocation2 + $0x18] sm:$0xff] %v436_v8 }
 0x112   :  { %v397_v5 = vpop.f32.mrf.mxu0  ;;  %v438_v4 = vpop.f32.mrf.mxu1 }
 0x118   :  { %v1012_v2 = vld [vmem:[#allocation2] ss:$8 sm:$0xf] }
 0x119   :  { %v1019_v0 = vrot.slane %v1012_v2, %v3363_v17 }
 0x120   :  { %v474_v39 = vpop.f32.mrf.mxu0  ;;  %v515_v7 = vpop.f32.mrf.mxu1 }
 0x121   :  { %v475_v9 = vadd.f32 %v474_v39, %v133_v13  ;;  %v516_v10 = vadd.f32 %v515_v7, %v141_v14 }
 0x122   :  { %v476_v6 = vpop.f32.mrf.mxu0  ;;  %v517_v4 = vpop.f32.mrf.mxu1 }
 0x123   :  { %526 = vst [vmem:[#allocation2 + $0x20] sm:$0xff] %v475_v9  ;;  %v477_v5 = vadd.f32 %v476_v6, %v137_v11  ;;  %528 = vst [vmem:[#allocation2 + $0x30] sm:$0xff] %v516_v10  ;;  %v518_v8 = vadd.f32 %v517_v4, %v145_v12  ;;  %v1023_v11 = vrot.slane %v1012_v2, %v3369_v42 }
 0x124   :  { %v478_v19 = vpop.f32.mrf.mxu0  ;;  %v519_v15 = vpop.f32.mrf.mxu1 }
 0x125   :  { %527 = vst [vmem:[#allocation2 + $0x28] sm:$0xff] %v477_v5  ;;  %529 = vst [vmem:[#allocation2 + $0x38] sm:$0xff] %v518_v8 }
 0x126   :  { %v479_v1 = vpop.f32.mrf.mxu0  ;;  %v520_v63 = vpop.f32.mrf.mxu1 }
 0x12c   :  { %v1014_v3 = vld [vmem:[#allocation2 + $0x27] ss:$8 sm:$0xf] }
 0x12d   :  { %v1040_v20 = vrot.slane %v1014_v3, %v3363_v17  ;;  %v1044_v21 = vrot.slane %v1014_v3, %v3369_v42  ;;  %v1052_v19 = vrot.slane %v1014_v3, %v3372_v44 }
 0x12f   :  { %v1058_v14 = vsel %vm1057_vm1, %v1019_v0, %v1040_v20  ;;  %v1059_v1 = vsel %vm1057_vm1, %v1023_v11, %v1044_v21  ;;  %v1031_v20 = vrot.slane %v1012_v2, %v3372_v44  ;;  %v1027_v21 = vrot.slane %v1012_v2, %v3366_v18 }
 0x131   :  { %v1061_v0 = vsel %vm1057_vm1, %v1031_v20, %v1052_v19 }
 0x160   :  { %v964_v13 = vpop.f32.mrf.mxu0  ;;  %v1005_v12 = vpop.f32.mrf.mxu1 }
 0x161   :  { %v1062_v39 = vadd.f32 %v1058_v14, %v964_v13  ;;  %v1048_v14 = vrot.slane %v1014_v3, %v3366_v18 }
 0x162   :  { %v966_v9 = vpop.f32.mrf.mxu0  ;;  %v1007_v10 = vpop.f32.mrf.mxu1 }
 0x163   :  { %v2586_v63 = vmul.f32 -1.442695, %v1062_v39  ;;  %v1063_v7 = vadd.f32 %v1059_v1, %v966_v9  ;;  %v1065_v13 = vadd.f32 %v1061_v0, %v1007_v10  ;;  %v1060_v39 = vsel %vm1057_vm1, %v1027_v21, %v1048_v14 }
 0x164   :  { %v968_v6 = vpop.f32.mrf.mxu0  ;;  %v1009_v4 = vpop.f32.mrf.mxu1  ;;  %v1064_v1 = vadd.f32 %v1060_v39, %v1005_v12  ;;  %v3043_v12 = vmov 1983009808  }
 0x165   :  { %2733 = vpow2.f32 %v2586_v63  ;;  %v2587_v5 = vmul.f32 -1.442695, %v1063_v7  ;;  %v2588_v11 = vmul.f32 -1.442695, %v1065_v13  ;;  %v1095_v0 = vunpack.c.l.s4 %v3043_v12  ;;  %v4149_v12 = vld [vmem:[#allocation28_spill] sm:$0xff] }
 0x166   :  { %v969_v8 = vpop.f32.mrf.mxu0  ;;  %v1010_v15 = vpop.f32.mrf.mxu1 }
 0x167   :  { %2735 = vpow2.f32 %v2587_v5  ;;  %v1085_v8 = vld [vmem:[#allocation4] sm:$0x3]  ;;  %v1096_v13 = vunpack.c.0.s8 %v1095_v0 }
 0x168   :  { %2737 = vpow2.f32 %v2588_v11  ;;  %v4150_v0 = vld [vmem:[#allocation29_spill] sm:$0xff] }
 0x169   :  { %v3395_v21 = vsub.s32 %v1096_v13, %v3360_v16  ;;  %v4141_v16 = vld [vmem:[#allocation20_spill] sm:$0xff]  ;;  %v4151_v13 = vld [vmem:[#allocation30_spill] sm:$0xff] }
 0x172   :  { %v2734_v9 = vpop.eup %2733 }
 0x173   :  { %v1069_v63 = vadd.f32 1.0, %v2734_v9 }
 0x174   :  { %v2736_v7 = vpop.eup %2735 }
 0x175   :  { %2739 = vrcp.f32 %v1069_v63  ;;  %v1075_v6 = vadd.f32 1.0, %v2736_v7  ;;  %v2738_v5 = vpop.eup %2737 }
 0x176   :  { %2741 = vtanh.f32 %v1064_v1  ;;  %v1082_v3 = vadd.f32 1.0, %v2738_v5 }
 0x177   :  { %2743 = vrcp.f32 %v1075_v6 }
 0x178   :  { %2745 = vrcp.f32 %v1082_v3  ;;  %v4145_v3 = vld [vmem:[#allocation24_spill] sm:$0xff] }
 0x182   :  { %v2740_v4 = vpop.eup %2739 }
 0x183   :  { %v2742_v10 = vpop.eup %2741 }
 0x184   :  { %v2744_v19 = vpop.eup %2743  ;;  %v1087_v15 = vmul.f32 %v2742_v10, %v2740_v4  ;;  %v4143_v10 = vld [vmem:[#allocation22_spill] sm:$0xff] }
 0x185   :  { %v1086_v2 = vmul.f32 %v2744_v19, %v1085_v8  ;;  %v2746_v14 = vpop.eup %2745  ;;  %v4142_v8 = vld [vmem:[#allocation21_spill] sm:$0xff]  ;;  %v4144_v19 = vld [vmem:[#allocation23_spill] sm:$0xff] }
 0x187   :  { %v1088_v20 = vadd.f32 %v1087_v15, %v1086_v2  ;;  %v4146_v15 = vld [vmem:[#allocation25_spill] sm:$0xff]  ;;  %v4147_v2 = vld [vmem:[#allocation26_spill] sm:$0xff] }
 0x189   :  { %2747 = vtanh.f32 %v1088_v20  ;;  %1091 = vst [vmem:[#allocation4] sm:$0x3] %v1088_v20  ;;  %v4148_v20 = vld [vmem:[#allocation27_spill] sm:$0xff] }
 0x196   :  { %v2748_v11 = vpop.eup %2747 }
 0x197   :  { %v1090_v39 = vmul.f32 %v2748_v11, %v2746_v14  ;;  %v4152_v14 = vld [vmem:[#allocation31_spill] sm:$0xff]  ;;  %v4153_v11 = vld [vmem:[#allocation32_spill] sm:$0xff] }
 0x199   :  { %1092 = vst [vmem:[#allocation3] sm:$0x1] %v1090_v39  ;;  %v1100_v9 = vrot.slane %v1090_v39, %v3395_v21  ;;  %1105 = vst [vmem:[#allocation13] sm:$0x1] %v1090_v39  ;;  %v1106_v1 = vrot.slane %v1090_v39, 1  ;;  %v4154_v39 = vld [vmem:[#allocation33_spill] sm:$0xff] }
 0x19b   :  { %v2589_v63 = vrot.slane %v1100_v9, 9  ;;  %1108 = vst [vmem:[#allocation13 + $0xf] sm:$0x1] %v1106_v1  ;;  %v4155_v9 = vld [vmem:[#allocation34_spill] sm:$0xff]  ;;  %v4156_v1 = vld [vmem:[#allocation35_spill] sm:$0xff] }
 0x19d   :  { %1104 = vst [vmem:[#allocation3 + $0x3] sm:$0x1] %v2589_v63  ;;  %v4157_v63 = vld [vmem:[#allocation36_spill] sm:$0xff] }
 0x1a4   :  { %v2590_v7 = vld.sshfl [vmem:[#allocation3] sm:$0x33 pattern:$0x76325410] }
 0x1a5   :  { %v1118_v6 = vcombine.high %v2590_v7, %v2590_v7  ;;  %v1121_v4 = vpack.c.bf16 %v2590_v7, %v2590_v7  ;;  %v4158_v7 = vld [vmem:[#allocation37_spill] sm:$0xff] }
 0x1a7   :  { %v1122_v5 = vpack.c.bf16 %v1118_v6, %v1118_v6  ;;  %v4159_v6 = vld [vmem:[#allocation38_spill] sm:$0xff] }
 0x1a9   :  { %1155 = vmatprep.mubr.bf16.mxu0 %v1122_v5  ;;  %1196 = vmatprep.mubr.bf16.mxu1 %v1122_v5  ;;  %v4160_v5 = vld [vmem:[#allocation39_spill] sm:$0xff] }
 0x1aa   :  { %1156 = vmatmul.mubr.bf16.vlgmr.msra.gmra.mxu0 %v1121_v4  ;;  %1197 = vmatmul.mubr.bf16.vlgmr.msra.gmra.mxu1 %v1121_v4  ;;  %v4161_v4 = vld [vmem:[#allocation40_spill] sm:$0xff] }
 0x1ab   :  { %1317 = vmatpush1.bf16.msra.mxu0 %v3096_v22  ;;  %1358 = vmatpush1.bf16.msra.mxu1 %v3098_v23 }
 0x1ac   :  { %1318 = vmatprep.subr.bf16.mxu0 %v3101_v24  ;;  %1359 = vmatprep.subr.bf16.mxu1 %v3104_v25 }
 0x1af   :  { %1319 = vmatpush1.bf16.msra.mxu0 %v3111_v26  ;;  %1360 = vmatpush1.bf16.msra.mxu1 %v3115_v27 }
 0x1b0   :  { %1320 = vmatprep.subr.bf16.mxu0 %v3117_v28  ;;  %1361 = vmatprep.subr.bf16.mxu1 %v3120_v29 }
 0x1b3   :  { %1321 = vmatpush1.bf16.msra.mxu0 %v3122_v30  ;;  %1362 = vmatpush1.bf16.msra.mxu1 %v3125_v31 }
 0x1b4   :  { %1322 = vmatprep.subr.bf16.mxu0 %v3129_v32  ;;  %1363 = vmatprep.subr.bf16.mxu1 %v3132_v33 }
 0x1b7   :  { %1323 = vmatpush1.bf16.msra.mxu0 %v3135_v34  ;;  %1364 = vmatpush1.bf16.msra.mxu1 %v3139_v35 }
 0x1b8   :  { %1324 = vmatprep.subr.bf16.mxu0 %v3141_v36  ;;  %1365 = vmatprep.subr.bf16.mxu1 %v3144_v37 }
 0x1bb   :  { %1325 = vmatpush1.bf16.msra.mxu0 %v3147_v38  ;;  %1366 = vmatpush1.bf16.msra.mxu1 %v3153_v40 }
 0x1bc   :  { %1326 = vmatprep.subr.bf16.mxu0 %v3155_v41  ;;  %1367 = vmatprep.subr.bf16.mxu1 %v3160_v43 }
 0x1bf   :  { %1327 = vmatpush1.bf16.msra.mxu0 %v3163_v45  ;;  %1368 = vmatpush1.bf16.msra.mxu1 %v3167_v46 }
 0x1c0   :  { %1328 = vmatprep.subr.bf16.mxu0 %v3169_v47  ;;  %1369 = vmatprep.subr.bf16.mxu1 %v3172_v48 }
 0x1c3   :  { %1329 = vmatpush1.bf16.msra.mxu0 %v3175_v49  ;;  %1370 = vmatpush1.bf16.msra.mxu1 %v3179_v50 }
 0x1c4   :  { %1330 = vmatprep.subr.bf16.mxu0 %v3181_v51  ;;  %1371 = vmatprep.subr.bf16.mxu1 %v3184_v52 }
 0x1c7   :  { %1331 = vmatpush1.bf16.msra.mxu0 %v3187_v53  ;;  %1372 = vmatpush1.bf16.msra.mxu1 %v3191_v54 }
 0x1c8   :  { %1332 = vmatprep.subr.bf16.mxu0 %v3193_v55  ;;  %1373 = vmatprep.subr.bf16.mxu1 %v3196_v56 }
 0x1cb   :  { %1333 = vmatpush2.bf16.msra.mxu0 %v3199_v57  ;;  %1374 = vmatpush2.bf16.msra.mxu1 %v3203_v58 }
 0x1cc   :  { %1334 = vmatprep.subr.bf16.mxu0 %v3205_v59  ;;  %1375 = vmatprep.subr.bf16.mxu1 %v3208_v60 }
 0x1cf   :  { %1335 = vmatpush2.bf16.msra.mxu0 %v3211_v61  ;;  %1376 = vmatpush2.bf16.msra.mxu1 %v3215_v62 }
 0x1d0   :  { %1336 = vmatprep.subr.bf16.mxu0 %v4141_v16  ;;  %1377 = vmatprep.subr.bf16.mxu1 %v4142_v8 }
 0x1d3   :  { %1337 = vmatpush2.bf16.msra.mxu0 %v4143_v10  ;;  %1378 = vmatpush2.bf16.msra.mxu1 %v4144_v19 }
 0x1d4   :  { %1338 = vmatprep.subr.bf16.mxu0 %v4145_v3  ;;  %1379 = vmatprep.subr.bf16.mxu1 %v4146_v15 }
 0x1d7   :  { %1339 = vmatpush2.bf16.msra.mxu0 %v4147_v2  ;;  %1380 = vmatpush2.bf16.msra.mxu1 %v4148_v20 }
 0x1d8   :  { %1340 = vmatprep.subr.bf16.mxu0 %v4149_v12  ;;  %1381 = vmatprep.subr.bf16.mxu1 %v4150_v0 }
 0x1db   :  { %1341 = vmatpush2.bf16.msra.mxu0 %v4151_v13  ;;  %1382 = vmatpush2.bf16.msra.mxu1 %v4152_v14  ;;  %v4162_v13 = vld [vmem:[#allocation41_spill] sm:$0xff]  ;;  %v4163_v14 = vld [vmem:[#allocation42_spill] sm:$0xff] }
 0x1dc   :  { %1342 = vmatprep.subr.bf16.mxu0 %v4153_v11  ;;  %1383 = vmatprep.subr.bf16.mxu1 %v4154_v39  ;;  %v4164_v11 = vld [vmem:[#allocation43_spill] sm:$0xff]  ;;  %v4165_v39 = vld [vmem:[#allocation18_spill] sm:$0xff] }
 0x1df   :  { %1343 = vmatpush2.bf16.msra.mxu0 %v4155_v9  ;;  %1384 = vmatpush2.bf16.msra.mxu1 %v4156_v1  ;;  %v4166_v9 = vld [vmem:[#allocation19_spill] sm:$0xff] }
 0x1e0   :  { %1344 = vmatprep.subr.bf16.mxu0 %v4157_v63  ;;  %1385 = vmatprep.subr.bf16.mxu1 %v4158_v7  ;;  %v1208_v1 = vld [vmem:[#allocation2 + $0x26] ss:$8 sm:$0xf]  ;;  %v1206_v63 = vld [vmem:[#allocation2 + $0x1] ss:$8 sm:$0xf] }
 0x1e1   :  { %v1234_v7 = vrot.slane %v1208_v1, %v3363_v17  ;;  %v1246_v8 = vrot.slane %v1208_v1, %v3372_v44 }
 0x1e3   :  { %1345 = vmatpush2.bf16.msra.mxu0 %v4159_v6  ;;  %1386 = vmatpush2.bf16.msra.mxu1 %v4160_v5  ;;  %v1213_v6 = vrot.slane %v1206_v63, %v3363_v17  ;;  %v1238_v5 = vrot.slane %v1208_v1, %v3369_v42 }
 0x1e4   :  { %1346 = vmatprep.subr.bf16.mxu0 %v4161_v4  ;;  %1387 = vmatprep.subr.bf16.mxu1 %v4162_v13 }
 0x1e5   :  { %v1251_v4 = vsel %vm1057_vm1, %v1213_v6, %v1234_v7  ;;  %v1225_v7 = vrot.slane %v1206_v63, %v3372_v44 }
 0x1e7   :  { %1347 = vmatpush2.bf16.msra.mxu0 %v4163_v14  ;;  %1388 = vmatpush2.bf16.msra.mxu1 %v4164_v11  ;;  %v1217_v14 = vrot.slane %v1206_v63, %v3369_v42  ;;  %v1254_v6 = vsel %vm1057_vm1, %v1225_v7, %v1246_v8 }
 0x1e8   :  { %1509 = vmatprep.subr.bf16.mxu0 %v4165_v39  ;;  %1550 = vmatprep.subr.bf16.mxu1 %v4166_v9 }
 0x1e9   :  { %v1252_v39 = vsel %vm1057_vm1, %v1217_v14, %v1238_v5  ;;  %v1221_v14 = vrot.slane %v1206_v63, %v3366_v18 }
 0x26a   :  { %v1157_v0 = vpop.f32.mrf.mxu0  ;;  %v1198_v13 = vpop.f32.mrf.mxu1 }
 0x26b   :  { %v1255_v12 = vadd.f32 %v1251_v4, %v1157_v0  ;;  %v1242_v4 = vrot.slane %v1208_v1, %v3366_v18 }
 0x26c   :  { %v1159_v11 = vpop.f32.mrf.mxu0  ;;  %v1200_v20 = vpop.f32.mrf.mxu1 }
 0x26d   :  { %v2591_v9 = vmul.f32 -1.442695, %v1255_v12  ;;  %v1256_v2 = vadd.f32 %v1252_v39, %v1159_v11  ;;  %v1258_v0 = vadd.f32 %v1254_v6, %v1200_v20  ;;  %v1278_v39 = vld [vmem:[#allocation4] sm:$0x3] }
 0x26e   :  { %v1161_v15 = vpop.f32.mrf.mxu0  ;;  %v1202_v3 = vpop.f32.mrf.mxu1 }
 0x26f   :  { %2749 = vpow2.f32 %v2591_v9  ;;  %v2592_v19 = vmul.f32 -1.442695, %v1256_v2  ;;  %v2593_v12 = vmul.f32 -1.442695, %v1258_v0  ;;  %v1253_v15 = vsel %vm1057_vm1, %v1221_v14, %v1242_v4 }
 0x270   :  { %v1162_v17 = vpop.f32.mrf.mxu0  ;;  %v1203_v10 = vpop.f32.mrf.mxu1  ;;  %v1257_v11 = vadd.f32 %v1253_v15, %v1198_v13 }
 0x271   :  { %2751 = vpow2.f32 %v2592_v19 }
 0x272   :  { %2753 = vpow2.f32 %v2593_v12 }
 0x27c   :  { %v2750_v3 = vpop.eup %2749 }
 0x27d   :  { %v1262_v2 = vadd.f32 1.0, %v2750_v3 }
 0x27e   :  { %v2752_v17 = vpop.eup %2751 }
 0x27f   :  { %2755 = vrcp.f32 %v1262_v2  ;;  %v1268_v10 = vadd.f32 1.0, %v2752_v17  ;;  %v2754_v19 = vpop.eup %2753 }
 0x280   :  { %2757 = vtanh.f32 %v1257_v11  ;;  %v1275_v1 = vadd.f32 1.0, %v2754_v19 }
 0x281   :  { %2759 = vrcp.f32 %v1268_v10 }
 0x282   :  { %2761 = vrcp.f32 %v1275_v1 }
 0x28c   :  { %v2756_v5 = vpop.eup %2755 }
 0x28d   :  { %v2758_v8 = vpop.eup %2757 }
 0x28e   :  { %v2760_v20 = vpop.eup %2759  ;;  %v1280_v9 = vmul.f32 %v2758_v8, %v2756_v5 }
 0x28f   :  { %v1279_v63 = vmul.f32 %v2760_v20, %v1278_v39  ;;  %v2762_v13 = vpop.eup %2761 }
 0x291   :  { %v1281_v7 = vadd.f32 %v1280_v9, %v1279_v63 }
 0x293   :  { %2763 = vtanh.f32 %v1281_v7  ;;  %1284 = vst [vmem:[#allocation4] sm:$0x3] %v1281_v7 }
 0x2a0   :  { %v2764_v6 = vpop.eup %2763 }
 0x2a1   :  { %v1283_v0 = vmul.f32 %v2764_v6, %v2762_v13 }
 0x2a3   :  { %1285 = vst [vmem:[#allocation3] sm:$0x1] %v1283_v0  ;;  %v1293_v4 = vrot.slane %v1283_v0, %v3395_v21  ;;  %1298 = vst [vmem:[#allocation13 + $0x1] sm:$0x1] %v1283_v0  ;;  %v1299_v14 = vrot.slane %v1283_v0, 1 }
 0x2a5   :  { %v2594_v12 = vrot.slane %v1293_v4, 9  ;;  %1301 = vst [vmem:[#allocation13 + $0xe] sm:$0x1] %v1299_v14 }
 0x2a7   :  { %1297 = vst [vmem:[#allocation3 + $0x3] sm:$0x1] %v2594_v12 }
 0x2ae   :  { %v2595_v15 = vld.sshfl [vmem:[#allocation3] sm:$0x33 pattern:$0x76325410] }
 0x2af   :  { %v1311_v3 = vcombine.high %v2595_v15, %v2595_v15  ;;  %v1314_v2 = vpack.c.bf16 %v2595_v15, %v2595_v15 }
 0x2b1   :  { %v1315_v11 = vpack.c.bf16 %v1311_v3, %v1311_v3 }
 0x2b3   :  { %1348 = vmatprep.mubr.bf16.mxu0 %v1315_v11  ;;  %1389 = vmatprep.mubr.bf16.mxu1 %v1315_v11 }
 0x2b4   :  { %1349 = vmatmul.mubr.bf16.vlgmr.msra.gmra.mxu0 %v1314_v2  ;;  %1390 = vmatmul.mubr.bf16.vlgmr.msra.gmra.mxu1 %v1314_v2 }
 0x2b5   :  { %1510 = vmatpush1.bf16.msra.mxu0 %v3096_v22  ;;  %1551 = vmatpush1.bf16.msra.mxu1 %v3098_v23  ;;  %v4167_v22 = vld [vmem:[#allocation21_spill] sm:$0xff]  ;;  %v4168_v23 = vld [vmem:[#allocation22_spill] sm:$0xff] }
 0x2b6   :  { %1511 = vmatprep.subr.bf16.mxu0 %v3101_v24  ;;  %1552 = vmatprep.subr.bf16.mxu1 %v3104_v25  ;;  %v4169_v24 = vld [vmem:[#allocation23_spill] sm:$0xff]  ;;  %v4170_v25 = vld [vmem:[#allocation24_spill] sm:$0xff] }
 0x2b9   :  { %1512 = vmatpush1.bf16.msra.mxu0 %v3111_v26  ;;  %1553 = vmatpush1.bf16.msra.mxu1 %v3115_v27  ;;  %v4171_v26 = vld [vmem:[#allocation25_spill] sm:$0xff]  ;;  %v4172_v27 = vld [vmem:[#allocation26_spill] sm:$0xff] }
 0x2ba   :  { %1513 = vmatprep.subr.bf16.mxu0 %v3117_v28  ;;  %1554 = vmatprep.subr.bf16.mxu1 %v3120_v29  ;;  %v4173_v28 = vld [vmem:[#allocation27_spill] sm:$0xff]  ;;  %v4174_v29 = vld [vmem:[#allocation28_spill] sm:$0xff] }
 0x2bd   :  { %1514 = vmatpush1.bf16.msra.mxu0 %v3122_v30  ;;  %1555 = vmatpush1.bf16.msra.mxu1 %v3125_v31  ;;  %v4175_v30 = vld [vmem:[#allocation29_spill] sm:$0xff]  ;;  %v4176_v31 = vld [vmem:[#allocation30_spill] sm:$0xff] }
 0x2be   :  { %1515 = vmatprep.subr.bf16.mxu0 %v3129_v32  ;;  %1556 = vmatprep.subr.bf16.mxu1 %v3132_v33  ;;  %v4177_v32 = vld [vmem:[#allocation31_spill] sm:$0xff]  ;;  %v4178_v33 = vld [vmem:[#allocation32_spill] sm:$0xff] }
 0x2c1   :  { %1516 = vmatpush1.bf16.msra.mxu0 %v3135_v34  ;;  %1557 = vmatpush1.bf16.msra.mxu1 %v3139_v35  ;;  %v4179_v34 = vld [vmem:[#allocation33_spill] sm:$0xff]  ;;  %v4180_v35 = vld [vmem:[#allocation34_spill] sm:$0xff] }
 0x2c2   :  { %1517 = vmatprep.subr.bf16.mxu0 %v3141_v36  ;;  %1558 = vmatprep.subr.bf16.mxu1 %v3144_v37  ;;  %v4181_v36 = vld [vmem:[#allocation35_spill] sm:$0xff]  ;;  %v4182_v37 = vld [vmem:[#allocation36_spill] sm:$0xff] }
 0x2c5   :  { %1518 = vmatpush1.bf16.msra.mxu0 %v3147_v38  ;;  %1559 = vmatpush1.bf16.msra.mxu1 %v3153_v40  ;;  %v4183_v38 = vld [vmem:[#allocation37_spill] sm:$0xff]  ;;  %v4184_v40 = vld [vmem:[#allocation38_spill] sm:$0xff] }
 0x2c6   :  { %1519 = vmatprep.subr.bf16.mxu0 %v3155_v41  ;;  %1560 = vmatprep.subr.bf16.mxu1 %v3160_v43  ;;  %v4185_v41 = vld [vmem:[#allocation39_spill] sm:$0xff]  ;;  %v4186_v43 = vld [vmem:[#allocation40_spill] sm:$0xff] }
 0x2c9   :  { %1520 = vmatpush1.bf16.msra.mxu0 %v3163_v45  ;;  %1561 = vmatpush1.bf16.msra.mxu1 %v3167_v46  ;;  %v4187_v45 = vld [vmem:[#allocation41_spill] sm:$0xff]  ;;  %v4188_v46 = vld [vmem:[#allocation42_spill] sm:$0xff] }
 0x2ca   :  { %1521 = vmatprep.subr.bf16.mxu0 %v3169_v47  ;;  %1562 = vmatprep.subr.bf16.mxu1 %v3172_v48  ;;  %v4189_v47 = vld [vmem:[#allocation43_spill] sm:$0xff] }
 0x2cb   :  { %v3537_v48 = vld [vmem:[#allocation10 + $0xe4] ss:$16 sps:$4 sm:$0xff]  }
 0x2cc   :  { %4190 = vst [vmem:[#allocation20_spill] sm:$0xff] %v3537_v48 }
 0x2cd   :  { %1522 = vmatpush1.bf16.msra.mxu0 %v3175_v49  ;;  %1563 = vmatpush1.bf16.msra.mxu1 %v3179_v50  ;;  %v3540_v49 = vld [vmem:[#allocation10 + $0xec] ss:$16 sps:$4 sm:$0xff]  }
 0x2ce   :  { %1523 = vmatprep.subr.bf16.mxu0 %v3181_v51  ;;  %1564 = vmatprep.subr.bf16.mxu1 %v3184_v52  ;;  %4191 = vst [vmem:[#allocation18_spill] sm:$0xff] %v3540_v49  ;;  %v1401_v50 = vld [vmem:[#allocation2 + $0x25] ss:$8 sm:$0xf] }
 0x2cf   :  { %v1399_v51 = vld [vmem:[#allocation2 + $0x2] ss:$8 sm:$0xf]  ;;  %v1439_v1 = vrot.slane %v1401_v50, %v3372_v44  ;;  %v1435_v13 = vrot.slane %v1401_v50, %v3366_v18 }
 0x2d0   :  { %v4192_v52 = vld [vmem:[#allocation44_spill] sm:$0xff]  ;;  %v1418_v9 = vrot.slane %v1399_v51, %v3372_v44  ;;  %v1414_v6 = vrot.slane %v1399_v51, %v3366_v18 }
 0x2d1   :  { %1524 = vmatpush1.bf16.msra.mxu0 %v3187_v53  ;;  %1565 = vmatpush1.bf16.msra.mxu1 %v3191_v54  ;;  %v1427_v53 = vrot.slane %v1401_v50, %v4192_v52  ;;  %v1406_v54 = vrot.slane %v1399_v51, %v4192_v52 }
 0x2d2   :  { %1525 = vmatprep.subr.bf16.mxu0 %v3193_v55  ;;  %1566 = vmatprep.subr.bf16.mxu1 %v3196_v56  ;;  %v1431_v55 = vrot.slane %v1401_v50, %v3369_v42  ;;  %v1447_v63 = vsel %vm1057_vm1, %v1418_v9, %v1439_v1  ;;  %v1446_v4 = vsel %vm1057_vm1, %v1414_v6, %v1435_v13  ;;  %v3571_v50 = vld [vmem:[#allocation10 + $0xc8] ss:$16 sps:$4 sm:$0xff]   ;;  %v3634_v9 = vld [vmem:[#allocation10 + $0x4] ss:$16 sps:$4 sm:$0xff]  }
 0x2d3   :  { %v3631_v1 = vld [vmem:[#allocation10 + $0x28] ss:$16 sps:$4 sm:$0xff]   ;;  %v3646_v6 = vld [vmem:[#allocation10 + $0x1e4] ss:$16 sps:$4 sm:$0xff]  }
 0x2d4   :  { %v3643_v13 = vld [vmem:[#allocation10 + $0x8] ss:$16 sps:$4 sm:$0xff]  }
 0x2d5   :  { %1526 = vmatpush2.bf16.msra.mxu0 %v3199_v57  ;;  %1567 = vmatpush2.bf16.msra.mxu1 %v3203_v58  ;;  %v1444_v57 = vsel %vm1057_vm1, %v1406_v54, %v1427_v53  ;;  %v3577_v53 = vld [vmem:[#allocation10 + $0xac] ss:$16 sps:$4 sm:$0xff]   ;;  %v3580_v54 = vld [vmem:[#allocation10 + $0xa0] ss:$16 sps:$4 sm:$0xff]  }
 0x2d6   :  { %1527 = vmatprep.subr.bf16.mxu0 %v3205_v59  ;;  %1568 = vmatprep.subr.bf16.mxu1 %v3208_v60  ;;  %v1410_v59 = vrot.slane %v1399_v51, %v3369_v42  ;;  %v3574_v51 = vld [vmem:[#allocation10 + $0xa4] ss:$16 sps:$4 sm:$0xff]  }
 0x2d9   :  { %1528 = vmatpush2.bf16.msra.mxu0 %v3211_v61  ;;  %1569 = vmatpush2.bf16.msra.mxu1 %v3215_v62  ;;  %v1445_v62 = vsel %vm1057_vm1, %v1410_v59, %v1431_v55  ;;  %v3583_v55 = vld [vmem:[#allocation10 + $0xa8] ss:$16 sps:$4 sm:$0xff]  }
 0x2da   :  { %1529 = vmatprep.subr.bf16.mxu0 %v4141_v16  ;;  %1570 = vmatprep.subr.bf16.mxu1 %v4167_v22  ;;  %v3595_v59 = vld [vmem:[#allocation10 + $0x88] ss:$16 sps:$4 sm:$0xff]  }
 0x2dd   :  { %1530 = vmatpush2.bf16.msra.mxu0 %v4168_v23  ;;  %1571 = vmatpush2.bf16.msra.mxu1 %v4169_v24 }
 0x2de   :  { %1531 = vmatprep.subr.bf16.mxu0 %v4170_v25  ;;  %1572 = vmatprep.subr.bf16.mxu1 %v4171_v26  ;;  %v1471_v25 = vld [vmem:[#allocation4] sm:$0x3] }
 0x2e1   :  { %1532 = vmatpush2.bf16.msra.mxu0 %v4172_v27  ;;  %1573 = vmatpush2.bf16.msra.mxu1 %v4173_v28 }
 0x2e2   :  { %1533 = vmatprep.subr.bf16.mxu0 %v4174_v29  ;;  %1574 = vmatprep.subr.bf16.mxu1 %v4175_v30 }
 0x2e5   :  { %1534 = vmatpush2.bf16.msra.mxu0 %v4176_v31  ;;  %1575 = vmatpush2.bf16.msra.mxu1 %v4177_v32 }
 0x2e6   :  { %1535 = vmatprep.subr.bf16.mxu0 %v4178_v33  ;;  %1576 = vmatprep.subr.bf16.mxu1 %v4179_v34 }
 0x2e9   :  { %1536 = vmatpush2.bf16.msra.mxu0 %v4180_v35  ;;  %1577 = vmatpush2.bf16.msra.mxu1 %v4181_v36 }
 0x2ea   :  { %1537 = vmatprep.subr.bf16.mxu0 %v4182_v37  ;;  %1578 = vmatprep.subr.bf16.mxu1 %v4183_v38 }
 0x2ed   :  { %1538 = vmatpush2.bf16.msra.mxu0 %v4184_v40  ;;  %1579 = vmatpush2.bf16.msra.mxu1 %v4185_v41  ;;  %v3556_v41 = vld [vmem:[#allocation10 + $0xe0] ss:$16 sps:$4 sm:$0xff]  }
 0x2ee   :  { %1539 = vmatprep.subr.bf16.mxu0 %v4186_v43  ;;  %1580 = vmatprep.subr.bf16.mxu1 %v4187_v45  ;;  %v3559_v43 = vld [vmem:[#allocation10 + $0xe8] ss:$16 sps:$4 sm:$0xff]   ;;  %v3562_v45 = vld [vmem:[#allocation10 + $0xc4] ss:$16 sps:$4 sm:$0xff]  }
 0x2f1   :  { %1540 = vmatpush2.bf16.msra.mxu0 %v4188_v46  ;;  %1581 = vmatpush2.bf16.msra.mxu1 %v4189_v47  ;;  %v3565_v46 = vld [vmem:[#allocation10 + $0xcc] ss:$16 sps:$4 sm:$0xff]   ;;  %v3568_v47 = vld [vmem:[#allocation10 + $0xc0] ss:$16 sps:$4 sm:$0xff]  }
 0x2f2   :  { %1702 = vmatprep.subr.bf16.mxu0 %v3537_v48  ;;  %1743 = vmatprep.subr.bf16.mxu1 %v3540_v49 }
 0x374   :  { %v1350_v56 = vpop.f32.mrf.mxu0  ;;  %v1391_v58 = vpop.f32.mrf.mxu1 }
 0x375   :  { %v1448_v60 = vadd.f32 %v1444_v57, %v1350_v56  ;;  %v1450_v12 = vadd.f32 %v1446_v4, %v1391_v58  ;;  %v3586_v56 = vld [vmem:[#allocation10 + $0x84] ss:$16 sps:$4 sm:$0xff]   ;;  %v3589_v57 = vld [vmem:[#allocation10 + $0x8c] ss:$16 sps:$4 sm:$0xff]   ;;  %v3592_v58 = vld [vmem:[#allocation10 + $0x80] ss:$16 sps:$4 sm:$0xff]  }
 0x376   :  { %v1352_v61 = vpop.f32.mrf.mxu0  ;;  %v1393_v16 = vpop.f32.mrf.mxu1  ;;  %v3652_v4 = vld [vmem:[#allocation10 + $0x1e0] ss:$16 sps:$4 sm:$0xff]  }
 0x377   :  { %v2596_v17 = vmul.f32 -1.442695, %v1448_v60  ;;  %v1449_v10 = vadd.f32 %v1445_v62, %v1352_v61  ;;  %v1451_v7 = vadd.f32 %v1447_v63, %v1393_v16  ;;  %v3598_v60 = vld [vmem:[#allocation10 + $0x64] ss:$16 sps:$4 sm:$0xff]   ;;  %v3601_v61 = vld [vmem:[#allocation10 + $0x6c] ss:$16 sps:$4 sm:$0xff]  }
 0x378   :  { %v1354_v19 = vpop.f32.mrf.mxu0  ;;  %v1395_v5 = vpop.f32.mrf.mxu1  ;;  %v3604_v62 = vld [vmem:[#allocation10 + $0x60] ss:$16 sps:$4 sm:$0xff]   ;;  %v3607_v16 = vld [vmem:[#allocation10 + $0x68] ss:$16 sps:$4 sm:$0xff]   ;;  %v3637_v63 = vld [vmem:[#allocation10 + $0xc] ss:$16 sps:$4 sm:$0xff]  }
 0x379   :  { %2765 = vpow2.f32 %v2596_v17  ;;  %v2597_v8 = vmul.f32 -1.442695, %v1449_v10  ;;  %v2598_v0 = vmul.f32 -1.442695, %v1451_v7  ;;  %v3610_v17 = vld [vmem:[#allocation10 + $0x44] ss:$16 sps:$4 sm:$0xff]  }
 0x37a   :  { %v1355_v20 = vpop.f32.mrf.mxu0  ;;  %v1396_v39 = vpop.f32.mrf.mxu1  ;;  %v3613_v10 = vld [vmem:[#allocation10 + $0x4c] ss:$16 sps:$4 sm:$0xff]   ;;  %v3616_v19 = vld [vmem:[#allocation10 + $0x40] ss:$16 sps:$4 sm:$0xff]   ;;  %v3619_v5 = vld [vmem:[#allocation10 + $0x48] ss:$16 sps:$4 sm:$0xff]  }
 0x37b   :  { %2767 = vpow2.f32 %v2597_v8  ;;  %v3622_v8 = vld [vmem:[#allocation10 + $0x24] ss:$16 sps:$4 sm:$0xff]   ;;  %v3625_v20 = vld [vmem:[#allocation10 + $0x2c] ss:$16 sps:$4 sm:$0xff]   ;;  %v3628_v39 = vld [vmem:[#allocation10 + $0x20] ss:$16 sps:$4 sm:$0xff]  }
 0x37c   :  { %2769 = vpow2.f32 %v2598_v0  ;;  %v3640_v7 = vld [vmem:[#allocation10] ss:$16 sps:$4 sm:$0xff]   ;;  %v3649_v0 = vld [vmem:[#allocation10 + $0x1ec] ss:$16 sps:$4 sm:$0xff]  }
 0x386   :  { %v2766_v14 = vpop.eup %2765 }
 0x387   :  { %v1455_v15 = vadd.f32 1.0, %v2766_v14  ;;  %v3655_v14 = vld [vmem:[#allocation10 + $0x1e8] ss:$16 sps:$4 sm:$0xff]  }
 0x388   :  { %v2768_v3 = vpop.eup %2767 }
 0x389   :  { %2771 = vrcp.f32 %v1455_v15  ;;  %v1461_v11 = vadd.f32 1.0, %v2768_v3  ;;  %v2770_v2 = vpop.eup %2769  ;;  %v3661_v15 = vld [vmem:[#allocation10 + $0x1cc] ss:$16 sps:$4 sm:$0xff]   ;;  %v3664_v3 = vld [vmem:[#allocation10 + $0x1c0] ss:$16 sps:$4 sm:$0xff]  }
 0x38a   :  { %2773 = vtanh.f32 %v1450_v12  ;;  %v1468_v26 = vadd.f32 1.0, %v2770_v2  ;;  %v3658_v12 = vld [vmem:[#allocation10 + $0x1c4] ss:$16 sps:$4 sm:$0xff]  }
 0x38b   :  { %2775 = vrcp.f32 %v1461_v11  ;;  %v3667_v11 = vld [vmem:[#allocation10 + $0x1c8] ss:$16 sps:$4 sm:$0xff]   ;;  %v3670_v2 = vld [vmem:[#allocation10 + $0x1a4] ss:$16 sps:$4 sm:$0xff]  }
 0x38c   :  { %2777 = vrcp.f32 %v1468_v26  ;;  %v3685_v26 = vld [vmem:[#allocation10 + $0x18c] ss:$16 sps:$4 sm:$0xff]  }
 0x38d   :  { %4197 = vst [vmem:[#allocation24_spill] sm:$0xff] %v3685_v26 }
 0x396   :  { %v2772_v22 = vpop.eup %2771 }
 0x397   :  { %v2774_v23 = vpop.eup %2773 }
 0x398   :  { %v2776_v24 = vpop.eup %2775  ;;  %v1473_v27 = vmul.f32 %v2774_v23, %v2772_v22  ;;  %v3673_v22 = vld [vmem:[#allocation10 + $0x1ac] ss:$16 sps:$4 sm:$0xff]   ;;  %v3676_v23 = vld [vmem:[#allocation10 + $0x1a0] ss:$16 sps:$4 sm:$0xff]  }
 0x399   :  { %v1472_v28 = vmul.f32 %v2776_v24, %v1471_v25  ;;  %v2778_v30 = vpop.eup %2777  ;;  %4193 = vst [vmem:[#allocation19_spill] sm:$0xff] %v3673_v22  ;;  %4194 = vst [vmem:[#allocation21_spill] sm:$0xff] %v3676_v23  ;;  %v3679_v24 = vld [vmem:[#allocation10 + $0x1a8] ss:$16 sps:$4 sm:$0xff]   ;;  %v3682_v25 = vld [vmem:[#allocation10 + $0x184] ss:$16 sps:$4 sm:$0xff]  }
 0x39a   :  { %4195 = vst [vmem:[#allocation22_spill] sm:$0xff] %v3679_v24  ;;  %4196 = vst [vmem:[#allocation23_spill] sm:$0xff] %v3682_v25 }
 0x39b   :  { %v1474_v29 = vadd.f32 %v1473_v27, %v1472_v28  ;;  %v3688_v27 = vld [vmem:[#allocation10 + $0x180] ss:$16 sps:$4 sm:$0xff]   ;;  %v3691_v28 = vld [vmem:[#allocation10 + $0x188] ss:$16 sps:$4 sm:$0xff]  }
 0x39c   :  { %4198 = vst [vmem:[#allocation25_spill] sm:$0xff] %v3688_v27  ;;  %4199 = vst [vmem:[#allocation26_spill] sm:$0xff] %v3691_v28 }
 0x39d   :  { %2779 = vtanh.f32 %v1474_v29  ;;  %1477 = vst [vmem:[#allocation4] sm:$0x3] %v1474_v29  ;;  %v3694_v29 = vld [vmem:[#allocation10 + $0x164] ss:$16 sps:$4 sm:$0xff]  }
 0x39e   :  { %4200 = vst [vmem:[#allocation27_spill] sm:$0xff] %v3694_v29 }
 0x3aa   :  { %v2780_v31 = vpop.eup %2779 }
 0x3ab   :  { %v1476_v32 = vmul.f32 %v2780_v31, %v2778_v30  ;;  %v3697_v30 = vld [vmem:[#allocation10 + $0x16c] ss:$16 sps:$4 sm:$0xff]   ;;  %v3700_v31 = vld [vmem:[#allocation10 + $0x160] ss:$16 sps:$4 sm:$0xff]  }
 0x3ac   :  { %4201 = vst [vmem:[#allocation28_spill] sm:$0xff] %v3697_v30  ;;  %4202 = vst [vmem:[#allocation29_spill] sm:$0xff] %v3700_v31 }
 0x3ad   :  { %1478 = vst [vmem:[#allocation3] sm:$0x1] %v1476_v32  ;;  %v1486_v33 = vrot.slane %v1476_v32, %v3395_v21  ;;  %1491 = vst [vmem:[#allocation13 + $0x2] sm:$0x1] %v1476_v32  ;;  %v1492_v34 = vrot.slane %v1476_v32, 1 }
 0x3ae   :  { %v3703_v32 = vld [vmem:[#allocation10 + $0x168] ss:$16 sps:$4 sm:$0xff]  }
 0x3af   :  { %v2599_v35 = vrot.slane %v1486_v33, 9  ;;  %1494 = vst [vmem:[#allocation13 + $0xd] sm:$0x1] %v1492_v34  ;;  %4203 = vst [vmem:[#allocation30_spill] sm:$0xff] %v3703_v32  ;;  %v3706_v33 = vld [vmem:[#allocation10 + $0x144] ss:$16 sps:$4 sm:$0xff]  }
 0x3b0   :  { %4204 = vst [vmem:[#allocation31_spill] sm:$0xff] %v3706_v33  ;;  %v3709_v34 = vld [vmem:[#allocation10 + $0x14c] ss:$16 sps:$4 sm:$0xff]  }
 0x3b1   :  { %1490 = vst [vmem:[#allocation3 + $0x3] sm:$0x1] %v2599_v35  ;;  %4205 = vst [vmem:[#allocation32_spill] sm:$0xff] %v3709_v34  ;;  %v3712_v35 = vld [vmem:[#allocation10 + $0x140] ss:$16 sps:$4 sm:$0xff]  }
 0x3b2   :  { %4206 = vst [vmem:[#allocation33_spill] sm:$0xff] %v3712_v35 }
 0x3b8   :  { %v2600_v36 = vld.sshfl [vmem:[#allocation3] sm:$0x33 pattern:$0x76325410] }
 0x3b9   :  { %v1504_v37 = vcombine.high %v2600_v36, %v2600_v36  ;;  %v1507_v40 = vpack.c.bf16 %v2600_v36, %v2600_v36  ;;  %v3715_v36 = vld [vmem:[#allocation10 + $0x148] ss:$16 sps:$4 sm:$0xff]  }
 0x3ba   :  { %4207 = vst [vmem:[#allocation34_spill] sm:$0xff] %v3715_v36 }
 0x3bb   :  { %v1508_v38 = vpack.c.bf16 %v1504_v37, %v1504_v37  ;;  %v3718_v37 = vld [vmem:[#allocation10 + $0x124] ss:$16 sps:$4 sm:$0xff]  }
 0x3bc   :  { %4208 = vst [vmem:[#allocation35_spill] sm:$0xff] %v3718_v37 }
 0x3bd   :  { %1541 = vmatprep.mubr.bf16.mxu0 %v1508_v38  ;;  %1582 = vmatprep.mubr.bf16.mxu1 %v1508_v38  ;;  %v3721_v38 = vld [vmem:[#allocation10 + $0x12c] ss:$16 sps:$4 sm:$0xff]  }
 0x3be   :  { %1542 = vmatmul.mubr.bf16.vlgmr.msra.gmra.mxu0 %v1507_v40  ;;  %1583 = vmatmul.mubr.bf16.vlgmr.msra.gmra.mxu1 %v1507_v40  ;;  %4209 = vst [vmem:[#allocation36_spill] sm:$0xff] %v3721_v38  ;;  %v3724_v40 = vld [vmem:[#allocation10 + $0x120] ss:$16 sps:$4 sm:$0xff]  }
 0x3bf   :  { %1703 = vmatpush1.bf16.msra.mxu0 %v3556_v41  ;;  %1744 = vmatpush1.bf16.msra.mxu1 %v3559_v43  ;;  %4210 = vst [vmem:[#allocation37_spill] sm:$0xff] %v3724_v40 }
 0x3c0   :  { %1704 = vmatprep.subr.bf16.mxu0 %v3562_v45  ;;  %1745 = vmatprep.subr.bf16.mxu1 %v3565_v46 }
 0x3c3   :  { %1705 = vmatpush1.bf16.msra.mxu0 %v3568_v47  ;;  %1746 = vmatpush1.bf16.msra.mxu1 %v3571_v50 }
 0x3c4   :  { %1706 = vmatprep.subr.bf16.mxu0 %v3574_v51  ;;  %1747 = vmatprep.subr.bf16.mxu1 %v3577_v53 }
 0x3c7   :  { %1707 = vmatpush1.bf16.msra.mxu0 %v3580_v54  ;;  %1748 = vmatpush1.bf16.msra.mxu1 %v3583_v55 }
 0x3c8   :  { %1708 = vmatprep.subr.bf16.mxu0 %v3586_v56  ;;  %1749 = vmatprep.subr.bf16.mxu1 %v3589_v57 }
 0x3cb   :  { %1709 = vmatpush1.bf16.msra.mxu0 %v3592_v58  ;;  %1750 = vmatpush1.bf16.msra.mxu1 %v3595_v59 }
 0x3cc   :  { %1710 = vmatprep.subr.bf16.mxu0 %v3598_v60  ;;  %1751 = vmatprep.subr.bf16.mxu1 %v3601_v61 }
 0x3cf   :  { %1711 = vmatpush1.bf16.msra.mxu0 %v3604_v62  ;;  %1752 = vmatpush1.bf16.msra.mxu1 %v3607_v16 }
 0x3d0   :  { %1712 = vmatprep.subr.bf16.mxu0 %v3610_v17  ;;  %1753 = vmatprep.subr.bf16.mxu1 %v3613_v10 }
 0x3d3   :  { %1713 = vmatpush1.bf16.msra.mxu0 %v3616_v19  ;;  %1754 = vmatpush1.bf16.msra.mxu1 %v3619_v5 }
 0x3d4   :  { %1714 = vmatprep.subr.bf16.mxu0 %v3622_v8  ;;  %1755 = vmatprep.subr.bf16.mxu1 %v3625_v20 }
 0x3d7   :  { %1715 = vmatpush1.bf16.msra.mxu0 %v3628_v39  ;;  %1756 = vmatpush1.bf16.msra.mxu1 %v3631_v1 }
 0x3d8   :  { %1716 = vmatprep.subr.bf16.mxu0 %v3634_v9  ;;  %1757 = vmatprep.subr.bf16.mxu1 %v3637_v63 }
 0x3db   :  { %1717 = vmatpush1.bf16.msra.mxu0 %v3640_v7  ;;  %1758 = vmatpush1.bf16.msra.mxu1 %v3643_v13 }
 0x3dc   :  { %1718 = vmatprep.subr.bf16.mxu0 %v3646_v6  ;;  %1759 = vmatprep.subr.bf16.mxu1 %v3649_v0 }
 0x3df   :  { %1719 = vmatpush2.bf16.msra.mxu0 %v3652_v4  ;;  %1760 = vmatpush2.bf16.msra.mxu1 %v3655_v14 }
 0x3e0   :  { %1720 = vmatprep.subr.bf16.mxu0 %v3658_v12  ;;  %1761 = vmatprep.subr.bf16.mxu1 %v3661_v15 }
 0x3e3   :  { %1721 = vmatpush2.bf16.msra.mxu0 %v3664_v3  ;;  %1762 = vmatpush2.bf16.msra.mxu1 %v3667_v11 }
 0x3e4   :  { %1722 = vmatprep.subr.bf16.mxu0 %v3670_v2  ;;  %1763 = vmatprep.subr.bf16.mxu1 %v3673_v22 }
 0x3e7   :  { %1723 = vmatpush2.bf16.msra.mxu0 %v3676_v23  ;;  %1764 = vmatpush2.bf16.msra.mxu1 %v3679_v24 }
 0x3e8   :  { %1724 = vmatprep.subr.bf16.mxu0 %v3682_v25  ;;  %1765 = vmatprep.subr.bf16.mxu1 %v3685_v26 }
 0x3eb   :  { %1725 = vmatpush2.bf16.msra.mxu0 %v3688_v27  ;;  %1766 = vmatpush2.bf16.msra.mxu1 %v3691_v28 }
 0x3ec   :  { %1726 = vmatprep.subr.bf16.mxu0 %v3694_v29  ;;  %1767 = vmatprep.subr.bf16.mxu1 %v3697_v30 }
 0x3ef   :  { %1727 = vmatpush2.bf16.msra.mxu0 %v3700_v31  ;;  %1768 = vmatpush2.bf16.msra.mxu1 %v3703_v32 }
 0x3f0   :  { %1728 = vmatprep.subr.bf16.mxu0 %v3706_v33  ;;  %1769 = vmatprep.subr.bf16.mxu1 %v3709_v34  ;;  %v3727_v34 = vld [vmem:[#allocation10 + $0x128] ss:$16 sps:$4 sm:$0xff]  }
 0x3f1   :  { %4211 = vst [vmem:[#allocation38_spill] sm:$0xff] %v3727_v34 }
 0x3f3   :  { %1729 = vmatpush2.bf16.msra.mxu0 %v3712_v35  ;;  %1770 = vmatpush2.bf16.msra.mxu1 %v3715_v36  ;;  %v3730_v35 = vld [vmem:[#allocation10 + $0x104] ss:$16 sps:$4 sm:$0xff]   ;;  %v3733_v36 = vld [vmem:[#allocation10 + $0x10c] ss:$16 sps:$4 sm:$0xff]  }
 0x3f4   :  { %1730 = vmatprep.subr.bf16.mxu0 %v3718_v37  ;;  %1771 = vmatprep.subr.bf16.mxu1 %v3721_v38  ;;  %4212 = vst [vmem:[#allocation39_spill] sm:$0xff] %v3730_v35  ;;  %4213 = vst [vmem:[#allocation40_spill] sm:$0xff] %v3733_v36  ;;  %v3736_v37 = vld [vmem:[#allocation10 + $0x100] ss:$16 sps:$4 sm:$0xff]   ;;  %v3739_v38 = vld [vmem:[#allocation10 + $0x108] ss:$16 sps:$4 sm:$0xff]  }
 0x3f5   :  { %4214 = vst [vmem:[#allocation41_spill] sm:$0xff] %v3736_v37  ;;  %4215 = vst [vmem:[#allocation42_spill] sm:$0xff] %v3739_v38 }
 0x3f7   :  { %1731 = vmatpush2.bf16.msra.mxu0 %v3724_v40  ;;  %1772 = vmatpush2.bf16.msra.mxu1 %v3727_v34  ;;  %v1594_v34 = vld [vmem:[#allocation2 + $0x24] ss:$8 sm:$0xf]  ;;  %v1592_v40 = vld [vmem:[#allocation2 + $0x3] ss:$8 sm:$0xf] }
 0x3f8   :  { %1732 = vmatprep.subr.bf16.mxu0 %v3730_v35  ;;  %1773 = vmatprep.subr.bf16.mxu1 %v3733_v36  ;;  %v1620_v35 = vrot.slane %v1594_v34, %v4192_v52  ;;  %v1599_v33 = vrot.slane %v1592_v40, %v4192_v52  ;;  %v1624_v36 = vrot.slane %v1594_v34, %v3369_v42 }
 0x3f9   :  { %v1603_v30 = vrot.slane %v1592_v40, %v3369_v42  ;;  %v1632_v22 = vrot.slane %v1594_v34, %v3372_v44 }
 0x3fa   :  { %v1637_v31 = vsel %vm1057_vm1, %v1599_v33, %v1620_v35  ;;  %v1611_v33 = vrot.slane %v1592_v40, %v3372_v44 }
 0x3fb   :  { %1733 = vmatpush2.bf16.msra.mxu0 %v3736_v37  ;;  %1774 = vmatpush2.bf16.msra.mxu1 %v3739_v38 }
 0x3fc   :  { %1895 = vmatprep.subr.bf16.mxu0 %v3537_v48  ;;  %1936 = vmatprep.subr.bf16.mxu1 %v3540_v49  ;;  %v1638_v48 = vsel %vm1057_vm1, %v1603_v30, %v1624_v36  ;;  %v1640_v35 = vsel %vm1057_vm1, %v1611_v33, %v1632_v22  ;;  %v1607_v30 = vrot.slane %v1592_v40, %v3366_v18  ;;  %v1664_v36 = vld [vmem:[#allocation4] sm:$0x3] }
 0x47e   :  { %v1543_v32 = vpop.f32.mrf.mxu0  ;;  %v1584_v37 = vpop.f32.mrf.mxu1 }
 0x47f   :  { %v1641_v29 = vadd.f32 %v1637_v31, %v1543_v32  ;;  %v1628_v32 = vrot.slane %v1594_v34, %v3366_v18 }
 0x480   :  { %v1545_v38 = vpop.f32.mrf.mxu0  ;;  %v1586_v28 = vpop.f32.mrf.mxu1 }
 0x481   :  { %v2601_v49 = vmul.f32 -1.442695, %v1641_v29  ;;  %v1642_v27 = vadd.f32 %v1638_v48, %v1545_v38  ;;  %v1644_v31 = vadd.f32 %v1640_v35, %v1586_v28  ;;  %v1639_v48 = vsel %vm1057_vm1, %v1607_v30, %v1628_v32 }
 0x482   :  { %v1547_v26 = vpop.f32.mrf.mxu0  ;;  %v1588_v25 = vpop.f32.mrf.mxu1 }
 0x483   :  { %2781 = vpow2.f32 %v2601_v49  ;;  %v2602_v24 = vmul.f32 -1.442695, %v1642_v27  ;;  %v2603_v29 = vmul.f32 -1.442695, %v1644_v31  ;;  %v1643_v49 = vadd.f32 %v1639_v48, %v1584_v37 }
 0x484   :  { %v1548_v52 = vpop.f32.mrf.mxu0  ;;  %v1589_v23 = vpop.f32.mrf.mxu1 }
 0x485   :  { %2783 = vpow2.f32 %v2602_v24 }
 0x486   :  { %2785 = vpow2.f32 %v2603_v29 }
 0x490   :  { %v2782_v25 = vpop.eup %2781 }
 0x491   :  { %v1648_v26 = vadd.f32 1.0, %v2782_v25 }
 0x492   :  { %v2784_v52 = vpop.eup %2783 }
 0x493   :  { %2787 = vrcp.f32 %v1648_v26  ;;  %v1654_v23 = vadd.f32 1.0, %v2784_v52  ;;  %v2786_v24 = vpop.eup %2785  ;;  %v4216_v52 = vld [vmem:[#allocation19_spill] sm:$0xff] }
 0x494   :  { %2789 = vtanh.f32 %v1643_v49  ;;  %v1661_v34 = vadd.f32 1.0, %v2786_v24  ;;  %v4218_v24 = vld [vmem:[#allocation22_spill] sm:$0xff] }
 0x495   :  { %2791 = vrcp.f32 %v1654_v23  ;;  %v4217_v23 = vld [vmem:[#allocation21_spill] sm:$0xff] }
 0x496   :  { %2793 = vrcp.f32 %v1661_v34  ;;  %v4223_v34 = vld [vmem:[#allocation27_spill] sm:$0xff] }
 0x4a0   :  { %v2788_v27 = vpop.eup %2787 }
 0x4a1   :  { %v2790_v22 = vpop.eup %2789 }
 0x4a2   :  { %v2792_v28 = vpop.eup %2791  ;;  %v1666_v38 = vmul.f32 %v2790_v22, %v2788_v27  ;;  %v4219_v27 = vld [vmem:[#allocation23_spill] sm:$0xff]  ;;  %v4220_v22 = vld [vmem:[#allocation24_spill] sm:$0xff] }
 0x4a3   :  { %v1665_v40 = vmul.f32 %v2792_v28, %v1664_v36  ;;  %v2794_v37 = vpop.eup %2793  ;;  %v4221_v28 = vld [vmem:[#allocation25_spill] sm:$0xff]  ;;  %v4222_v36 = vld [vmem:[#allocation26_spill] sm:$0xff] }
 0x4a5   :  { %v1667_v33 = vadd.f32 %v1666_v38, %v1665_v40  ;;  %v4224_v38 = vld [vmem:[#allocation28_spill] sm:$0xff]  ;;  %v4225_v40 = vld [vmem:[#allocation29_spill] sm:$0xff] }
 0x4a7   :  { %2795 = vtanh.f32 %v1667_v33  ;;  %1670 = vst [vmem:[#allocation4] sm:$0x3] %v1667_v33  ;;  %v4226_v33 = vld [vmem:[#allocation30_spill] sm:$0xff] }
 0x4b4   :  { %v2796_v35 = vpop.eup %2795 }
 0x4b5   :  { %v1669_v31 = vmul.f32 %v2796_v35, %v2794_v37  ;;  %v4227_v37 = vld [vmem:[#allocation31_spill] sm:$0xff]  ;;  %v4228_v35 = vld [vmem:[#allocation32_spill] sm:$0xff] }
 0x4b7   :  { %1671 = vst [vmem:[#allocation3] sm:$0x1] %v1669_v31  ;;  %v1679_v32 = vrot.slane %v1669_v31, %v3395_v21  ;;  %1684 = vst [vmem:[#allocation13 + $0x3] sm:$0x1] %v1669_v31  ;;  %v1685_v30 = vrot.slane %v1669_v31, 1  ;;  %v4229_v31 = vld [vmem:[#allocation33_spill] sm:$0xff] }
 0x4b9   :  { %v2604_v29 = vrot.slane %v1679_v32, 9  ;;  %1687 = vst [vmem:[#allocation13 + $0xc] sm:$0x1] %v1685_v30  ;;  %v4230_v32 = vld [vmem:[#allocation34_spill] sm:$0xff]  ;;  %v4231_v30 = vld [vmem:[#allocation35_spill] sm:$0xff] }
 0x4bb   :  { %1683 = vst [vmem:[#allocation3 + $0x3] sm:$0x1] %v2604_v29  ;;  %v4232_v29 = vld [vmem:[#allocation36_spill] sm:$0xff] }
 0x4c2   :  { %v2605_v48 = vld.sshfl [vmem:[#allocation3] sm:$0x33 pattern:$0x76325410] }
 0x4c3   :  { %v1697_v25 = vcombine.high %v2605_v48, %v2605_v48  ;;  %v1700_v26 = vpack.c.bf16 %v2605_v48, %v2605_v48  ;;  %v4233_v48 = vld [vmem:[#allocation37_spill] sm:$0xff] }
 0x4c5   :  { %v1701_v49 = vpack.c.bf16 %v1697_v25, %v1697_v25  ;;  %v4234_v25 = vld [vmem:[#allocation38_spill] sm:$0xff] }
 0x4c7   :  { %1734 = vmatprep.mubr.bf16.mxu0 %v1701_v49  ;;  %1775 = vmatprep.mubr.bf16.mxu1 %v1701_v49  ;;  %v4235_v49 = vld [vmem:[#allocation39_spill] sm:$0xff] }
 0x4c8   :  { %1735 = vmatmul.mubr.bf16.vlgmr.msra.gmra.mxu0 %v1700_v26  ;;  %1776 = vmatmul.mubr.bf16.vlgmr.msra.gmra.mxu1 %v1700_v26  ;;  %v4236_v26 = vld [vmem:[#allocation40_spill] sm:$0xff] }
 0x4c9   :  { %1896 = vmatpush1.bf16.msra.mxu0 %v3556_v41  ;;  %1937 = vmatpush1.bf16.msra.mxu1 %v3559_v43 }
 0x4ca   :  { %1897 = vmatprep.subr.bf16.mxu0 %v3562_v45  ;;  %1938 = vmatprep.subr.bf16.mxu1 %v3565_v46 }
 0x4cd   :  { %1898 = vmatpush1.bf16.msra.mxu0 %v3568_v47  ;;  %1939 = vmatpush1.bf16.msra.mxu1 %v3571_v50 }
 0x4ce   :  { %1899 = vmatprep.subr.bf16.mxu0 %v3574_v51  ;;  %1940 = vmatprep.subr.bf16.mxu1 %v3577_v53 }
 0x4d1   :  { %1900 = vmatpush1.bf16.msra.mxu0 %v3580_v54  ;;  %1941 = vmatpush1.bf16.msra.mxu1 %v3583_v55 }
 0x4d2   :  { %1901 = vmatprep.subr.bf16.mxu0 %v3586_v56  ;;  %1942 = vmatprep.subr.bf16.mxu1 %v3589_v57 }
 0x4d5   :  { %1902 = vmatpush1.bf16.msra.mxu0 %v3592_v58  ;;  %1943 = vmatpush1.bf16.msra.mxu1 %v3595_v59 }
 0x4d6   :  { %1903 = vmatprep.subr.bf16.mxu0 %v3598_v60  ;;  %1944 = vmatprep.subr.bf16.mxu1 %v3601_v61 }
 0x4d9   :  { %1904 = vmatpush1.bf16.msra.mxu0 %v3604_v62  ;;  %1945 = vmatpush1.bf16.msra.mxu1 %v3607_v16 }
 0x4da   :  { %1905 = vmatprep.subr.bf16.mxu0 %v3610_v17  ;;  %1946 = vmatprep.subr.bf16.mxu1 %v3613_v10 }
 0x4dd   :  { %1906 = vmatpush1.bf16.msra.mxu0 %v3616_v19  ;;  %1947 = vmatpush1.bf16.msra.mxu1 %v3619_v5 }
 0x4de   :  { %1907 = vmatprep.subr.bf16.mxu0 %v3622_v8  ;;  %1948 = vmatprep.subr.bf16.mxu1 %v3625_v20 }
 0x4e1   :  { %1908 = vmatpush1.bf16.msra.mxu0 %v3628_v39  ;;  %1949 = vmatpush1.bf16.msra.mxu1 %v3631_v1 }
 0x4e2   :  { %1909 = vmatprep.subr.bf16.mxu0 %v3634_v9  ;;  %1950 = vmatprep.subr.bf16.mxu1 %v3637_v63 }
 0x4e5   :  { %1910 = vmatpush1.bf16.msra.mxu0 %v3640_v7  ;;  %1951 = vmatpush1.bf16.msra.mxu1 %v3643_v13 }
 0x4e6   :  { %1911 = vmatprep.subr.bf16.mxu0 %v3646_v6  ;;  %1952 = vmatprep.subr.bf16.mxu1 %v3649_v0 }
 0x4e9   :  { %1912 = vmatpush2.bf16.msra.mxu0 %v3652_v4  ;;  %1953 = vmatpush2.bf16.msra.mxu1 %v3655_v14 }
 0x4ea   :  { %1913 = vmatprep.subr.bf16.mxu0 %v3658_v12  ;;  %1954 = vmatprep.subr.bf16.mxu1 %v3661_v15 }
 0x4ed   :  { %1914 = vmatpush2.bf16.msra.mxu0 %v3664_v3  ;;  %1955 = vmatpush2.bf16.msra.mxu1 %v3667_v11 }
 0x4ee   :  { %1915 = vmatprep.subr.bf16.mxu0 %v3670_v2  ;;  %1956 = vmatprep.subr.bf16.mxu1 %v4216_v52 }
 0x4f1   :  { %1916 = vmatpush2.bf16.msra.mxu0 %v4217_v23  ;;  %1957 = vmatpush2.bf16.msra.mxu1 %v4218_v24 }
 0x4f2   :  { %1917 = vmatprep.subr.bf16.mxu0 %v4219_v27  ;;  %1958 = vmatprep.subr.bf16.mxu1 %v4220_v22 }
 0x4f5   :  { %1918 = vmatpush2.bf16.msra.mxu0 %v4221_v28  ;;  %1959 = vmatpush2.bf16.msra.mxu1 %v4222_v36 }
 0x4f6   :  { %1919 = vmatprep.subr.bf16.mxu0 %v4223_v34  ;;  %1960 = vmatprep.subr.bf16.mxu1 %v4224_v38 }
 0x4f9   :  { %1920 = vmatpush2.bf16.msra.mxu0 %v4225_v40  ;;  %1961 = vmatpush2.bf16.msra.mxu1 %v4226_v33  ;;  %v4237_v33 = vld [vmem:[#allocation41_spill] sm:$0xff]  ;;  %v4241_v40 = vld [vmem:[#allocation44_spill] sm:$0xff] }
 0x4fa   :  { %1921 = vmatprep.subr.bf16.mxu0 %v4227_v37  ;;  %1962 = vmatprep.subr.bf16.mxu1 %v4228_v35  ;;  %v4238_v37 = vld [vmem:[#allocation42_spill] sm:$0xff]  ;;  %v4239_v35 = vld [vmem:[#allocation20_spill] sm:$0xff] }
 0x4fd   :  { %1922 = vmatpush2.bf16.msra.mxu0 %v4229_v31  ;;  %1963 = vmatpush2.bf16.msra.mxu1 %v4230_v32  ;;  %v4240_v31 = vld [vmem:[#allocation18_spill] sm:$0xff] }
 0x4fe   :  { %1923 = vmatprep.subr.bf16.mxu0 %v4231_v30  ;;  %1964 = vmatprep.subr.bf16.mxu1 %v4232_v29  ;;  %v1787_v32 = vld [vmem:[#allocation2 + $0x23] ss:$8 sm:$0xf]  ;;  %v1785_v30 = vld [vmem:[#allocation2 + $0x4] ss:$8 sm:$0xf] }
 0x4ff   :  { %v1813_v29 = vrot.slane %v1787_v32, %v4241_v40  ;;  %v1825_v52 = vrot.slane %v1787_v32, %v3372_v44 }
 0x501   :  { %1924 = vmatpush2.bf16.msra.mxu0 %v4233_v48  ;;  %1965 = vmatpush2.bf16.msra.mxu1 %v4234_v25  ;;  %v1792_v48 = vrot.slane %v1785_v30, %v4241_v40  ;;  %v1817_v25 = vrot.slane %v1787_v32, %v3369_v42 }
 0x502   :  { %1925 = vmatprep.subr.bf16.mxu0 %v4235_v49  ;;  %1966 = vmatprep.subr.bf16.mxu1 %v4236_v26 }
 0x503   :  { %v1830_v49 = vsel %vm1057_vm1, %v1792_v48, %v1813_v29  ;;  %v1804_v29 = vrot.slane %v1785_v30, %v3372_v44 }
 0x505   :  { %1926 = vmatpush2.bf16.msra.mxu0 %v4237_v33  ;;  %1967 = vmatpush2.bf16.msra.mxu1 %v4238_v37  ;;  %v1796_v33 = vrot.slane %v1785_v30, %v3369_v42  ;;  %v1833_v48 = vsel %vm1057_vm1, %v1804_v29, %v1825_v52 }
 0x506   :  { %2088 = vmatprep.subr.bf16.mxu0 %v4239_v35  ;;  %2129 = vmatprep.subr.bf16.mxu1 %v4240_v31 }
 0x507   :  { %v1831_v35 = vsel %vm1057_vm1, %v1796_v33, %v1817_v25  ;;  %v1800_v33 = vrot.slane %v1785_v30, %v3366_v18 }
 0x588   :  { %v1736_v38 = vpop.f32.mrf.mxu0  ;;  %v1777_v26 = vpop.f32.mrf.mxu1 }
 0x589   :  { %v1834_v34 = vadd.f32 %v1830_v49, %v1736_v38  ;;  %v1821_v49 = vrot.slane %v1787_v32, %v3366_v18 }
 0x58a   :  { %v1738_v37 = vpop.f32.mrf.mxu0  ;;  %v1779_v36 = vpop.f32.mrf.mxu1 }
 0x58b   :  { %v2606_v31 = vmul.f32 -1.442695, %v1834_v34  ;;  %v1835_v28 = vadd.f32 %v1831_v35, %v1738_v37  ;;  %v1837_v38 = vadd.f32 %v1833_v48, %v1779_v36 }
 0x58c   :  { %v1740_v22 = vpop.f32.mrf.mxu0  ;;  %v1781_v27 = vpop.f32.mrf.mxu1 }
 0x58d   :  { %2797 = vpow2.f32 %v2606_v31  ;;  %v2607_v24 = vmul.f32 -1.442695, %v1835_v28  ;;  %v2608_v34 = vmul.f32 -1.442695, %v1837_v38  ;;  %v1832_v22 = vsel %vm1057_vm1, %v1800_v33, %v1821_v49  ;;  %v1857_v31 = vld [vmem:[#allocation4] sm:$0x3] }
 0x58e   :  { %v1741_v40 = vpop.f32.mrf.mxu0  ;;  %v1782_v23 = vpop.f32.mrf.mxu1  ;;  %v1836_v37 = vadd.f32 %v1832_v22, %v1777_v26 }
 0x58f   :  { %2799 = vpow2.f32 %v2607_v24 }
 0x590   :  { %2801 = vpow2.f32 %v2608_v34 }
 0x59a   :  { %v2798_v27 = vpop.eup %2797 }
 0x59b   :  { %v1841_v28 = vadd.f32 1.0, %v2798_v27 }
 0x59c   :  { %v2800_v40 = vpop.eup %2799 }
 0x59d   :  { %2803 = vrcp.f32 %v1841_v28  ;;  %v1847_v23 = vadd.f32 1.0, %v2800_v40  ;;  %v2802_v24 = vpop.eup %2801  ;;  %v4242_v40 = vld [vmem:[#allocation19_spill] sm:$0xff] }
 0x59e   :  { %2805 = vtanh.f32 %v1836_v37  ;;  %v1854_v32 = vadd.f32 1.0, %v2802_v24  ;;  %v4244_v24 = vld [vmem:[#allocation22_spill] sm:$0xff] }
 0x59f   :  { %2807 = vrcp.f32 %v1847_v23  ;;  %v4243_v23 = vld [vmem:[#allocation21_spill] sm:$0xff] }
 0x5a0   :  { %2809 = vrcp.f32 %v1854_v32  ;;  %v4249_v32 = vld [vmem:[#allocation27_spill] sm:$0xff] }
 0x5aa   :  { %v2804_v35 = vpop.eup %2803 }
 0x5ab   :  { %v2806_v52 = vpop.eup %2805 }
 0x5ac   :  { %v2808_v36 = vpop.eup %2807  ;;  %v1859_v25 = vmul.f32 %v2806_v52, %v2804_v35  ;;  %v4245_v35 = vld [vmem:[#allocation23_spill] sm:$0xff]  ;;  %v4246_v52 = vld [vmem:[#allocation24_spill] sm:$0xff] }
 0x5ad   :  { %v1858_v30 = vmul.f32 %v2808_v36, %v1857_v31  ;;  %v2810_v26 = vpop.eup %2809  ;;  %v4247_v36 = vld [vmem:[#allocation25_spill] sm:$0xff]  ;;  %v4248_v31 = vld [vmem:[#allocation26_spill] sm:$0xff] }
 0x5af   :  { %v1860_v29 = vadd.f32 %v1859_v25, %v1858_v30  ;;  %v4250_v25 = vld [vmem:[#allocation28_spill] sm:$0xff]  ;;  %v4251_v30 = vld [vmem:[#allocation29_spill] sm:$0xff] }
 0x5b1   :  { %2811 = vtanh.f32 %v1860_v29  ;;  %1863 = vst [vmem:[#allocation4] sm:$0x3] %v1860_v29  ;;  %v4252_v29 = vld [vmem:[#allocation30_spill] sm:$0xff] }
 0x5be   :  { %v2812_v48 = vpop.eup %2811 }
 0x5bf   :  { %v1862_v38 = vmul.f32 %v2812_v48, %v2810_v26  ;;  %v4253_v26 = vld [vmem:[#allocation31_spill] sm:$0xff]  ;;  %v4254_v48 = vld [vmem:[#allocation32_spill] sm:$0xff] }
 0x5c1   :  { %1864 = vst [vmem:[#allocation3] sm:$0x1] %v1862_v38  ;;  %v1872_v49 = vrot.slane %v1862_v38, %v3395_v21  ;;  %1877 = vst [vmem:[#allocation13 + $0x4] sm:$0x1] %v1862_v38  ;;  %v1878_v33 = vrot.slane %v1862_v38, 1  ;;  %v4255_v38 = vld [vmem:[#allocation33_spill] sm:$0xff] }
 0x5c3   :  { %v2609_v34 = vrot.slane %v1872_v49, 9  ;;  %1880 = vst [vmem:[#allocation13 + $0xb] sm:$0x1] %v1878_v33  ;;  %v4256_v49 = vld [vmem:[#allocation34_spill] sm:$0xff]  ;;  %v4257_v33 = vld [vmem:[#allocation35_spill] sm:$0xff] }
 0x5c5   :  { %1876 = vst [vmem:[#allocation3 + $0x3] sm:$0x1] %v2609_v34  ;;  %v4258_v34 = vld [vmem:[#allocation36_spill] sm:$0xff] }
 0x5cc   :  { %v2610_v22 = vld.sshfl [vmem:[#allocation3] sm:$0x33 pattern:$0x76325410] }
 0x5cd   :  { %v1890_v27 = vcombine.high %v2610_v22, %v2610_v22  ;;  %v1893_v28 = vpack.c.bf16 %v2610_v22, %v2610_v22  ;;  %v4259_v22 = vld [vmem:[#allocation37_spill] sm:$0xff] }
 0x5cf   :  { %v1894_v37 = vpack.c.bf16 %v1890_v27, %v1890_v27  ;;  %v4260_v27 = vld [vmem:[#allocation38_spill] sm:$0xff] }
 0x5d1   :  { %1927 = vmatprep.mubr.bf16.mxu0 %v1894_v37  ;;  %1968 = vmatprep.mubr.bf16.mxu1 %v1894_v37  ;;  %v4261_v37 = vld [vmem:[#allocation39_spill] sm:$0xff] }
 0x5d2   :  { %1928 = vmatmul.mubr.bf16.vlgmr.msra.gmra.mxu0 %v1893_v28  ;;  %1969 = vmatmul.mubr.bf16.vlgmr.msra.gmra.mxu1 %v1893_v28  ;;  %v4262_v28 = vld [vmem:[#allocation40_spill] sm:$0xff] }
 0x5d3   :  { %2089 = vmatpush1.bf16.msra.mxu0 %v3556_v41  ;;  %2130 = vmatpush1.bf16.msra.mxu1 %v3559_v43 }
 0x5d4   :  { %2090 = vmatprep.subr.bf16.mxu0 %v3562_v45  ;;  %2131 = vmatprep.subr.bf16.mxu1 %v3565_v46 }
 0x5d7   :  { %2091 = vmatpush1.bf16.msra.mxu0 %v3568_v47  ;;  %2132 = vmatpush1.bf16.msra.mxu1 %v3571_v50 }
 0x5d8   :  { %2092 = vmatprep.subr.bf16.mxu0 %v3574_v51  ;;  %2133 = vmatprep.subr.bf16.mxu1 %v3577_v53 }
 0x5db   :  { %2093 = vmatpush1.bf16.msra.mxu0 %v3580_v54  ;;  %2134 = vmatpush1.bf16.msra.mxu1 %v3583_v55 }
 0x5dc   :  { %2094 = vmatprep.subr.bf16.mxu0 %v3586_v56  ;;  %2135 = vmatprep.subr.bf16.mxu1 %v3589_v57 }
 0x5df   :  { %2095 = vmatpush1.bf16.msra.mxu0 %v3592_v58  ;;  %2136 = vmatpush1.bf16.msra.mxu1 %v3595_v59 }
 0x5e0   :  { %2096 = vmatprep.subr.bf16.mxu0 %v3598_v60  ;;  %2137 = vmatprep.subr.bf16.mxu1 %v3601_v61 }
 0x5e3   :  { %2097 = vmatpush1.bf16.msra.mxu0 %v3604_v62  ;;  %2138 = vmatpush1.bf16.msra.mxu1 %v3607_v16 }
 0x5e4   :  { %2098 = vmatprep.subr.bf16.mxu0 %v3610_v17  ;;  %2139 = vmatprep.subr.bf16.mxu1 %v3613_v10 }
 0x5e7   :  { %2099 = vmatpush1.bf16.msra.mxu0 %v3616_v19  ;;  %2140 = vmatpush1.bf16.msra.mxu1 %v3619_v5 }
 0x5e8   :  { %2100 = vmatprep.subr.bf16.mxu0 %v3622_v8  ;;  %2141 = vmatprep.subr.bf16.mxu1 %v3625_v20 }
 0x5eb   :  { %2101 = vmatpush1.bf16.msra.mxu0 %v3628_v39  ;;  %2142 = vmatpush1.bf16.msra.mxu1 %v3631_v1 }
 0x5ec   :  { %2102 = vmatprep.subr.bf16.mxu0 %v3634_v9  ;;  %2143 = vmatprep.subr.bf16.mxu1 %v3637_v63 }
 0x5ef   :  { %2103 = vmatpush1.bf16.msra.mxu0 %v3640_v7  ;;  %2144 = vmatpush1.bf16.msra.mxu1 %v3643_v13 }
 0x5f0   :  { %2104 = vmatprep.subr.bf16.mxu0 %v3646_v6  ;;  %2145 = vmatprep.subr.bf16.mxu1 %v3649_v0 }
 0x5f3   :  { %2105 = vmatpush2.bf16.msra.mxu0 %v3652_v4  ;;  %2146 = vmatpush2.bf16.msra.mxu1 %v3655_v14 }
 0x5f4   :  { %2106 = vmatprep.subr.bf16.mxu0 %v3658_v12  ;;  %2147 = vmatprep.subr.bf16.mxu1 %v3661_v15 }
 0x5f7   :  { %2107 = vmatpush2.bf16.msra.mxu0 %v3664_v3  ;;  %2148 = vmatpush2.bf16.msra.mxu1 %v3667_v11 }
 0x5f8   :  { %2108 = vmatprep.subr.bf16.mxu0 %v3670_v2  ;;  %2149 = vmatprep.subr.bf16.mxu1 %v4242_v40 }
 0x5fb   :  { %2109 = vmatpush2.bf16.msra.mxu0 %v4243_v23  ;;  %2150 = vmatpush2.bf16.msra.mxu1 %v4244_v24 }
 0x5fc   :  { %2110 = vmatprep.subr.bf16.mxu0 %v4245_v35  ;;  %2151 = vmatprep.subr.bf16.mxu1 %v4246_v52 }
 0x5ff   :  { %2111 = vmatpush2.bf16.msra.mxu0 %v4247_v36  ;;  %2152 = vmatpush2.bf16.msra.mxu1 %v4248_v31 }
 0x600   :  { %2112 = vmatprep.subr.bf16.mxu0 %v4249_v32  ;;  %2153 = vmatprep.subr.bf16.mxu1 %v4250_v25 }
 0x603   :  { %2113 = vmatpush2.bf16.msra.mxu0 %v4251_v30  ;;  %2154 = vmatpush2.bf16.msra.mxu1 %v4252_v29  ;;  %v4263_v29 = vld [vmem:[#allocation41_spill] sm:$0xff]  ;;  %v4267_v30 = vld [vmem:[#allocation44_spill] sm:$0xff] }
 0x604   :  { %2114 = vmatprep.subr.bf16.mxu0 %v4253_v26  ;;  %2155 = vmatprep.subr.bf16.mxu1 %v4254_v48  ;;  %v4264_v26 = vld [vmem:[#allocation42_spill] sm:$0xff]  ;;  %v4265_v48 = vld [vmem:[#allocation20_spill] sm:$0xff] }
 0x607   :  { %2115 = vmatpush2.bf16.msra.mxu0 %v4255_v38  ;;  %2156 = vmatpush2.bf16.msra.mxu1 %v4256_v49  ;;  %v4266_v38 = vld [vmem:[#allocation18_spill] sm:$0xff] }
 0x608   :  { %2116 = vmatprep.subr.bf16.mxu0 %v4257_v33  ;;  %2157 = vmatprep.subr.bf16.mxu1 %v4258_v34  ;;  %v1980_v49 = vld [vmem:[#allocation2 + $0x22] ss:$8 sm:$0xf]  ;;  %v1978_v33 = vld [vmem:[#allocation2 + $0x5] ss:$8 sm:$0xf] }
 0x609   :  { %v2006_v34 = vrot.slane %v1980_v49, %v4267_v30  ;;  %v2018_v40 = vrot.slane %v1980_v49, %v3372_v44 }
 0x60b   :  { %2117 = vmatpush2.bf16.msra.mxu0 %v4259_v22  ;;  %2158 = vmatpush2.bf16.msra.mxu1 %v4260_v27  ;;  %v1985_v22 = vrot.slane %v1978_v33, %v4267_v30  ;;  %v2010_v27 = vrot.slane %v1980_v49, %v3369_v42 }
 0x60c   :  { %2118 = vmatprep.subr.bf16.mxu0 %v4261_v37  ;;  %2159 = vmatprep.subr.bf16.mxu1 %v4262_v28 }
 0x60d   :  { %v2023_v37 = vsel %vm1057_vm1, %v1985_v22, %v2006_v34  ;;  %v1997_v34 = vrot.slane %v1978_v33, %v3372_v44 }
 0x60f   :  { %2119 = vmatpush2.bf16.msra.mxu0 %v4263_v29  ;;  %2160 = vmatpush2.bf16.msra.mxu1 %v4264_v26  ;;  %v1989_v29 = vrot.slane %v1978_v33, %v3369_v42  ;;  %v2026_v22 = vsel %vm1057_vm1, %v1997_v34, %v2018_v40 }
 0x610   :  { %2281 = vmatprep.subr.bf16.mxu0 %v4265_v48  ;;  %2322 = vmatprep.subr.bf16.mxu1 %v4266_v38 }
 0x611   :  { %v2024_v48 = vsel %vm1057_vm1, %v1989_v29, %v2010_v27  ;;  %v1993_v29 = vrot.slane %v1978_v33, %v3366_v18 }
 0x692   :  { %v1929_v25 = vpop.f32.mrf.mxu0  ;;  %v1970_v28 = vpop.f32.mrf.mxu1 }
 0x693   :  { %v2027_v32 = vadd.f32 %v2023_v37, %v1929_v25  ;;  %v2014_v37 = vrot.slane %v1980_v49, %v3366_v18 }
 0x694   :  { %v1931_v26 = vpop.f32.mrf.mxu0  ;;  %v1972_v31 = vpop.f32.mrf.mxu1 }
 0x695   :  { %v2611_v38 = vmul.f32 -1.442695, %v2027_v32  ;;  %v2028_v36 = vadd.f32 %v2024_v48, %v1931_v26  ;;  %v2030_v25 = vadd.f32 %v2026_v22, %v1972_v31  ;;  %v2050_v48 = vld [vmem:[#allocation4] sm:$0x3] }
 0x696   :  { %v1933_v52 = vpop.f32.mrf.mxu0  ;;  %v1974_v35 = vpop.f32.mrf.mxu1 }
 0x697   :  { %2813 = vpow2.f32 %v2611_v38  ;;  %v2612_v24 = vmul.f32 -1.442695, %v2028_v36  ;;  %v2613_v32 = vmul.f32 -1.442695, %v2030_v25  ;;  %v2025_v52 = vsel %vm1057_vm1, %v1993_v29, %v2014_v37 }
 0x698   :  { %v1934_v30 = vpop.f32.mrf.mxu0  ;;  %v1975_v23 = vpop.f32.mrf.mxu1  ;;  %v2029_v26 = vadd.f32 %v2025_v52, %v1970_v28 }
 0x699   :  { %2815 = vpow2.f32 %v2612_v24 }
 0x69a   :  { %2817 = vpow2.f32 %v2613_v32 }
 0x6a4   :  { %v2814_v35 = vpop.eup %2813 }
 0x6a5   :  { %v2034_v36 = vadd.f32 1.0, %v2814_v35 }
 0x6a6   :  { %v2816_v30 = vpop.eup %2815 }
 0x6a7   :  { %2819 = vrcp.f32 %v2034_v36  ;;  %v2040_v23 = vadd.f32 1.0, %v2816_v30  ;;  %v2818_v24 = vpop.eup %2817 }
 0x6a8   :  { %2821 = vtanh.f32 %v2029_v26  ;;  %v2047_v49 = vadd.f32 1.0, %v2818_v24 }
 0x6a9   :  { %2823 = vrcp.f32 %v2040_v23 }
 0x6aa   :  { %2825 = vrcp.f32 %v2047_v49 }
 0x6b4   :  { %v2820_v27 = vpop.eup %2819 }
 0x6b5   :  { %v2822_v40 = vpop.eup %2821 }
 0x6b6   :  { %v2824_v31 = vpop.eup %2823  ;;  %v2052_v38 = vmul.f32 %v2822_v40, %v2820_v27 }
 0x6b7   :  { %v2051_v33 = vmul.f32 %v2824_v31, %v2050_v48  ;;  %v2826_v28 = vpop.eup %2825 }
 0x6b9   :  { %v2053_v34 = vadd.f32 %v2052_v38, %v2051_v33 }
 0x6bb   :  { %2827 = vtanh.f32 %v2053_v34  ;;  %2056 = vst [vmem:[#allocation4] sm:$0x3] %v2053_v34 }
 0x6c8   :  { %v2828_v22 = vpop.eup %2827 }
 0x6c9   :  { %v2055_v25 = vmul.f32 %v2828_v22, %v2826_v28 }
 0x6cb   :  { %v2065_v37 = vrot.slane %v2055_v25, %v3395_v21  ;;  %2070 = vst [vmem:[#allocation13 + $0x5] sm:$0x1] %v2055_v25  ;;  %v2071_v29 = vrot.slane %v2055_v25, 1  ;;  %2057 = vst [vmem:[#allocation3] sm:$0x1] %v2055_v25 }
 0x6cd   :  { %v2614_v32 = vrot.slane %v2065_v37, 9  ;;  %2073 = vst [vmem:[#allocation13 + $0xa] sm:$0x1] %v2071_v29 }
 0x6cf   :  { %2069 = vst [vmem:[#allocation3 + $0x3] sm:$0x1] %v2614_v32 }
 0x6d6   :  { %v2615_v52 = vld.sshfl [vmem:[#allocation3] sm:$0x33 pattern:$0x76325410] }
 0x6d7   :  { %v2083_v35 = vcombine.high %v2615_v52, %v2615_v52  ;;  %v2086_v36 = vpack.c.bf16 %v2615_v52, %v2615_v52 }
 0x6d9   :  { %v2087_v26 = vpack.c.bf16 %v2083_v35, %v2083_v35 }
 0x6db   :  { %2120 = vmatprep.mubr.bf16.mxu0 %v2087_v26  ;;  %2161 = vmatprep.mubr.bf16.mxu1 %v2087_v26 }
 0x6dc   :  { %2121 = vmatmul.mubr.bf16.vlgmr.msra.gmra.mxu0 %v2086_v36  ;;  %2162 = vmatmul.mubr.bf16.vlgmr.msra.gmra.mxu1 %v2086_v36 }
 0x6dd   :  { %2282 = vmatpush1.bf16.msra.mxu0 %v3556_v41  ;;  %2323 = vmatpush1.bf16.msra.mxu1 %v3559_v43  ;;  %v4268_v41 = vld [vmem:[#allocation19_spill] sm:$0xff]  ;;  %v4269_v43 = vld [vmem:[#allocation21_spill] sm:$0xff] }
 0x6de   :  { %2283 = vmatprep.subr.bf16.mxu0 %v3562_v45  ;;  %2324 = vmatprep.subr.bf16.mxu1 %v3565_v46  ;;  %v4270_v45 = vld [vmem:[#allocation22_spill] sm:$0xff]  ;;  %v4271_v46 = vld [vmem:[#allocation23_spill] sm:$0xff] }
 0x6e1   :  { %2284 = vmatpush1.bf16.msra.mxu0 %v3568_v47  ;;  %2325 = vmatpush1.bf16.msra.mxu1 %v3571_v50  ;;  %v4272_v47 = vld [vmem:[#allocation24_spill] sm:$0xff]  ;;  %v4273_v50 = vld [vmem:[#allocation25_spill] sm:$0xff] }
 0x6e2   :  { %2285 = vmatprep.subr.bf16.mxu0 %v3574_v51  ;;  %2326 = vmatprep.subr.bf16.mxu1 %v3577_v53  ;;  %v4274_v51 = vld [vmem:[#allocation26_spill] sm:$0xff]  ;;  %v4275_v53 = vld [vmem:[#allocation27_spill] sm:$0xff] }
 0x6e5   :  { %2286 = vmatpush1.bf16.msra.mxu0 %v3580_v54  ;;  %2327 = vmatpush1.bf16.msra.mxu1 %v3583_v55  ;;  %v4276_v54 = vld [vmem:[#allocation28_spill] sm:$0xff]  ;;  %v4277_v55 = vld [vmem:[#allocation29_spill] sm:$0xff] }
 0x6e6   :  { %2287 = vmatprep.subr.bf16.mxu0 %v3586_v56  ;;  %2328 = vmatprep.subr.bf16.mxu1 %v3589_v57  ;;  %v4278_v56 = vld [vmem:[#allocation30_spill] sm:$0xff]  ;;  %v4279_v57 = vld [vmem:[#allocation31_spill] sm:$0xff] }
 0x6e9   :  { %2288 = vmatpush1.bf16.msra.mxu0 %v3592_v58  ;;  %2329 = vmatpush1.bf16.msra.mxu1 %v3595_v59  ;;  %v4280_v58 = vld [vmem:[#allocation32_spill] sm:$0xff]  ;;  %v4281_v59 = vld [vmem:[#allocation33_spill] sm:$0xff] }
 0x6ea   :  { %2289 = vmatprep.subr.bf16.mxu0 %v3598_v60  ;;  %2330 = vmatprep.subr.bf16.mxu1 %v3601_v61  ;;  %v4282_v60 = vld [vmem:[#allocation34_spill] sm:$0xff]  ;;  %v4283_v61 = vld [vmem:[#allocation35_spill] sm:$0xff] }
 0x6ed   :  { %2290 = vmatpush1.bf16.msra.mxu0 %v3604_v62  ;;  %2331 = vmatpush1.bf16.msra.mxu1 %v3607_v16  ;;  %v4284_v62 = vld [vmem:[#allocation36_spill] sm:$0xff]  ;;  %v4285_v16 = vld [vmem:[#allocation37_spill] sm:$0xff] }
 0x6ee   :  { %2291 = vmatprep.subr.bf16.mxu0 %v3610_v17  ;;  %2332 = vmatprep.subr.bf16.mxu1 %v3613_v10  ;;  %v4286_v17 = vld [vmem:[#allocation38_spill] sm:$0xff]  ;;  %v4287_v10 = vld [vmem:[#allocation39_spill] sm:$0xff] }
 0x6f1   :  { %2292 = vmatpush1.bf16.msra.mxu0 %v3616_v19  ;;  %2333 = vmatpush1.bf16.msra.mxu1 %v3619_v5  ;;  %v4288_v19 = vld [vmem:[#allocation40_spill] sm:$0xff]  ;;  %v4289_v5 = vld [vmem:[#allocation41_spill] sm:$0xff] }
 0x6f2   :  { %2293 = vmatprep.subr.bf16.mxu0 %v3622_v8  ;;  %2334 = vmatprep.subr.bf16.mxu1 %v3625_v20  ;;  %v4290_v8 = vld [vmem:[#allocation42_spill] sm:$0xff] }
 0x6f3   :  { %v2173_v20 = vld [vmem:[#allocation2 + $0x21] ss:$8 sm:$0xf] }
 0x6f4   :  { %v2211_v31 = vrot.slane %v2173_v20, %v3372_v44  ;;  %v2207_v33 = vrot.slane %v2173_v20, %v3366_v18 }
 0x6f5   :  { %2294 = vmatpush1.bf16.msra.mxu0 %v3628_v39  ;;  %2335 = vmatpush1.bf16.msra.mxu1 %v3631_v1  ;;  %v2171_v39 = vld [vmem:[#allocation2 + $0x6] ss:$8 sm:$0xf] }
 0x6f6   :  { %2295 = vmatprep.subr.bf16.mxu0 %v3634_v9  ;;  %2336 = vmatprep.subr.bf16.mxu1 %v3637_v63  ;;  %v4291_v1 = vld [vmem:[#allocation44_spill] sm:$0xff]  ;;  %v2190_v48 = vrot.slane %v2171_v39, %v3372_v44  ;;  %v2186_v34 = vrot.slane %v2171_v39, %v3366_v18 }
 0x6f7   :  { %v2199_v9 = vrot.slane %v2173_v20, %v4291_v1  ;;  %v2178_v63 = vrot.slane %v2171_v39, %v4291_v1 }
 0x6f8   :  { %v2219_v49 = vsel %vm1057_vm1, %v2190_v48, %v2211_v31  ;;  %v2218_v22 = vsel %vm1057_vm1, %v2186_v34, %v2207_v33 }
 0x6f9   :  { %2296 = vmatpush1.bf16.msra.mxu0 %v3640_v7  ;;  %2337 = vmatpush1.bf16.msra.mxu1 %v3643_v13  ;;  %v2203_v7 = vrot.slane %v2173_v20, %v3369_v42 }
 0x6fa   :  { %2297 = vmatprep.subr.bf16.mxu0 %v3646_v6  ;;  %2338 = vmatprep.subr.bf16.mxu1 %v3649_v0  ;;  %v2216_v6 = vsel %vm1057_vm1, %v2178_v63, %v2199_v9 }
 0x6fd   :  { %2298 = vmatpush2.bf16.msra.mxu0 %v3652_v4  ;;  %2339 = vmatpush2.bf16.msra.mxu1 %v3655_v14  ;;  %v2182_v4 = vrot.slane %v2171_v39, %v3369_v42 }
 0x6fe   :  { %2299 = vmatprep.subr.bf16.mxu0 %v3658_v12  ;;  %2340 = vmatprep.subr.bf16.mxu1 %v3661_v15 }
 0x6ff   :  { %v2217_v15 = vsel %vm1057_vm1, %v2182_v4, %v2203_v7 }
 0x701   :  { %2300 = vmatpush2.bf16.msra.mxu0 %v3664_v3  ;;  %2341 = vmatpush2.bf16.msra.mxu1 %v3667_v11 }
 0x702   :  { %2301 = vmatprep.subr.bf16.mxu0 %v3670_v2  ;;  %2342 = vmatprep.subr.bf16.mxu1 %v4268_v41 }
 0x705   :  { %2302 = vmatpush2.bf16.msra.mxu0 %v4269_v43  ;;  %2343 = vmatpush2.bf16.msra.mxu1 %v4270_v45  ;;  %v2243_v43 = vld [vmem:[#allocation4] sm:$0x3] }
 0x706   :  { %2303 = vmatprep.subr.bf16.mxu0 %v4271_v46  ;;  %2344 = vmatprep.subr.bf16.mxu1 %v4272_v47 }
 0x709   :  { %2304 = vmatpush2.bf16.msra.mxu0 %v4273_v50  ;;  %2345 = vmatpush2.bf16.msra.mxu1 %v4274_v51 }
 0x70a   :  { %2305 = vmatprep.subr.bf16.mxu0 %v4275_v53  ;;  %2346 = vmatprep.subr.bf16.mxu1 %v4276_v54 }
 0x70d   :  { %2306 = vmatpush2.bf16.msra.mxu0 %v4277_v55  ;;  %2347 = vmatpush2.bf16.msra.mxu1 %v4278_v56 }
 0x70e   :  { %2307 = vmatprep.subr.bf16.mxu0 %v4279_v57  ;;  %2348 = vmatprep.subr.bf16.mxu1 %v4280_v58 }
 0x711   :  { %2308 = vmatpush2.bf16.msra.mxu0 %v4281_v59  ;;  %2349 = vmatpush2.bf16.msra.mxu1 %v4282_v60 }
 0x712   :  { %2309 = vmatprep.subr.bf16.mxu0 %v4283_v61  ;;  %2350 = vmatprep.subr.bf16.mxu1 %v4284_v62  ;;  %v2366_v62 = vld [vmem:[#allocation2 + $0x20] ss:$8 sm:$0xf] }
 0x715   :  { %2310 = vmatpush2.bf16.msra.mxu0 %v4285_v16  ;;  %2351 = vmatpush2.bf16.msra.mxu1 %v4286_v17  ;;  %v2364_v16 = vld [vmem:[#allocation2 + $0x7] ss:$8 sm:$0xf]  ;;  %v2392_v17 = vrot.slane %v2366_v62, %v4291_v1 }
 0x716   :  { %2311 = vmatprep.subr.bf16.mxu0 %v4287_v10  ;;  %2352 = vmatprep.subr.bf16.mxu1 %v4288_v19  ;;  %v2371_v10 = vrot.slane %v2364_v16, %v4291_v1  ;;  %v2396_v19 = vrot.slane %v2366_v62, %v3369_v42  ;;  %v2375_v39 = vrot.slane %v2364_v16, %v3369_v42 }
 0x718   :  { %v2410_v7 = vsel %vm1057_vm1, %v2375_v39, %v2396_v19 }
 0x719   :  { %2312 = vmatpush2.bf16.msra.mxu0 %v4289_v5  ;;  %2353 = vmatpush2.bf16.msra.mxu1 %v4290_v8  ;;  %v2409_v8 = vsel %vm1057_vm1, %v2371_v10, %v2392_v17 }
 0x79c   :  { %v2122_v13 = vpop.f32.mrf.mxu0  ;;  %v2163_v0 = vpop.f32.mrf.mxu1 }
 0x79d   :  { %v2220_v14 = vadd.f32 %v2216_v6, %v2122_v13  ;;  %v2222_v37 = vadd.f32 %v2218_v22, %v2163_v0 }
 0x79e   :  { %v2124_v12 = vpop.f32.mrf.mxu0  ;;  %v2165_v3 = vpop.f32.mrf.mxu1 }
 0x79f   :  { %v2616_v11 = vmul.f32 -1.442695, %v2220_v14  ;;  %v2221_v2 = vadd.f32 %v2217_v15, %v2124_v12  ;;  %v2223_v38 = vadd.f32 %v2219_v49, %v2165_v3  ;;  %v2404_v3 = vrot.slane %v2366_v62, %v3372_v44 }
 0x7a0   :  { %v2126_v30 = vpop.f32.mrf.mxu0  ;;  %v2167_v23 = vpop.f32.mrf.mxu1 }
 0x7a1   :  { %2829 = vpow2.f32 %v2616_v11  ;;  %v2617_v24 = vmul.f32 -1.442695, %v2221_v2  ;;  %v2618_v28 = vmul.f32 -1.442695, %v2223_v38  ;;  %v2383_v11 = vrot.slane %v2364_v16, %v3372_v44 }
 0x7a2   :  { %v2127_v27 = vpop.f32.mrf.mxu0  ;;  %v2168_v40 = vpop.f32.mrf.mxu1  ;;  %v2400_v30 = vrot.slane %v2366_v62, %v3366_v18  ;;  %v2379_v23 = vrot.slane %v2364_v16, %v3366_v18 }
 0x7a3   :  { %2831 = vpow2.f32 %v2617_v24  ;;  %v2412_v42 = vsel %vm1057_vm1, %v2383_v11, %v2404_v3 }
 0x7a4   :  { %2833 = vpow2.f32 %v2618_v28  ;;  %v2411_v27 = vsel %vm1057_vm1, %v2379_v23, %v2400_v30 }
 0x7ae   :  { %v2830_v25 = vpop.eup %2829 }
 0x7af   :  { %v2227_v29 = vadd.f32 1.0, %v2830_v25 }
 0x7b0   :  { %v2832_v32 = vpop.eup %2831 }
 0x7b1   :  { %2835 = vrcp.f32 %v2227_v29  ;;  %v2233_v52 = vadd.f32 1.0, %v2832_v32  ;;  %v2834_v35 = vpop.eup %2833 }
 0x7b2   :  { %2837 = vtanh.f32 %v2222_v37  ;;  %v2240_v45 = vadd.f32 1.0, %v2834_v35 }
 0x7b3   :  { %2839 = vrcp.f32 %v2233_v52 }
 0x7b4   :  { %2841 = vrcp.f32 %v2240_v45 }
 0x7be   :  { %v2836_v26 = vpop.eup %2835 }
 0x7bf   :  { %v2838_v36 = vpop.eup %2837 }
 0x7c0   :  { %v2840_v41 = vpop.eup %2839  ;;  %v2245_v46 = vmul.f32 %v2838_v36, %v2836_v26 }
 0x7c1   :  { %v2244_v47 = vmul.f32 %v2840_v41, %v2243_v43  ;;  %v2842_v51 = vpop.eup %2841 }
 0x7c3   :  { %v2246_v50 = vadd.f32 %v2245_v46, %v2244_v47 }
 0x7c5   :  { %2843 = vtanh.f32 %v2246_v50  ;;  %2249 = vst [vmem:[#allocation4] sm:$0x3] %v2246_v50 }
 0x7cc   :  { %v2436_v22 = vld [vmem:[#allocation4] sm:$0x3] }
 0x7d2   :  { %v2844_v53 = vpop.eup %2843 }
 0x7d3   :  { %v2248_v54 = vmul.f32 %v2844_v53, %v2842_v51 }
 0x7d5   :  { %v2258_v55 = vrot.slane %v2248_v54, %v3395_v21  ;;  %2263 = vst [vmem:[#allocation13 + $0x6] sm:$0x1] %v2248_v54  ;;  %v2264_v56 = vrot.slane %v2248_v54, 1  ;;  %2250 = vst [vmem:[#allocation3] sm:$0x1] %v2248_v54 }
 0x7d7   :  { %v2619_v57 = vrot.slane %v2258_v55, 9  ;;  %2266 = vst [vmem:[#allocation13 + $0x9] sm:$0x1] %v2264_v56 }
 0x7d9   :  { %2262 = vst [vmem:[#allocation3 + $0x3] sm:$0x1] %v2619_v57 }
 0x7e0   :  { %v2620_v58 = vld.sshfl [vmem:[#allocation3] sm:$0x33 pattern:$0x76325410] }
 0x7e1   :  { %v2276_v59 = vcombine.high %v2620_v58, %v2620_v58  ;;  %v2279_v61 = vpack.c.bf16 %v2620_v58, %v2620_v58 }
 0x7e3   :  { %v2280_v60 = vpack.c.bf16 %v2276_v59, %v2276_v59 }
 0x7e5   :  { %2313 = vmatprep.mubr.bf16.mxu0 %v2280_v60  ;;  %2354 = vmatprep.mubr.bf16.mxu1 %v2280_v60 }
 0x7e6   :  { %2314 = vmatmul.mubr.bf16.vlgmr.msra.gmra.mxu0 %v2279_v61  ;;  %2355 = vmatmul.mubr.bf16.vlgmr.msra.gmra.mxu1 %v2279_v61 }
 0x8a6   :  { %v2315_v5 = vpop.f32.mrf.mxu0  ;;  %v2356_v20 = vpop.f32.mrf.mxu1 }
 0x8a7   :  { %v2413_v9 = vadd.f32 %v2409_v8, %v2315_v5  ;;  %v2415_v31 = vadd.f32 %v2411_v27, %v2356_v20 }
 0x8a8   :  { %v2317_v63 = vpop.f32.mrf.mxu0  ;;  %v2358_v13 = vpop.f32.mrf.mxu1 }
 0x8a9   :  { %v2621_v6 = vmul.f32 -1.442695, %v2413_v9  ;;  %v2414_v0 = vadd.f32 %v2410_v7, %v2317_v63  ;;  %v2416_v2 = vadd.f32 %v2412_v42, %v2358_v13 }
 0x8aa   :  { %v2319_v4 = vpop.f32.mrf.mxu0  ;;  %v2360_v14 = vpop.f32.mrf.mxu1 }
 0x8ab   :  { %2845 = vpow2.f32 %v2621_v6  ;;  %v2622_v12 = vmul.f32 -1.442695, %v2414_v0  ;;  %v2623_v24 = vmul.f32 -1.442695, %v2416_v2 }
 0x8ac   :  { %v2320_v1 = vpop.f32.mrf.mxu0  ;;  %v2361_v15 = vpop.f32.mrf.mxu1 }
 0x8ad   :  { %2847 = vpow2.f32 %v2622_v12 }
 0x8ae   :  { %2849 = vpow2.f32 %v2623_v24 }
 0x8b8   :  { %v2846_v40 = vpop.eup %2845 }
 0x8b9   :  { %v2420_v48 = vadd.f32 1.0, %v2846_v40 }
 0x8ba   :  { %v2848_v49 = vpop.eup %2847 }
 0x8bb   :  { %2851 = vrcp.f32 %v2420_v48  ;;  %v2426_v38 = vadd.f32 1.0, %v2848_v49  ;;  %v2850_v44 = vpop.eup %2849 }
 0x8bc   :  { %2853 = vtanh.f32 %v2415_v31  ;;  %v2433_v25 = vadd.f32 1.0, %v2850_v44 }
 0x8bd   :  { %2855 = vrcp.f32 %v2426_v38 }
 0x8be   :  { %2857 = vrcp.f32 %v2433_v25 }
 0x8c8   :  { %v2852_v33 = vpop.eup %2851 }
 0x8c9   :  { %v2854_v34 = vpop.eup %2853 }
 0x8ca   :  { %v2856_v28 = vpop.eup %2855  ;;  %v2438_v37 = vmul.f32 %v2854_v34, %v2852_v33 }
 0x8cb   :  { %v2437_v18 = vmul.f32 %v2856_v28, %v2436_v22  ;;  %v2858_v32 = vpop.eup %2857 }
 0x8cd   :  { %v2439_v29 = vadd.f32 %v2438_v37, %v2437_v18 }
 0x8cf   :  { %2859 = vtanh.f32 %v2439_v29  ;;  %2442 = vst [vmem:[#allocation4] sm:$0x3] %v2439_v29 }
 0x8dc   :  { %v2860_v52 = vpop.eup %2859 }
 0x8dd   :  { %v2441_v35 = vmul.f32 %v2860_v52, %v2858_v32 }
 0x8df   :  { %2443 = vst [vmem:[#allocation3] sm:$0x1] %v2441_v35  ;;  %v2451_v26 = vrot.slane %v2441_v35, %v3395_v21  ;;  %2456 = vst [vmem:[#allocation13 + $0x7] sm:$0x1] %v2441_v35  ;;  %v2457_v36 = vrot.slane %v2441_v35, 1 }
 0x8e1   :  { %v2624_v41 = vrot.slane %v2451_v26, 9  ;;  %2459 = vst [vmem:[#allocation13 + $0x8] sm:$0x1] %v2457_v36 }
 0x8e2   :  { %3016 = shalt.err (!%p3013_p10)
}
 0x8e3   :  { %2469 = dma.vmem_to_hbm [thread:$0]  %s2467_s3, 256, %s4006_s4, [#allocation7]   ;;  %2455 = vst [vmem:[#allocation3 + $0x3] sm:$0x1] %v2624_v41 }
 0x8e4   :  { %3031 = dma.done.wait [#allocation7], 256  }
 0x8e5   :  { %3032 = vsyncadd [#allocation7], 4294967040 }
 0x8e6   :  { %2473 = vsyncpa [#allocation6], 1 }
 0x8e7   :  { %2474 = vsyncpa [#allocation9], 1 }
 0x8e8   :  { %2475 = vsyncpa [#allocation12], 1 }
 0x8e9   :  { %2476 = vsyncpa [#allocation7], 1 }

</bundles_post_ra>
